<compile_context>
chip_gen: v6e
topology: v6e:2x2x1
jax: 0.10.0
libtpu: 0.0.40
codegen_flags: <defaults>
</compile_context>

<pallas_src>
import math
import functools

import jax
import jax.numpy as jnp
from jax import lax
from jax.experimental import pallas as pl
from jax.experimental.pallas import tpu as pltpu

F32 = jnp.float32
BF16 = jnp.bfloat16
NEG_INF = jnp.float32(-1e9)


def _round_up(x, m):
    return ((x + m - 1) // m) * m


# ---------------------------------------------------------------------------
# In-kernel helpers
# ---------------------------------------------------------------------------
def _lin(x, w_ref, b_ref):
    # f32 activations -> bf16 MXU operand, bf16 resident weight, f32 acc.
    return jnp.dot(x.astype(BF16), w_ref[...],
                   preferred_element_type=F32) + b_ref[...]


def _dot_t(a, b):
    # a [M,K] x b [N,K] -> [M,N]; contract last axes, no explicit transpose.
    return lax.dot_general(a.astype(BF16), b.astype(BF16),
                           dimension_numbers=(((1,), (1,)), ((), ())),
                           preferred_element_type=F32)


def _layer_norm(x, g_ref, b_ref):
    mu = jnp.mean(x, axis=-1, keepdims=True)
    var = jnp.mean((x - mu) ** 2, axis=-1, keepdims=True)
    return (x - mu) * lax.rsqrt(var + 1e-5) * g_ref[...] + b_ref[...]


def _leaky_relu(x):  # F.leaky_relu default negative_slope = 0.01
    return jnp.maximum(x, 0.01 * x)


def _softmax_rows(s):
    # Non-incident / padded entries carry -1e9 from the folded bias; their
    # exp underflows to exactly 0.  The row max contributes exp(0)=1, so the
    # denominator is always >= 1 and the approx reciprocal is safe.
    m = jnp.max(s, axis=-1, keepdims=True)
    e = jnp.exp(s - m)
    return e * pl.reciprocal(jnp.sum(e, axis=-1, keepdims=True), approx=True)


# ---------------------------------------------------------------------------
# Fused THTN forward kernel (single invocation, everything VMEM-resident)
# ---------------------------------------------------------------------------
def _thtn_fused_kernel(q_dim, d_dim,
                       vfeat_ref, eign_ref, addn_ref, efeat_ref,
                       bias1_ref, bias2_ref,
                       w_vtx1, b_vtx1, w_eig, b_eig, w_nf, b_nf,
                       w_qe, b_qe, ln1_g, ln1_b, w1, b1, w2, b2, w_ef, b_ef,
                       ln2_g, ln2_b, w3, b3, w4, b4, w_cls, b_cls,
                       out_ref):
    # ---- node feature preparation ----
    feat_v = _lin(vfeat_ref[...], w_vtx1, b_vtx1)           # vtx_lin_1layer
    feat_v = feat_v + _lin(eign_ref[...], w_eig, b_eig)     # + eign_vec_lin
    feat_v = feat_v + addn_ref[...]                         # + gcn + cs + un (host-summed)

    # fused node projections [k_n | v_n | q_n*(1/sqrt(Q))]; single bf16 cast,
    # slices land on 128-lane boundaries (q_dim/d_dim multiples of 128).
    knvq = _lin(feat_v, w_nf, b_nf).astype(BF16)            # [Np, 2Q+D]
    k_n = knvq[:, :q_dim]
    v_n = knvq[:, q_dim:q_dim + d_dim]
    q_n = knvq[:, q_dim + d_dim:]

    # ---- 'in' attention: nodes -> hyperedges ----
    feat_e = efeat_ref[...]
    q_e = _lin(feat_e, w_qe, b_qe)                          # 1/sqrt(Q) folded into w_qe
    s1 = _leaky_relu(_dot_t(q_e, k_n)) + bias1_ref[...].astype(F32)   # [Ep, Np]
    p1 = _softmax_rows(s1)
    h_e = jnp.dot(p1.astype(BF16), v_n, preferred_element_type=F32)   # [Ep, D]

    x = _layer_norm(h_e + feat_e, ln1_g, ln1_b)             # add & norm 1
    ffn = _lin(jnp.maximum(_lin(x, w1, b1), 0.0), w2, b2)   # ffn1 (dropout = identity)
    feat_e2 = _layer_norm(ffn + x, ln1_g, ln1_b)            # add & norm 1 (shared LN, as in module)

    kve = _lin(feat_e2, w_ef, b_ef).astype(BF16)            # fused [k_e | v_e]
    k_e = kve[:, :q_dim]
    v_e = kve[:, q_dim:]

    # ---- 'con' attention: hyperedges -> nodes ----
    s2 = _leaky_relu(_dot_t(q_n, k_e)) + bias2_ref[...].astype(F32)   # [Np, Ep]
    p2 = _softmax_rows(s2)
    h_v = jnp.dot(p2.astype(BF16), v_e, preferred_element_type=F32)   # [Np, D]

    y = _layer_norm(h_v + feat_v, ln2_g, ln2_b)             # add & norm 2
    ffn2 = _lin(jnp.maximum(_lin(y, w3, b3), 0.0), w4, b4)  # ffn2
    feat_v2 = _layer_norm(ffn2 + y, ln2_g, ln2_b)           # add & norm 2 (shared LN)

    out_ref[...] = _lin(feat_v2, w_cls, b_cls)              # lane-dense padded logits


# ---------------------------------------------------------------------------
# Wrapper: host-side folding / padding + single pallas_call
# ---------------------------------------------------------------------------
def thtn_forward(vfeat, eign_vec, add_n, efeat, incidence, bias_in, bias_con,
                 params, *, query_dim, vertex_dim, num_class, pad_to=128):
    N, in_dim = vfeat.shape
    E = efeat.shape[0]
    Q, D = query_dim, vertex_dim
    eig_dim = eign_vec.shape[1]
    cls_pad = params[-2].shape[1]

    n_pad = _round_up(N, pad_to)
    e_pad = _round_up(E, pad_to)

    def pad_rows(a, rows):
        return jnp.zeros((rows, a.shape[1]), a.dtype).at[:a.shape[0], :].set(a)

    vfeat_p = pad_rows(vfeat, n_pad)
    eign_p = pad_rows(eign_vec, n_pad)
    addn_p = pad_rows(add_n, n_pad)
    efeat_p = pad_rows(efeat, e_pad)

    # fold the incidence mask into the structural biases; padded rows/cols
    # also get -1e9 so padded nodes/edges get zero softmax weight.  bf16
    # storage halves the largest streamed/resident slabs.
    bias1 = jnp.where(incidence.T > 0, bias_in, NEG_INF)               # [E, N]
    bias2 = jnp.where(incidence > 0, bias_con, NEG_INF)                # [N, E]
    bias1_p = jnp.full((e_pad, n_pad), NEG_INF, F32).at[:E, :N].set(bias1).astype(BF16)
    bias2_p = jnp.full((n_pad, e_pad), NEG_INF, F32).at[:N, :E].set(bias2).astype(BF16)

    vmem = functools.partial(pl.BlockSpec, memory_space=pltpu.MemorySpace.VMEM)
    n_inputs = 6 + len(params)

    flops = 2 * (n_pad * (in_dim + eig_dim + 2 * Q + D) * D          # node prep + fused proj
                 + e_pad * D * Q                                     # q_e
                 + e_pad * n_pad * (Q + D)                           # in-attn scores + PV
                 + e_pad * (2 * D * Q + D * (Q + D))                 # ffn1 + fused [k_e|v_e]
                 + n_pad * e_pad * (Q + D)                           # con-attn scores + PV
                 + n_pad * (2 * D * Q + D * cls_pad))                # ffn2 + classifier
    bytes_accessed = 4 * (n_pad * (in_dim + eig_dim + D + cls_pad)
                          + e_pad * D) + 2 * (e_pad * n_pad + n_pad * e_pad)
    ce = pl.CostEstimate(flops=int(flops),
                         transcendentals=int(2 * n_pad * e_pad),
                         bytes_accessed=int(bytes_accessed))

    logits_pad = pl.pallas_call(
        functools.partial(_thtn_fused_kernel, Q, D),
        in_specs=[vmem() for _ in range(n_inputs)],
        out_specs=vmem(),
        out_shape=jax.ShapeDtypeStruct((n_pad, cls_pad), F32),
        cost_estimate=ce,
    )(vfeat_p, eign_p, addn_p, efeat_p, bias1_p, bias2_p, *params)

    # lane-dense padded logits -> slice real nodes / real classes
    return logits_pad[:N, :num_class]


# ---------------------------------------------------------------------------
# Deterministic parameter / input construction
# ---------------------------------------------------------------------------
def _dense(key, din, dout, scale=0.1):
    kw, kb = jax.random.split(key)
    w = jax.random.normal(kw, (din, dout), F32) * scale
    b = jax.random.normal(kb, (1, dout), F32) * scale
    return w, b


if __name__ == "__main__":
    # small shapes consistent with the module's forward
    N, E = 16, 8                 # nodes, hyperedges
    IN_DIM = 16                  # input_dim
    D = 128                      # vertex_dim == edge_dim == LEN
    Q = 128                      # query_dim
    EIG = 8                      # eign_vec.shape[1]
    NUM_CLASS = 4
    CLS_PAD = 128                # lane-dense padded classifier width
    NUM_CENT, NUM_UNIQ = 10, 10  # embedding-table rows

    key = jax.random.PRNGKey(0)
    keys = jax.random.split(key, 32)
    ki = iter(keys)

    # ---- data-side inputs ----
    vfeat = jax.random.normal(next(ki), (N, IN_DIM), F32)
    eign_vec = jax.random.normal(next(ki), (N, EIG), F32)
    efeat = jax.random.normal(next(ki), (E, D), F32)

    # embedding lookups done in plain JAX (glue); tables are deterministic
    cs_table = jax.random.normal(next(ki), (NUM_CENT, D), F32) * 0.1
    un_table = jax.random.normal(next(ki), (NUM_UNIQ, D), F32) * 0.1
    centrality_idx = jnp.arange(N) % NUM_CENT
    uniqueness_idx = (jnp.arange(N) * 3) % NUM_UNIQ
    cs = cs_table[centrality_idx]                          # [N, D]
    un = un_table[uniqueness_idx]                          # [N, D]

    # TODO(synk): external gcn_model(g, node_feat) has no in-kernel equivalent;
    # its output is supplied as a precomputed dense tensor.
    feat_v_gcn = jax.random.normal(next(ki), (N, D), F32) * 0.1
    add_n = feat_v_gcn + cs + un                           # host-summed additive term

    # dense incidence mask M[N, E] (each node incident to 2 hyperedges,
    # every hyperedge has >=1 node)
    rows = jnp.arange(N)
    incidence = jnp.zeros((N, E), F32)
    incidence = incidence.at[rows, rows % E].set(1.0)
    incidence = incidence.at[rows, (rows * 3 + 1) % E].set(1.0)

    # TODO(synk): k_core / local_clustering_coefficient / hyperedge clustering
    # are NetworkX graph algorithms; precomputed host-side as dense additive
    # attention biases (reduce_func1 / reduce_func2 structural terms).
    bias_in = jax.random.uniform(next(ki), (E, N), F32)    # per (edge, node)
    bias_con = jax.random.uniform(next(ki), (N, E), F32)   # per (node, edge)

    # ---- parameters (deterministic) ----
    inv_sqrt_q = jnp.float32(1.0 / math.sqrt(Q))

    w_vtx1, b_vtx1 = _dense(next(ki), IN_DIM, D)
    w_eig, b_eig = _dense(next(ki), EIG, D)
    w_kv, b_kv = _dense(next(ki), D, Q)
    w_vv, b_vv = _dense(next(ki), D, D)      # vv_lin: vertex_dim -> edge_dim (== D)
    w_qe, b_qe = _dense(next(ki), D, Q)
    w_ke, b_ke = _dense(next(ki), D, Q)
    w_ve, b_ve = _dense(next(ki), D, D)      # ve_lin: edge_dim -> vertex_dim
    w_qv, b_qv = _dense(next(ki), D, Q)
    ln1_g = jnp.ones((1, D), F32)
    ln1_b = jnp.zeros((1, D), F32)
    ln2_g = jnp.ones((1, D), F32)
    ln2_b = jnp.zeros((1, D), F32)
    w1, b1 = _dense(next(ki), D, Q)          # linear1
    w2, b2 = _dense(next(ki), Q, D)          # linear2
    w3, b3 = _dense(next(ki), D, Q)          # linear3
    w4, b4 = _dense(next(ki), Q, D)          # linear4
    w_cls, b_cls = _dense(next(ki), D, NUM_CLASS)

    # fold 1/sqrt(Q) into the q projections (leaky_relu is positively homogeneous)
    w_qe_s, b_qe_s = w_qe * inv_sqrt_q, b_qe * inv_sqrt_q
    w_qv_s, b_qv_s = w_qv * inv_sqrt_q, b_qv * inv_sqrt_q

    # fuse projections sharing an input: node side [k|v|q], edge side [k|v]
    w_nf = jnp.concatenate([w_kv, w_vv, w_qv_s], axis=1).astype(BF16)  # [D, Q+D+Q]
    b_nf = jnp.concatenate([b_kv, b_vv, b_qv_s], axis=1)               # [1, Q+D+Q]
    w_ef = jnp.concatenate([w_ke, w_ve], axis=1).astype(BF16)          # [D, Q+D]
    b_ef = jnp.concatenate([b_ke, b_ve], axis=1)                       # [1, Q+D]

    # lane-dense padded classifier (zeros in padded columns; sliced in wrapper)
    w_cls_pad = jnp.zeros((D, CLS_PAD), F32).at[:, :NUM_CLASS].set(w_cls).astype(BF16)
    b_cls_pad = jnp.zeros((1, CLS_PAD), F32).at[:, :NUM_CLASS].set(b_cls)

    params = [w_vtx1.astype(BF16), b_vtx1, w_eig.astype(BF16), b_eig,
              w_nf, b_nf,
              w_qe_s.astype(BF16), b_qe_s, ln1_g, ln1_b,
              w1.astype(BF16), b1, w2.astype(BF16), b2, w_ef, b_ef,
              ln2_g, ln2_b,
              w3.astype(BF16), b3, w4.astype(BF16), b4,
              w_cls_pad, b_cls_pad]

    pred = thtn_forward(vfeat, eign_vec, add_n, efeat, incidence,
                        bias_in, bias_con, params,
                        query_dim=Q, vertex_dim=D, num_class=NUM_CLASS)
    pred = jax.block_until_ready(pred)
    assert pred.shape == (N, NUM_CLASS)
    assert bool(jnp.all(jnp.isfinite(pred)))
    print("KERNEL_OK")
</pallas_src>

<mosaic_0001>
module attributes {stable_mosaic.version = 11 : i64} {
  func.func @_thtn_fused_kernel(%arg0: memref<128x16xf32, #tpu.memory_space<vmem>>, %arg1: memref<128x8xf32, #tpu.memory_space<vmem>>, %arg2: memref<128x128xf32, #tpu.memory_space<vmem>>, %arg3: memref<128x128xf32, #tpu.memory_space<vmem>>, %arg4: memref<128x128xbf16, #tpu.memory_space<vmem>>, %arg5: memref<128x128xbf16, #tpu.memory_space<vmem>>, %arg6: memref<16x128xbf16, #tpu.memory_space<vmem>>, %arg7: memref<1x128xf32, #tpu.memory_space<vmem>>, %arg8: memref<8x128xbf16, #tpu.memory_space<vmem>>, %arg9: memref<1x128xf32, #tpu.memory_space<vmem>>, %arg10: memref<128x384xbf16, #tpu.memory_space<vmem>>, %arg11: memref<1x384xf32, #tpu.memory_space<vmem>>, %arg12: memref<128x128xbf16, #tpu.memory_space<vmem>>, %arg13: memref<1x128xf32, #tpu.memory_space<vmem>>, %arg14: memref<1x128xf32, #tpu.memory_space<vmem>>, %arg15: memref<1x128xf32, #tpu.memory_space<vmem>>, %arg16: memref<128x128xbf16, #tpu.memory_space<vmem>>, %arg17: memref<1x128xf32, #tpu.memory_space<vmem>>, %arg18: memref<128x128xbf16, #tpu.memory_space<vmem>>, %arg19: memref<1x128xf32, #tpu.memory_space<vmem>>, %arg20: memref<128x256xbf16, #tpu.memory_space<vmem>>, %arg21: memref<1x256xf32, #tpu.memory_space<vmem>>, %arg22: memref<1x128xf32, #tpu.memory_space<vmem>>, %arg23: memref<1x128xf32, #tpu.memory_space<vmem>>, %arg24: memref<128x128xbf16, #tpu.memory_space<vmem>>, %arg25: memref<1x128xf32, #tpu.memory_space<vmem>>, %arg26: memref<128x128xbf16, #tpu.memory_space<vmem>>, %arg27: memref<1x128xf32, #tpu.memory_space<vmem>>, %arg28: memref<128x128xbf16, #tpu.memory_space<vmem>>, %arg29: memref<1x128xf32, #tpu.memory_space<vmem>>, %arg30: memref<128x128xf32, #tpu.memory_space<vmem>>) attributes {dimension_semantics = [], scalar_prefetch = 0 : i64, scratch_operands = 0 : i64, tpu.core_type = #tpu.core_type<tc>} {
    %c0 = arith.constant 0 : index
    %c0_0 = arith.constant 0 : index
    %0 = vector.load %arg0[%c0, %c0_0] : memref<128x16xf32, #tpu.memory_space<vmem>>, vector<128x16xf32>
    %1 = arith.truncf %0 : vector<128x16xf32> to vector<128x16xbf16>
    %c0_1 = arith.constant 0 : index
    %c0_2 = arith.constant 0 : index
    %2 = vector.load %arg6[%c0_1, %c0_2] : memref<16x128xbf16, #tpu.memory_space<vmem>>, vector<16x128xbf16>
    %cst = arith.constant dense<0.000000e+00> : vector<128x128xf32>
    %3 = tpu.matmul %1, %2, %cst {dimension_numbers = #tpu.dot_dimension_numbers<[1], [0], [0], [1], [0, 0, 1, 1], [], []>} : vector<128x16xbf16>, vector<16x128xbf16>, vector<128x128xf32> -> vector<128x128xf32>
    %c0_3 = arith.constant 0 : index
    %c0_4 = arith.constant 0 : index
    %4 = vector.load %arg7[%c0_3, %c0_4] : memref<1x128xf32, #tpu.memory_space<vmem>>, vector<1x128xf32>
    %5 = vector.broadcast %4 : vector<1x128xf32> to vector<128x128xf32>
    %6 = arith.addf %3, %5 : vector<128x128xf32>
    %c0_5 = arith.constant 0 : index
    %c0_6 = arith.constant 0 : index
    %7 = vector.load %arg1[%c0_5, %c0_6] : memref<128x8xf32, #tpu.memory_space<vmem>>, vector<128x8xf32>
    %8 = arith.truncf %7 : vector<128x8xf32> to vector<128x8xbf16>
    %c0_7 = arith.constant 0 : index
    %c0_8 = arith.constant 0 : index
    %9 = vector.load %arg8[%c0_7, %c0_8] : memref<8x128xbf16, #tpu.memory_space<vmem>>, vector<8x128xbf16>
    %cst_9 = arith.constant dense<0.000000e+00> : vector<128x128xf32>
    %10 = tpu.matmul %8, %9, %cst_9 {dimension_numbers = #tpu.dot_dimension_numbers<[1], [0], [0], [1], [0, 0, 1, 1], [], []>} : vector<128x8xbf16>, vector<8x128xbf16>, vector<128x128xf32> -> vector<128x128xf32>
    %c0_10 = arith.constant 0 : index
    %c0_11 = arith.constant 0 : index
    %11 = vector.load %arg9[%c0_10, %c0_11] : memref<1x128xf32, #tpu.memory_space<vmem>>, vector<1x128xf32>
    %12 = vector.broadcast %11 : vector<1x128xf32> to vector<128x128xf32>
    %13 = arith.addf %10, %12 : vector<128x128xf32>
    %14 = arith.addf %6, %13 : vector<128x128xf32>
    %c0_12 = arith.constant 0 : index
    %c0_13 = arith.constant 0 : index
    %15 = vector.load %arg2[%c0_12, %c0_13] : memref<128x128xf32, #tpu.memory_space<vmem>>, vector<128x128xf32>
    %16 = arith.addf %14, %15 : vector<128x128xf32>
    %17 = arith.truncf %16 : vector<128x128xf32> to vector<128x128xbf16>
    %c0_14 = arith.constant 0 : index
    %c0_15 = arith.constant 0 : index
    %18 = vector.load %arg10[%c0_14, %c0_15] : memref<128x384xbf16, #tpu.memory_space<vmem>>, vector<128x384xbf16>
    %cst_16 = arith.constant dense<0.000000e+00> : vector<128x384xf32>
    %19 = tpu.matmul %17, %18, %cst_16 {dimension_numbers = #tpu.dot_dimension_numbers<[1], [0], [0], [1], [0, 0, 1, 1], [], []>} : vector<128x128xbf16>, vector<128x384xbf16>, vector<128x384xf32> -> vector<128x384xf32>
    %c0_17 = arith.constant 0 : index
    %c0_18 = arith.constant 0 : index
    %20 = vector.load %arg11[%c0_17, %c0_18] : memref<1x384xf32, #tpu.memory_space<vmem>>, vector<1x384xf32>
    %21 = vector.broadcast %20 : vector<1x384xf32> to vector<128x384xf32>
    %22 = arith.addf %19, %21 : vector<128x384xf32>
    %23 = arith.truncf %22 : vector<128x384xf32> to vector<128x384xbf16>
    %24 = vector.extract_strided_slice %23 {offsets = [0, 0], sizes = [128, 128], strides = [1, 1]} : vector<128x384xbf16> to vector<128x128xbf16>
    %25 = vector.extract_strided_slice %23 {offsets = [0, 128], sizes = [128, 128], strides = [1, 1]} : vector<128x384xbf16> to vector<128x128xbf16>
    %26 = vector.extract_strided_slice %23 {offsets = [0, 256], sizes = [128, 128], strides = [1, 1]} : vector<128x384xbf16> to vector<128x128xbf16>
    %c0_19 = arith.constant 0 : index
    %c0_20 = arith.constant 0 : index
    %27 = vector.load %arg3[%c0_19, %c0_20] : memref<128x128xf32, #tpu.memory_space<vmem>>, vector<128x128xf32>
    %28 = arith.truncf %27 : vector<128x128xf32> to vector<128x128xbf16>
    %c0_21 = arith.constant 0 : index
    %c0_22 = arith.constant 0 : index
    %29 = vector.load %arg12[%c0_21, %c0_22] : memref<128x128xbf16, #tpu.memory_space<vmem>>, vector<128x128xbf16>
    %cst_23 = arith.constant dense<0.000000e+00> : vector<128x128xf32>
    %30 = tpu.matmul %28, %29, %cst_23 {dimension_numbers = #tpu.dot_dimension_numbers<[1], [0], [0], [1], [0, 0, 1, 1], [], []>} : vector<128x128xbf16>, vector<128x128xbf16>, vector<128x128xf32> -> vector<128x128xf32>
    %c0_24 = arith.constant 0 : index
    %c0_25 = arith.constant 0 : index
    %31 = vector.load %arg13[%c0_24, %c0_25] : memref<1x128xf32, #tpu.memory_space<vmem>>, vector<1x128xf32>
    %32 = vector.broadcast %31 : vector<1x128xf32> to vector<128x128xf32>
    %33 = arith.addf %30, %32 : vector<128x128xf32>
    %34 = arith.truncf %33 : vector<128x128xf32> to vector<128x128xbf16>
    %cst_26 = arith.constant dense<0.000000e+00> : vector<128x128xf32>
    %35 = tpu.matmul %34, %24, %cst_26 {dimension_numbers = #tpu.dot_dimension_numbers<[1], [1], [0], [0], [0, 0, 1, 0], [], []>} : vector<128x128xbf16>, vector<128x128xbf16>, vector<128x128xf32> -> vector<128x128xf32>
    %cst_27 = arith.constant 0.00999999977 : f32
    %36 = vector.broadcast %cst_27 : f32 to vector<128x128xf32>
    %37 = arith.mulf %36, %35 : vector<128x128xf32>
    %38 = arith.maximumf %35, %37 : vector<128x128xf32>
    %c0_28 = arith.constant 0 : index
    %c0_29 = arith.constant 0 : index
    %39 = vector.load %arg4[%c0_28, %c0_29] : memref<128x128xbf16, #tpu.memory_space<vmem>>, vector<128x128xbf16>
    %40 = arith.extf %39 : vector<128x128xbf16> to vector<128x128xf32>
    %41 = arith.addf %38, %40 : vector<128x128xf32>
    %cst_30 = arith.constant dense<0xFF800000> : vector<128xf32>
    %42 = vector.multi_reduction <maximumf>, %41, %cst_30 [1] : vector<128x128xf32> to vector<128xf32>
    %43 = vector.shape_cast %42 : vector<128xf32> to vector<128x1xf32>
    %44 = vector.broadcast %43 : vector<128x1xf32> to vector<128x128xf32>
    %45 = arith.subf %41, %44 : vector<128x128xf32>
    %46 = math.exp %45 : vector<128x128xf32>
    %cst_31 = arith.constant dense<0.000000e+00> : vector<128xf32>
    %47 = vector.multi_reduction <add>, %46, %cst_31 [1] : vector<128x128xf32> to vector<128xf32>
    %48 = vector.shape_cast %47 : vector<128xf32> to vector<128x1xf32>
    %49 = tpu.reciprocal %48 {approx = true} : vector<128x1xf32> -> vector<128x1xf32>
    %50 = vector.broadcast %49 : vector<128x1xf32> to vector<128x128xf32>
    %51 = arith.mulf %46, %50 : vector<128x128xf32>
    %52 = arith.truncf %51 : vector<128x128xf32> to vector<128x128xbf16>
    %cst_32 = arith.constant dense<0.000000e+00> : vector<128x128xf32>
    %53 = tpu.matmul %52, %25, %cst_32 {dimension_numbers = #tpu.dot_dimension_numbers<[1], [0], [0], [1], [0, 0, 1, 1], [], []>} : vector<128x128xbf16>, vector<128x128xbf16>, vector<128x128xf32> -> vector<128x128xf32>
    %54 = arith.addf %53, %27 : vector<128x128xf32>
    %cst_33 = arith.constant dense<0.000000e+00> : vector<128xf32>
    %55 = vector.multi_reduction <add>, %54, %cst_33 [1] : vector<128x128xf32> to vector<128xf32>
    %56 = vector.shape_cast %55 : vector<128xf32> to vector<128x1xf32>
    %cst_34 = arith.constant 1.280000e+02 : f32
    %57 = vector.broadcast %cst_34 : f32 to vector<128x1xf32>
    %58 = arith.divf %56, %57 : vector<128x1xf32>
    %59 = vector.broadcast %58 : vector<128x1xf32> to vector<128x128xf32>
    %60 = arith.subf %54, %59 : vector<128x128xf32>
    %61 = arith.mulf %60, %60 : vector<128x128xf32>
    %cst_35 = arith.constant dense<0.000000e+00> : vector<128xf32>
    %62 = vector.multi_reduction <add>, %61, %cst_35 [1] : vector<128x128xf32> to vector<128xf32>
    %63 = vector.shape_cast %62 : vector<128xf32> to vector<128x1xf32>
    %cst_36 = arith.constant 1.280000e+02 : f32
    %64 = vector.broadcast %cst_36 : f32 to vector<128x1xf32>
    %65 = arith.divf %63, %64 : vector<128x1xf32>
    %66 = vector.broadcast %58 : vector<128x1xf32> to vector<128x128xf32>
    %67 = arith.subf %54, %66 : vector<128x128xf32>
    %cst_37 = arith.constant 9.99999974E-6 : f32
    %68 = vector.broadcast %cst_37 : f32 to vector<128x1xf32>
    %69 = arith.addf %65, %68 : vector<128x1xf32>
    %70 = math.rsqrt %69 : vector<128x1xf32>
    %71 = vector.broadcast %70 : vector<128x1xf32> to vector<128x128xf32>
    %72 = arith.mulf %67, %71 : vector<128x128xf32>
    %c0_38 = arith.constant 0 : index
    %c0_39 = arith.constant 0 : index
    %73 = vector.load %arg14[%c0_38, %c0_39] : memref<1x128xf32, #tpu.memory_space<vmem>>, vector<1x128xf32>
    %74 = vector.broadcast %73 : vector<1x128xf32> to vector<128x128xf32>
    %75 = arith.mulf %72, %74 : vector<128x128xf32>
    %c0_40 = arith.constant 0 : index
    %c0_41 = arith.constant 0 : index
    %76 = vector.load %arg15[%c0_40, %c0_41] : memref<1x128xf32, #tpu.memory_space<vmem>>, vector<1x128xf32>
    %77 = vector.broadcast %76 : vector<1x128xf32> to vector<128x128xf32>
    %78 = arith.addf %75, %77 : vector<128x128xf32>
    %79 = arith.truncf %78 : vector<128x128xf32> to vector<128x128xbf16>
    %c0_42 = arith.constant 0 : index
    %c0_43 = arith.constant 0 : index
    %80 = vector.load %arg16[%c0_42, %c0_43] : memref<128x128xbf16, #tpu.memory_space<vmem>>, vector<128x128xbf16>
    %cst_44 = arith.constant dense<0.000000e+00> : vector<128x128xf32>
    %81 = tpu.matmul %79, %80, %cst_44 {dimension_numbers = #tpu.dot_dimension_numbers<[1], [0], [0], [1], [0, 0, 1, 1], [], []>} : vector<128x128xbf16>, vector<128x128xbf16>, vector<128x128xf32> -> vector<128x128xf32>
    %c0_45 = arith.constant 0 : index
    %c0_46 = arith.constant 0 : index
    %82 = vector.load %arg17[%c0_45, %c0_46] : memref<1x128xf32, #tpu.memory_space<vmem>>, vector<1x128xf32>
    %83 = vector.broadcast %82 : vector<1x128xf32> to vector<128x128xf32>
    %84 = arith.addf %81, %83 : vector<128x128xf32>
    %cst_47 = arith.constant 0.000000e+00 : f32
    %85 = vector.broadcast %cst_47 : f32 to vector<128x128xf32>
    %86 = arith.maximumf %84, %85 : vector<128x128xf32>
    %87 = arith.truncf %86 : vector<128x128xf32> to vector<128x128xbf16>
    %c0_48 = arith.constant 0 : index
    %c0_49 = arith.constant 0 : index
    %88 = vector.load %arg18[%c0_48, %c0_49] : memref<128x128xbf16, #tpu.memory_space<vmem>>, vector<128x128xbf16>
    %cst_50 = arith.constant dense<0.000000e+00> : vector<128x128xf32>
    %89 = tpu.matmul %87, %88, %cst_50 {dimension_numbers = #tpu.dot_dimension_numbers<[1], [0], [0], [1], [0, 0, 1, 1], [], []>} : vector<128x128xbf16>, vector<128x128xbf16>, vector<128x128xf32> -> vector<128x128xf32>
    %c0_51 = arith.constant 0 : index
    %c0_52 = arith.constant 0 : index
    %90 = vector.load %arg19[%c0_51, %c0_52] : memref<1x128xf32, #tpu.memory_space<vmem>>, vector<1x128xf32>
    %91 = vector.broadcast %90 : vector<1x128xf32> to vector<128x128xf32>
    %92 = arith.addf %89, %91 : vector<128x128xf32>
    %93 = arith.addf %92, %78 : vector<128x128xf32>
    %cst_53 = arith.constant dense<0.000000e+00> : vector<128xf32>
    %94 = vector.multi_reduction <add>, %93, %cst_53 [1] : vector<128x128xf32> to vector<128xf32>
    %95 = vector.shape_cast %94 : vector<128xf32> to vector<128x1xf32>
    %cst_54 = arith.constant 1.280000e+02 : f32
    %96 = vector.broadcast %cst_54 : f32 to vector<128x1xf32>
    %97 = arith.divf %95, %96 : vector<128x1xf32>
    %98 = vector.broadcast %97 : vector<128x1xf32> to vector<128x128xf32>
    %99 = arith.subf %93, %98 : vector<128x128xf32>
    %100 = arith.mulf %99, %99 : vector<128x128xf32>
    %cst_55 = arith.constant dense<0.000000e+00> : vector<128xf32>
    %101 = vector.multi_reduction <add>, %100, %cst_55 [1] : vector<128x128xf32> to vector<128xf32>
    %102 = vector.shape_cast %101 : vector<128xf32> to vector<128x1xf32>
    %cst_56 = arith.constant 1.280000e+02 : f32
    %103 = vector.broadcast %cst_56 : f32 to vector<128x1xf32>
    %104 = arith.divf %102, %103 : vector<128x1xf32>
    %105 = vector.broadcast %97 : vector<128x1xf32> to vector<128x128xf32>
    %106 = arith.subf %93, %105 : vector<128x128xf32>
    %cst_57 = arith.constant 9.99999974E-6 : f32
    %107 = vector.broadcast %cst_57 : f32 to vector<128x1xf32>
    %108 = arith.addf %104, %107 : vector<128x1xf32>
    %109 = math.rsqrt %108 : vector<128x1xf32>
    %110 = vector.broadcast %109 : vector<128x1xf32> to vector<128x128xf32>
    %111 = arith.mulf %106, %110 : vector<128x128xf32>
    %c0_58 = arith.constant 0 : index
    %c0_59 = arith.constant 0 : index
    %112 = vector.load %arg14[%c0_58, %c0_59] : memref<1x128xf32, #tpu.memory_space<vmem>>, vector<1x128xf32>
    %113 = vector.broadcast %112 : vector<1x128xf32> to vector<128x128xf32>
    %114 = arith.mulf %111, %113 : vector<128x128xf32>
    %c0_60 = arith.constant 0 : index
    %c0_61 = arith.constant 0 : index
    %115 = vector.load %arg15[%c0_60, %c0_61] : memref<1x128xf32, #tpu.memory_space<vmem>>, vector<1x128xf32>
    %116 = vector.broadcast %115 : vector<1x128xf32> to vector<128x128xf32>
    %117 = arith.addf %114, %116 : vector<128x128xf32>
    %118 = arith.truncf %117 : vector<128x128xf32> to vector<128x128xbf16>
    %c0_62 = arith.constant 0 : index
    %c0_63 = arith.constant 0 : index
    %119 = vector.load %arg20[%c0_62, %c0_63] : memref<128x256xbf16, #tpu.memory_space<vmem>>, vector<128x256xbf16>
    %cst_64 = arith.constant dense<0.000000e+00> : vector<128x256xf32>
    %120 = tpu.matmul %118, %119, %cst_64 {dimension_numbers = #tpu.dot_dimension_numbers<[1], [0], [0], [1], [0, 0, 1, 1], [], []>} : vector<128x128xbf16>, vector<128x256xbf16>, vector<128x256xf32> -> vector<128x256xf32>
    %c0_65 = arith.constant 0 : index
    %c0_66 = arith.constant 0 : index
    %121 = vector.load %arg21[%c0_65, %c0_66] : memref<1x256xf32, #tpu.memory_space<vmem>>, vector<1x256xf32>
    %122 = vector.broadcast %121 : vector<1x256xf32> to vector<128x256xf32>
    %123 = arith.addf %120, %122 : vector<128x256xf32>
    %124 = arith.truncf %123 : vector<128x256xf32> to vector<128x256xbf16>
    %125 = vector.extract_strided_slice %124 {offsets = [0, 0], sizes = [128, 128], strides = [1, 1]} : vector<128x256xbf16> to vector<128x128xbf16>
    %126 = vector.extract_strided_slice %124 {offsets = [0, 128], sizes = [128, 128], strides = [1, 1]} : vector<128x256xbf16> to vector<128x128xbf16>
    %cst_67 = arith.constant dense<0.000000e+00> : vector<128x128xf32>
    %127 = tpu.matmul %26, %125, %cst_67 {dimension_numbers = #tpu.dot_dimension_numbers<[1], [1], [0], [0], [0, 0, 1, 0], [], []>} : vector<128x128xbf16>, vector<128x128xbf16>, vector<128x128xf32> -> vector<128x128xf32>
    %cst_68 = arith.constant 0.00999999977 : f32
    %128 = vector.broadcast %cst_68 : f32 to vector<128x128xf32>
    %129 = arith.mulf %128, %127 : vector<128x128xf32>
    %130 = arith.maximumf %127, %129 : vector<128x128xf32>
    %c0_69 = arith.constant 0 : index
    %c0_70 = arith.constant 0 : index
    %131 = vector.load %arg5[%c0_69, %c0_70] : memref<128x128xbf16, #tpu.memory_space<vmem>>, vector<128x128xbf16>
    %132 = arith.extf %131 : vector<128x128xbf16> to vector<128x128xf32>
    %133 = arith.addf %130, %132 : vector<128x128xf32>
    %cst_71 = arith.constant dense<0xFF800000> : vector<128xf32>
    %134 = vector.multi_reduction <maximumf>, %133, %cst_71 [1] : vector<128x128xf32> to vector<128xf32>
    %135 = vector.shape_cast %134 : vector<128xf32> to vector<128x1xf32>
    %136 = vector.broadcast %135 : vector<128x1xf32> to vector<128x128xf32>
    %137 = arith.subf %133, %136 : vector<128x128xf32>
    %138 = math.exp %137 : vector<128x128xf32>
    %cst_72 = arith.constant dense<0.000000e+00> : vector<128xf32>
    %139 = vector.multi_reduction <add>, %138, %cst_72 [1] : vector<128x128xf32> to vector<128xf32>
    %140 = vector.shape_cast %139 : vector<128xf32> to vector<128x1xf32>
    %141 = tpu.reciprocal %140 {approx = true} : vector<128x1xf32> -> vector<128x1xf32>
    %142 = vector.broadcast %141 : vector<128x1xf32> to vector<128x128xf32>
    %143 = arith.mulf %138, %142 : vector<128x128xf32>
    %144 = arith.truncf %143 : vector<128x128xf32> to vector<128x128xbf16>
    %cst_73 = arith.constant dense<0.000000e+00> : vector<128x128xf32>
    %145 = tpu.matmul %144, %126, %cst_73 {dimension_numbers = #tpu.dot_dimension_numbers<[1], [0], [0], [1], [0, 0, 1, 1], [], []>} : vector<128x128xbf16>, vector<128x128xbf16>, vector<128x128xf32> -> vector<128x128xf32>
    %146 = arith.addf %145, %16 : vector<128x128xf32>
    %cst_74 = arith.constant dense<0.000000e+00> : vector<128xf32>
    %147 = vector.multi_reduction <add>, %146, %cst_74 [1] : vector<128x128xf32> to vector<128xf32>
    %148 = vector.shape_cast %147 : vector<128xf32> to vector<128x1xf32>
    %cst_75 = arith.constant 1.280000e+02 : f32
    %149 = vector.broadcast %cst_75 : f32 to vector<128x1xf32>
    %150 = arith.divf %148, %149 : vector<128x1xf32>
    %151 = vector.broadcast %150 : vector<128x1xf32> to vector<128x128xf32>
    %152 = arith.subf %146, %151 : vector<128x128xf32>
    %153 = arith.mulf %152, %152 : vector<128x128xf32>
    %cst_76 = arith.constant dense<0.000000e+00> : vector<128xf32>
    %154 = vector.multi_reduction <add>, %153, %cst_76 [1] : vector<128x128xf32> to vector<128xf32>
    %155 = vector.shape_cast %154 : vector<128xf32> to vector<128x1xf32>
    %cst_77 = arith.constant 1.280000e+02 : f32
    %156 = vector.broadcast %cst_77 : f32 to vector<128x1xf32>
    %157 = arith.divf %155, %156 : vector<128x1xf32>
    %158 = vector.broadcast %150 : vector<128x1xf32> to vector<128x128xf32>
    %159 = arith.subf %146, %158 : vector<128x128xf32>
    %cst_78 = arith.constant 9.99999974E-6 : f32
    %160 = vector.broadcast %cst_78 : f32 to vector<128x1xf32>
    %161 = arith.addf %157, %160 : vector<128x1xf32>
    %162 = math.rsqrt %161 : vector<128x1xf32>
    %163 = vector.broadcast %162 : vector<128x1xf32> to vector<128x128xf32>
    %164 = arith.mulf %159, %163 : vector<128x128xf32>
    %c0_79 = arith.constant 0 : index
    %c0_80 = arith.constant 0 : index
    %165 = vector.load %arg22[%c0_79, %c0_80] : memref<1x128xf32, #tpu.memory_space<vmem>>, vector<1x128xf32>
    %166 = vector.broadcast %165 : vector<1x128xf32> to vector<128x128xf32>
    %167 = arith.mulf %164, %166 : vector<128x128xf32>
    %c0_81 = arith.constant 0 : index
    %c0_82 = arith.constant 0 : index
    %168 = vector.load %arg23[%c0_81, %c0_82] : memref<1x128xf32, #tpu.memory_space<vmem>>, vector<1x128xf32>
    %169 = vector.broadcast %168 : vector<1x128xf32> to vector<128x128xf32>
    %170 = arith.addf %167, %169 : vector<128x128xf32>
    %171 = arith.truncf %170 : vector<128x128xf32> to vector<128x128xbf16>
    %c0_83 = arith.constant 0 : index
    %c0_84 = arith.constant 0 : index
    %172 = vector.load %arg24[%c0_83, %c0_84] : memref<128x128xbf16, #tpu.memory_space<vmem>>, vector<128x128xbf16>
    %cst_85 = arith.constant dense<0.000000e+00> : vector<128x128xf32>
    %173 = tpu.matmul %171, %172, %cst_85 {dimension_numbers = #tpu.dot_dimension_numbers<[1], [0], [0], [1], [0, 0, 1, 1], [], []>} : vector<128x128xbf16>, vector<128x128xbf16>, vector<128x128xf32> -> vector<128x128xf32>
    %c0_86 = arith.constant 0 : index
    %c0_87 = arith.constant 0 : index
    %174 = vector.load %arg25[%c0_86, %c0_87] : memref<1x128xf32, #tpu.memory_space<vmem>>, vector<1x128xf32>
    %175 = vector.broadcast %174 : vector<1x128xf32> to vector<128x128xf32>
    %176 = arith.addf %173, %175 : vector<128x128xf32>
    %cst_88 = arith.constant 0.000000e+00 : f32
    %177 = vector.broadcast %cst_88 : f32 to vector<128x128xf32>
    %178 = arith.maximumf %176, %177 : vector<128x128xf32>
    %179 = arith.truncf %178 : vector<128x128xf32> to vector<128x128xbf16>
    %c0_89 = arith.constant 0 : index
    %c0_90 = arith.constant 0 : index
    %180 = vector.load %arg26[%c0_89, %c0_90] : memref<128x128xbf16, #tpu.memory_space<vmem>>, vector<128x128xbf16>
    %cst_91 = arith.constant dense<0.000000e+00> : vector<128x128xf32>
    %181 = tpu.matmul %179, %180, %cst_91 {dimension_numbers = #tpu.dot_dimension_numbers<[1], [0], [0], [1], [0, 0, 1, 1], [], []>} : vector<128x128xbf16>, vector<128x128xbf16>, vector<128x128xf32> -> vector<128x128xf32>
    %c0_92 = arith.constant 0 : index
    %c0_93 = arith.constant 0 : index
    %182 = vector.load %arg27[%c0_92, %c0_93] : memref<1x128xf32, #tpu.memory_space<vmem>>, vector<1x128xf32>
    %183 = vector.broadcast %182 : vector<1x128xf32> to vector<128x128xf32>
    %184 = arith.addf %181, %183 : vector<128x128xf32>
    %185 = arith.addf %184, %170 : vector<128x128xf32>
    %cst_94 = arith.constant dense<0.000000e+00> : vector<128xf32>
    %186 = vector.multi_reduction <add>, %185, %cst_94 [1] : vector<128x128xf32> to vector<128xf32>
    %187 = vector.shape_cast %186 : vector<128xf32> to vector<128x1xf32>
    %cst_95 = arith.constant 1.280000e+02 : f32
    %188 = vector.broadcast %cst_95 : f32 to vector<128x1xf32>
    %189 = arith.divf %187, %188 : vector<128x1xf32>
    %190 = vector.broadcast %189 : vector<128x1xf32> to vector<128x128xf32>
    %191 = arith.subf %185, %190 : vector<128x128xf32>
    %192 = arith.mulf %191, %191 : vector<128x128xf32>
    %cst_96 = arith.constant dense<0.000000e+00> : vector<128xf32>
    %193 = vector.multi_reduction <add>, %192, %cst_96 [1] : vector<128x128xf32> to vector<128xf32>
    %194 = vector.shape_cast %193 : vector<128xf32> to vector<128x1xf32>
    %cst_97 = arith.constant 1.280000e+02 : f32
    %195 = vector.broadcast %cst_97 : f32 to vector<128x1xf32>
    %196 = arith.divf %194, %195 : vector<128x1xf32>
    %197 = vector.broadcast %189 : vector<128x1xf32> to vector<128x128xf32>
    %198 = arith.subf %185, %197 : vector<128x128xf32>
    %cst_98 = arith.constant 9.99999974E-6 : f32
    %199 = vector.broadcast %cst_98 : f32 to vector<128x1xf32>
    %200 = arith.addf %196, %199 : vector<128x1xf32>
    %201 = math.rsqrt %200 : vector<128x1xf32>
    %202 = vector.broadcast %201 : vector<128x1xf32> to vector<128x128xf32>
    %203 = arith.mulf %198, %202 : vector<128x128xf32>
    %c0_99 = arith.constant 0 : index
    %c0_100 = arith.constant 0 : index
    %204 = vector.load %arg22[%c0_99, %c0_100] : memref<1x128xf32, #tpu.memory_space<vmem>>, vector<1x128xf32>
    %205 = vector.broadcast %204 : vector<1x128xf32> to vector<128x128xf32>
    %206 = arith.mulf %203, %205 : vector<128x128xf32>
    %c0_101 = arith.constant 0 : index
    %c0_102 = arith.constant 0 : index
    %207 = vector.load %arg23[%c0_101, %c0_102] : memref<1x128xf32, #tpu.memory_space<vmem>>, vector<1x128xf32>
    %208 = vector.broadcast %207 : vector<1x128xf32> to vector<128x128xf32>
    %209 = arith.addf %206, %208 : vector<128x128xf32>
    %210 = arith.truncf %209 : vector<128x128xf32> to vector<128x128xbf16>
    %c0_103 = arith.constant 0 : index
    %c0_104 = arith.constant 0 : index
    %211 = vector.load %arg28[%c0_103, %c0_104] : memref<128x128xbf16, #tpu.memory_space<vmem>>, vector<128x128xbf16>
    %cst_105 = arith.constant dense<0.000000e+00> : vector<128x128xf32>
    %212 = tpu.matmul %210, %211, %cst_105 {dimension_numbers = #tpu.dot_dimension_numbers<[1], [0], [0], [1], [0, 0, 1, 1], [], []>} : vector<128x128xbf16>, vector<128x128xbf16>, vector<128x128xf32> -> vector<128x128xf32>
    %c0_106 = arith.constant 0 : index
    %c0_107 = arith.constant 0 : index
    %213 = vector.load %arg29[%c0_106, %c0_107] : memref<1x128xf32, #tpu.memory_space<vmem>>, vector<1x128xf32>
    %214 = vector.broadcast %213 : vector<1x128xf32> to vector<128x128xf32>
    %215 = arith.addf %212, %214 : vector<128x128xf32>
    %c0_108 = arith.constant 0 : index
    %c0_109 = arith.constant 0 : index
    %216 = vector.load %arg30[%c0_108, %c0_109] : memref<128x128xf32, #tpu.memory_space<vmem>>, vector<128x128xf32>
    tpu.vector_store %arg30[%c0_108, %c0_109], %215 {strides = array<i32>} : memref<128x128xf32, #tpu.memory_space<vmem>>, vector<128x128xf32>,
    return
  }
}

</mosaic_0001>

<bundles_post_ra>
// kernel: tpu_custom_call.1
= control target key start
LH: loop header
LB: loop body
LE: loop exit
PB: predicated region body
PF: predicated region fallthrough
CT: control target
= control target key end

     0   :  { %s6055_s6 = smov 1   ;;  %s6056_s10 = smov 2   ;;  %s7875_s0 = inlined_call_operand.smem [shape: u32[31], index: -1, kind: input, shape index: {}] }
   0x1   :  { %s6121_s5 = sld [smem:[%s7875_s0]]   ;;  %s6057_s14 = smov 3  }
   0x2   :  { %s6126_s9 = sld [smem:[%s7875_s0 + %s6055_s6]]   ;;  %s6058_s18 = smov 4  }
   0x3   :  { %s6131_s13 = sld [smem:[%s7875_s0 + %s6056_s10]]   ;;  %s6059_s22 = smov 5  }
   0x4   :  { %s6136_s17 = sld [smem:[%s7875_s0 + %s6057_s14]]   ;;  %s6060_s26 = smov 6  }
   0x5   :  { %s6141_s21 = sld [smem:[%s7875_s0 + %s6058_s18]]   ;;  %s6061_s30 = smov 7  }
   0x6   :  { %s6146_s25 = sld [smem:[%s7875_s0 + %s6059_s22]]   ;;  %s6062_s4 = smov 8  }
   0x7   :  { %7901 = sst [smem:[#allocation51_spill]] %s6121_s5  ;;  %s6063_s10 = smov 9  }
   0x8   :  { %7902 = sst [smem:[#allocation52_spill]] %s6126_s9  ;;  %s6064_s15 = smov 10  }
   0x9   :  { %s6151_s29 = sld [smem:[%s7875_s0 + %s6060_s26]]   ;;  %s6065_s20 = smov 11  }
   0xa   :  { %s6156_s3 = sld [smem:[%s7875_s0 + %s6061_s30]]   ;;  %s6066_s26 = smov 12  }
   0xb   :  { %7903 = sst [smem:[#allocation53_spill]] %s6141_s21  ;;  %s6067_s1 = smov 13  }
   0xc   :  { %s6161_s8 = sld [smem:[%s7875_s0 + %s6062_s4]]   ;;  %s6068_s7 = smov 14  }
   0xd   :  { %s6166_s14 = sld [smem:[%s7875_s0 + %s6063_s10]]   ;;  %s6070_s22 = smov 16  }
   0xe   :  { %s6171_s19 = sld [smem:[%s7875_s0 + %s6064_s15]]   ;;  %s6069_s15 = smov 15  }
   0xf   :  { %s6176_s24 = sld [smem:[%s7875_s0 + %s6065_s20]]   ;;  %s6071_s28 = smov 17  }
  0x10   :  { %s6181_s30 = sld [smem:[%s7875_s0 + %s6066_s26]]  }
  0x11   :  { %s6186_s6 = sld [smem:[%s7875_s0 + %s6067_s1]]  }
  0x12   :  { %s6191_s12 = sld [smem:[%s7875_s0 + %s6068_s7]]   ;;  %s6072_s7 = smov 18  }
  0x13   :  { %s6196_s20 = sld [smem:[%s7875_s0 + %s6069_s15]]   ;;  %s6073_s15 = smov 19  }
  0x14   :  { %7904 = sst [smem:[#allocation54_spill]] %s6171_s19 }
  0x15   :  { %s6201_s27 = sld [smem:[%s7875_s0 + %s6070_s22]]   ;;  %s6074_s22 = smov 20  }
  0x16   :  { %7905 = sst [smem:[#allocation55_spill]] %s6181_s30 }
  0x17   :  { %s6206_s4 = sld [smem:[%s7875_s0 + %s6071_s28]]   ;;  %s6075_s28 = smov 21  }
  0x18   :  { %7906 = sst [smem:[#allocation56_spill]] %s6191_s12 }
  0x19   :  { %s6211_s21 = sld [smem:[%s7875_s0 + %s6072_s7]]   ;;  %s6076_s7 = smov 22  }
  0x1a   :  { %s6216_s19 = sld [smem:[%s7875_s0 + %s6073_s15]]   ;;  %s6077_s15 = smov 23  }
  0x1b   :  { %7907 = sst [smem:[#allocation57_spill]] %s6201_s27 }
  0x1c   :  { %s6221_s5 = sld [smem:[%s7875_s0 + %s6074_s22]]   ;;  %s6078_s22 = smov 24  }
  0x1d   :  { %s6226_s9 = sld [smem:[%s7875_s0 + %s6075_s28]]   ;;  %s6079_s28 = smov 25  }
  0x1e   :  { %s6236_s27 = sld [smem:[%s7875_s0 + %s6077_s15]]   ;;  %s6081_s15 = smov 27  }
  0x1f   :  { %7908 = sst [smem:[#allocation58_spill]] %s6211_s21 }
  0x20   :  { %s6231_s21 = sld [smem:[%s7875_s0 + %s6076_s7]]   ;;  %s6080_s7 = smov 26  }
  0x21   :  { %s6246_s12 = sld [smem:[%s7875_s0 + %s6079_s28]]   ;;  %s6083_s28 = smov 29  }
  0x22   :  { %7909 = sst [smem:[#allocation59_spill]] %s6221_s5 }
  0x23   :  { %s6241_s5 = sld [smem:[%s7875_s0 + %s6078_s22]]   ;;  %s6082_s22 = smov 28  }
  0x24   :  { %s6256_s30 = sld [smem:[%s7875_s0 + %s6081_s15]]  }
  0x26   :  { %7910 = sst [smem:[#allocation60_spill]] %s6231_s21 }
  0x27   :  { %7912 = sst [smem:[#allocation62_spill]] %s6246_s12 }
  0x28   :  { %s6251_s21 = sld [smem:[%s7875_s0 + %s6080_s7]]   ;;  %s6084_s7 = smov 30  }
  0x29   :  { %7911 = sst [smem:[#allocation61_spill]] %s6241_s5 }
  0x2a   :  { %s6261_s5 = sld [smem:[%s7875_s0 + %s6082_s22]]  }
  0x2b   :  { %s6266_s12 = sld [smem:[%s7875_s0 + %s6083_s28]]  }
  0x2e   :  { %7913 = sst [smem:[#allocation63_spill]] %s6251_s21 }
  0x2f   :  { %s6271_s21 = sld [smem:[%s7875_s0 + %s6084_s7]]  }
  0x30   :  { %66 = vsyncpa [#allocation3], 0 }
  0x31   :  { %67 = vsyncpa [#allocation6], 0 }
  0x32   :  { %68 = vsyncpa [#allocation9], 0 }
  0x33   :  { %69 = vsyncpa [#allocation12], 0 }
  0x34   :  { %70 = vsyncpa [#allocation15], 0 }
  0x35   :  { %71 = vsyncpa [#allocation18], 0 }
  0x36   :  { %72 = vsyncpa [#allocation21], 0 }
  0x37   :  { %73 = vsyncpa [#allocation24], 0 }
  0x38   :  { %74 = vsyncpa [#allocation27], 0 }
  0x39   :  { %75 = vsyncpa [#allocation30], 0 }
  0x3a   :  { %76 = vsyncpa [#allocation33], 0 }
  0x3b   :  { %77 = vsyncpa [#allocation36], 0 }
  0x3c   :  { %78 = vsyncpa [#allocation4], 0  ;;  %s6085_s15 = smov [#allocation5]  }
  0x3d   :  { %s100_s16 = sshll.u32 %s6085_s15, 4  ;;  %s101_s16 = int_to_ptr.vmem [resolvable:$true] %s100_s16 }
  0x3e   :  { %s5577_s18 = scalar_lea.vmem %s101_s16, 2048  ;;  %p5582_p1 = scmp.lt.s32.totalorder %s101_s16, %s101_s16 }
  0x3f   :  { %p5578_p0 = scmp.ne.s32.totalorder %s101_s16, %s5577_s18  ;;  %p5583_p2 = scmp.lt.s32.totalorder %s5577_s18, %s5577_s18 }
  0x41   :  { %p5584_p3 = por %p5583_p2, %p5582_p1 }
  0x43   :  { %p5585_p4 = pnand %p5584_p3, %p5578_p0 }
  0x45   :  { %5588 = shalt.err (!%p5585_p4)
}
  0x46   :  { %s6086_s0 = smov 128   ;;  %s6087_s22 = smov 8  }
  0x47   :  { %106 = dma.hbm_to_vmem [thread:$0]  %s6136_s17, 2048, %s101_s16, [#allocation6], %s6086_s0, %s6086_s0, %s6087_s22  }
  0x48   :  { %s6088_s23 = smov [#allocation8]   ;;  %s6089_s28 = smov [#allocation11]  }
  0x49   :  { %s126_s26 = sshll.u32 %s6088_s23, 4  ;;  %s149_s1 = sshll.u32 %s6089_s28, 4  ;;  %s127_s26 = int_to_ptr.vmem [resolvable:$true] %s126_s26  ;;  %s150_s1 = int_to_ptr.vmem [resolvable:$true] %s149_s1 }
  0x4a   :  { %s5597_s2 = scalar_lea.vmem %s127_s26, 128  ;;  %p5602_p6 = scmp.lt.s32.totalorder %s127_s26, %s127_s26 }
  0x4b   :  { %p5598_p5 = scmp.ne.s32.totalorder %s127_s26, %s5597_s2  ;;  %p5603_p7 = scmp.lt.s32.totalorder %s5597_s2, %s5597_s2 }
  0x4d   :  { %p5604_p8 = por %p5603_p7, %p5602_p6 }
  0x4f   :  { %p5605_p9 = pnand %p5604_p8, %p5598_p5 }
  0x51   :  { %5608 = shalt.err (!%p5605_p9)
}
  0x52   :  { %s6090_s7 = smov 64   ;;  %s6091_s10 = smov 4  }
  0x53   :  { %132 = dma.hbm_to_vmem [thread:$0]  %s6151_s29, 128, %s127_s26, [#allocation9], %s6090_s7, %s6090_s7, %s6091_s10  }
  0x54   :  { %s5617_s17 = scalar_lea.vmem %s150_s1, 64  ;;  %p5622_p11 = scmp.lt.s32.totalorder %s150_s1, %s150_s1 }
  0x55   :  { %p5618_p10 = scmp.ne.s32.totalorder %s150_s1, %s5617_s17  ;;  %p5623_p12 = scmp.lt.s32.totalorder %s5617_s17, %s5617_s17 }
  0x57   :  { %p5624_p13 = por %p5623_p12, %p5622_p11 }
  0x59   :  { %p5625_p0 = pnand %p5624_p13, %p5618_p10 }
  0x5b   :  { %5628 = shalt.err (!%p5625_p0)
}
  0x5c   :  { %152 = dma.hbm_to_vmem [thread:$0]  %s6161_s8, 64, %s150_s1, [#allocation12]  }
  0x5d   :  { %s6092_s11 = smov [#allocation14]   ;;  %s6093_s16 = smov [#allocation17]  }
  0x5e   :  { %s171_s15 = sshll.u32 %s6092_s11, 4  ;;  %s193_s18 = sshll.u32 %s6093_s16, 4  ;;  %s172_s15 = int_to_ptr.vmem [resolvable:$true] %s171_s15  ;;  %s194_s18 = int_to_ptr.vmem [resolvable:$true] %s193_s18 }
  0x5f   :  { %s5637_s23 = scalar_lea.vmem %s172_s15, 48  ;;  %s5641_s28 = scalar_lea.vmem %s172_s15, 64 }
  0x60   :  { %p5638_p1 = scmp.ne.s32.totalorder %s172_s15, %s5637_s23  ;;  %p5642_p2 = scmp.lt.s32.totalorder %s172_s15, %s172_s15 }
  0x61   :  { %p5643_p3 = scmp.lt.s32.totalorder %s5641_s28, %s5637_s23 }
  0x63   :  { %p5644_p4 = por %p5643_p3, %p5642_p2 }
  0x65   :  { %p5645_p5 = pnand %p5644_p4, %p5638_p1 }
  0x67   :  { %5648 = shalt.err (!%p5645_p5)
}
  0x68   :  { %174 = dma.hbm_to_vmem [thread:$0]  %s6176_s24, 48, %s172_s15, [#allocation15]  }
  0x69   :  { %s5657_s29 = scalar_lea.vmem %s194_s18, 16  ;;  %s5661_s26 = scalar_lea.vmem %s194_s18, 32 }
  0x6a   :  { %p5658_p6 = scmp.ne.s32.totalorder %s194_s18, %s5657_s29  ;;  %p5662_p7 = scmp.lt.s32.totalorder %s194_s18, %s194_s18 }
  0x6b   :  { %p5663_p8 = scmp.lt.s32.totalorder %s5661_s26, %s5657_s29 }
  0x6d   :  { %p5664_p9 = por %p5663_p8, %p5662_p7 }
  0x6f   :  { %p5665_p10 = pnand %p5664_p9, %p5658_p6 }
  0x71   :  { %5668 = shalt.err (!%p5665_p10)
}
  0x72   :  { %196 = dma.hbm_to_vmem [thread:$0]  %s6186_s6, 16, %s194_s18, [#allocation18]  }
  0x73   :  { %s6094_s8 = smov [#allocation20]   ;;  %s6095_s2 = smov [#allocation23]  }
  0x74   :  { %s213_s1 = sshll.u32 %s6094_s8, 4  ;;  %s235_s17 = sshll.u32 %s6095_s2, 4  ;;  %s214_s1 = int_to_ptr.vmem [resolvable:$true] %s213_s1  ;;  %s236_s17 = int_to_ptr.vmem [resolvable:$true] %s235_s17 }
  0x75   :  { %s5677_s11 = scalar_lea.vmem %s214_s1, 16  ;;  %s5681_s16 = scalar_lea.vmem %s214_s1, 32 }
  0x76   :  { %p5678_p11 = scmp.ne.s32.totalorder %s214_s1, %s5677_s11  ;;  %p5682_p12 = scmp.lt.s32.totalorder %s214_s1, %s214_s1 }
  0x77   :  { %p5683_p13 = scmp.lt.s32.totalorder %s5681_s16, %s5677_s11 }
  0x79   :  { %p5684_p0 = por %p5683_p13, %p5682_p12 }
  0x7b   :  { %p5685_p1 = pnand %p5684_p0, %p5678_p11 }
  0x7d   :  { %5688 = shalt.err (!%p5685_p1)
}
  0x7e   :  { %216 = dma.hbm_to_vmem [thread:$0]  %s6196_s20, 16, %s214_s1, [#allocation21]  }
  0x7f   :  { %s5697_s24 = scalar_lea.vmem %s236_s17, 16  ;;  %s5701_s15 = scalar_lea.vmem %s236_s17, 32 }
  0x80   :  { %p5698_p2 = scmp.ne.s32.totalorder %s236_s17, %s5697_s24  ;;  %p5702_p3 = scmp.lt.s32.totalorder %s236_s17, %s236_s17 }
  0x81   :  { %p5703_p4 = scmp.lt.s32.totalorder %s5701_s15, %s5697_s24 }
  0x83   :  { %p5704_p5 = por %p5703_p4, %p5702_p3 }
  0x85   :  { %p5705_p6 = pnand %p5704_p5, %p5698_p2 }
  0x87   :  { %5708 = shalt.err (!%p5705_p6)
}
  0x88   :  { %238 = dma.hbm_to_vmem [thread:$0]  %s6206_s4, 16, %s236_s17, [#allocation24]  }
  0x89   :  { %s6096_s6 = smov [#allocation26]   ;;  %s6097_s23 = smov [#allocation29]  }
  0x8a   :  { %s257_s18 = sshll.u32 %s6096_s6, 4  ;;  %s279_s28 = sshll.u32 %s6097_s23, 4  ;;  %s258_s18 = int_to_ptr.vmem [resolvable:$true] %s257_s18  ;;  %s280_s28 = int_to_ptr.vmem [resolvable:$true] %s279_s28 }
  0x8b   :  { %s5717_s29 = scalar_lea.vmem %s258_s18, 16  ;;  %s5721_s26 = scalar_lea.vmem %s258_s18, 32 }
  0x8c   :  { %p5718_p7 = scmp.ne.s32.totalorder %s258_s18, %s5717_s29  ;;  %p5722_p8 = scmp.lt.s32.totalorder %s258_s18, %s258_s18 }
  0x8d   :  { %p5723_p9 = scmp.lt.s32.totalorder %s5721_s26, %s5717_s29 }
  0x8f   :  { %p5724_p10 = por %p5723_p9, %p5722_p8 }
  0x91   :  { %p5725_p11 = pnand %p5724_p10, %p5718_p7 }
  0x93   :  { %5728 = shalt.err (!%p5725_p11)
}
  0x94   :  { %260 = dma.hbm_to_vmem [thread:$0]  %s6216_s19, 16, %s258_s18, [#allocation27]  }
  0x95   :  { %s5737_s20 = scalar_lea.vmem %s280_s28, 32  ;;  %p5742_p13 = scmp.lt.s32.totalorder %s280_s28, %s280_s28 }
  0x96   :  { %p5738_p12 = scmp.ne.s32.totalorder %s280_s28, %s5737_s20  ;;  %p5743_p0 = scmp.lt.s32.totalorder %s5737_s20, %s5737_s20 }
  0x98   :  { %p5744_p1 = por %p5743_p0, %p5742_p13 }
  0x9a   :  { %p5745_p2 = pnand %p5744_p1, %p5738_p12 }
  0x9c   :  { %5748 = shalt.err (!%p5745_p2)
}
  0x9d   :  { %282 = dma.hbm_to_vmem [thread:$0]  %s6226_s9, 32, %s280_s28, [#allocation30]  }
  0x9e   :  { %s6098_s4 = smov [#allocation32]   ;;  %s6099_s1 = smov [#allocation2]  }
  0x9f   :  { %s299_s8 = sshll.u32 %s6098_s4, 4  ;;  %s88_s2 = sshll.u32 %s6099_s1, 4  ;;  %s300_s8 = int_to_ptr.vmem [resolvable:$true] %s299_s8  ;;  %s89_s2 = int_to_ptr.vmem [resolvable:$true] %s88_s2 }
  0xa0   :  { %s5757_s17 = scalar_lea.vmem %s300_s8, 16  ;;  %s5761_s11 = scalar_lea.vmem %s300_s8, 32 }
  0xa1   :  { %p5758_p3 = scmp.ne.s32.totalorder %s300_s8, %s5757_s17  ;;  %p5762_p4 = scmp.lt.s32.totalorder %s300_s8, %s300_s8 }
  0xa2   :  { %p5763_p5 = scmp.lt.s32.totalorder %s5761_s11, %s5757_s17 }
  0xa4   :  { %p5764_p6 = por %p5763_p5, %p5762_p4 }
  0xa6   :  { %p5765_p7 = pnand %p5764_p6, %p5758_p3 }
  0xa8   :  { %5768 = shalt.err (!%p5765_p7)
}
  0xa9   :  { %302 = dma.hbm_to_vmem [thread:$0]  %s6236_s27, 16, %s300_s8, [#allocation33]  }
  0xaa   :  { %s5777_s19 = scalar_lea.vmem %s89_s2, 2048  ;;  %p5782_p9 = scmp.lt.s32.totalorder %s89_s2, %s89_s2 }
  0xab   :  { %p5778_p8 = scmp.ne.s32.totalorder %s89_s2, %s5777_s19  ;;  %p5783_p10 = scmp.lt.s32.totalorder %s5777_s19, %s5777_s19 }
  0xad   :  { %p5784_p11 = por %p5783_p10, %p5782_p9 }
  0xaf   :  { %p5785_p12 = pnand %p5784_p11, %p5778_p8 }
  0xb1   :  { %5788 = shalt.err (!%p5785_p12)
}
  0xb2   :  { %94 = dma.hbm_to_vmem [thread:$0]  %s6131_s13, 2048, %s89_s2, [#allocation3], %s6086_s0, %s6086_s0, %s6087_s22  }
  0xb3   :  { %s6100_s9 = smov [#allocation7]   ;;  %s6101_s24 = smov [#allocation10]  }
  0xb4   :  { %s114_s16 = sshll.u32 %s6100_s9, 4  ;;  %s139_s15 = sshll.u32 %s6101_s24, 4  ;;  %s115_s16 = int_to_ptr.vmem [resolvable:$true] %s114_s16  ;;  %s140_s15 = int_to_ptr.vmem [resolvable:$true] %s139_s15 }
  0xb5   :  { %s5797_s6 = scalar_lea.vmem %s115_s16, 1024  ;;  %p5802_p0 = scmp.lt.s32.totalorder %s115_s16, %s115_s16 }
  0xb6   :  { %p5798_p13 = scmp.ne.s32.totalorder %s115_s16, %s5797_s6  ;;  %p5803_p1 = scmp.lt.s32.totalorder %s5797_s6, %s5797_s6 }
  0xb8   :  { %p5804_p2 = por %p5803_p1, %p5802_p0 }
  0xba   :  { %p5805_p3 = pnand %p5804_p2, %p5798_p13 }
  0xbc   :  { %5808 = shalt.err (!%p5805_p3)
}
  0xbd   :  { %120 = dma.hbm_to_vmem [thread:$0]  %s6146_s25, 1024, %s115_s16, [#allocation6], %s6090_s7, %s6090_s7, %s6091_s10  }
  0xbe   :  { %s5817_s27 = scalar_lea.vmem %s140_s15, 16  ;;  %s5821_s13 = scalar_lea.vmem %s140_s15, 32 }
  0xbf   :  { %p5818_p4 = scmp.ne.s32.totalorder %s140_s15, %s5817_s27  ;;  %p5822_p5 = scmp.lt.s32.totalorder %s140_s15, %s140_s15 }
  0xc0   :  { %p5823_p6 = scmp.lt.s32.totalorder %s5821_s13, %s5817_s27 }
  0xc2   :  { %p5824_p7 = por %p5823_p6, %p5822_p5 }
  0xc4   :  { %p5825_p8 = pnand %p5824_p7, %p5818_p4 }
  0xc6   :  { %5828 = shalt.err (!%p5825_p8)
}
  0xc7   :  { %142 = dma.hbm_to_vmem [thread:$0]  %s6156_s3, 16, %s140_s15, [#allocation9]  }
  0xc8   :  { %s6102_s18 = smov [#allocation13]   ;;  %s6103_s28 = smov [#allocation16]  }
  0xc9   :  { %s159_s23 = sshll.u32 %s6102_s18, 4  ;;  %s180_s29 = sshll.u32 %s6103_s28, 4  ;;  %s160_s23 = int_to_ptr.vmem [resolvable:$true] %s159_s23  ;;  %s181_s29 = int_to_ptr.vmem [resolvable:$true] %s180_s29 }
  0xca   :  { %s5837_s26 = scalar_lea.vmem %s160_s23, 16  ;;  %s5841_s20 = scalar_lea.vmem %s160_s23, 32 }
  0xcb   :  { %p5838_p9 = scmp.ne.s32.totalorder %s160_s23, %s5837_s26  ;;  %p5842_p10 = scmp.lt.s32.totalorder %s160_s23, %s160_s23 }
  0xcc   :  { %p5843_p11 = scmp.lt.s32.totalorder %s5841_s20, %s5837_s26 }
  0xce   :  { %p5844_p12 = por %p5843_p11, %p5842_p10 }
  0xd0   :  { %p5845_p13 = pnand %p5844_p12, %p5838_p9 }
  0xd2   :  { %5848 = shalt.err (!%p5845_p13)
}
  0xd3   :  { %162 = dma.hbm_to_vmem [thread:$0]  %s6166_s14, 16, %s160_s23, [#allocation12]  }
  0xd4   :  { %s5857_s25 = scalar_lea.vmem %s181_s29, 1024  ;;  %p5862_p1 = scmp.lt.s32.totalorder %s181_s29, %s181_s29 }
  0xd5   :  { %p5858_p0 = scmp.ne.s32.totalorder %s181_s29, %s5857_s25  ;;  %p5863_p2 = scmp.lt.s32.totalorder %s5857_s25, %s5857_s25 }
  0xd7   :  { %p5864_p3 = por %p5863_p2, %p5862_p1 }
  0xd9   :  { %p5865_p4 = pnand %p5864_p3, %p5858_p0 }
  0xdb   :  { %5868 = shalt.err (!%p5865_p4)
}
  0xdc   :  { %s7914_s3 = sld [smem:[#allocation55_spill]]  ;;  %s6104_s4 = smov [#allocation19]  }
  0xdd   :  { %s203_s8 = sshll.u32 %s6104_s4, 4  ;;  %s6105_s1 = smov [#allocation22]   ;;  %s204_s8 = int_to_ptr.vmem [resolvable:$true] %s203_s8 }
  0xde   :  { %s222_s2 = sshll.u32 %s6105_s1, 4  ;;  %s5877_s17 = scalar_lea.vmem %s204_s8, 16  ;;  %s223_s2 = int_to_ptr.vmem [resolvable:$true] %s222_s2 }
  0xdf   :  { %p5878_p5 = scmp.ne.s32.totalorder %s204_s8, %s5877_s17  ;;  %s5881_s14 = scalar_lea.vmem %s204_s8, 32 }
  0xe0   :  { %p5882_p6 = scmp.lt.s32.totalorder %s204_s8, %s204_s8  ;;  %p5883_p7 = scmp.lt.s32.totalorder %s5881_s14, %s5877_s17 }
  0xe2   :  { %186 = dma.hbm_to_vmem [thread:$0]  %s7914_s3, 1024, %s181_s29, [#allocation15], %s6090_s7, %s6090_s7, %s6091_s10  }
  0xe3   :  { %p5884_p8 = por %p5883_p7, %p5882_p6 }
  0xe5   :  { %p5885_p9 = pnand %p5884_p8, %p5878_p5 }
  0xe7   :  { %5888 = shalt.err (!%p5885_p9)
}
  0xe8   :  { %s7915_s11 = sld [smem:[#allocation56_spill]]  ;;  %s5897_s19 = scalar_lea.vmem %s223_s2, 1024 }
  0xe9   :  { %p5898_p10 = scmp.ne.s32.totalorder %s223_s2, %s5897_s19  ;;  %p5902_p11 = scmp.lt.s32.totalorder %s223_s2, %s223_s2 }
  0xea   :  { %p5903_p12 = scmp.lt.s32.totalorder %s5897_s19, %s5897_s19 }
  0xec   :  { %p5904_p13 = por %p5903_p12, %p5902_p11 }
  0xee   :  { %206 = dma.hbm_to_vmem [thread:$0]  %s7915_s11, 16, %s204_s8, [#allocation18]  }
  0xef   :  { %p5905_p0 = pnand %p5904_p13, %p5898_p10 }
  0xf1   :  { %5908 = shalt.err (!%p5905_p0)
}
  0xf2   :  { %s7916_s9 = sld [smem:[#allocation57_spill]]  ;;  %s6106_s16 = smov [#allocation25]  }
  0xf3   :  { %s244_s24 = sshll.u32 %s6106_s16, 4  ;;  %s6107_s15 = smov [#allocation28]   ;;  %s245_s24 = int_to_ptr.vmem [resolvable:$true] %s244_s24 }
  0xf4   :  { %s266_s6 = sshll.u32 %s6107_s15, 4  ;;  %s5917_s27 = scalar_lea.vmem %s245_s24, 1024  ;;  %s267_s6 = int_to_ptr.vmem [resolvable:$true] %s266_s6 }
  0xf5   :  { %p5918_p1 = scmp.ne.s32.totalorder %s245_s24, %s5917_s27  ;;  %p5922_p2 = scmp.lt.s32.totalorder %s245_s24, %s245_s24 }
  0xf6   :  { %p5923_p3 = scmp.lt.s32.totalorder %s5917_s27, %s5917_s27 }
  0xf8   :  { %228 = dma.hbm_to_vmem [thread:$0]  %s7916_s9, 1024, %s223_s2, [#allocation21], %s6090_s7, %s6090_s7, %s6091_s10  }
  0xf9   :  { %p5924_p4 = por %p5923_p3, %p5922_p2 }
  0xfb   :  { %p5925_p5 = pnand %p5924_p4, %p5918_p1 }
  0xfd   :  { %5928 = shalt.err (!%p5925_p5)
}
  0xfe   :  { %s7917_s13 = sld [smem:[#allocation58_spill]]  ;;  %s5937_s18 = scalar_lea.vmem %s267_s6, 2048 }
  0xff   :  { %p5938_p6 = scmp.ne.s32.totalorder %s267_s6, %s5937_s18  ;;  %p5942_p7 = scmp.lt.s32.totalorder %s267_s6, %s267_s6 }
 0x100   :  { %p5943_p8 = scmp.lt.s32.totalorder %s5937_s18, %s5937_s18 }
 0x102   :  { %p5944_p9 = por %p5943_p8, %p5942_p7 }
 0x104   :  { %250 = dma.hbm_to_vmem [thread:$0]  %s7917_s13, 1024, %s245_s24, [#allocation24], %s6090_s7, %s6090_s7, %s6091_s10  }
 0x105   :  { %p5945_p10 = pnand %p5944_p9, %p5938_p6 }
 0x107   :  { %5948 = shalt.err (!%p5945_p10)
}
 0x108   :  { %s7918_s23 = sld [smem:[#allocation59_spill]]  ;;  %s6108_s28 = smov [#allocation31]  }
 0x109   :  { %s289_s29 = sshll.u32 %s6108_s28, 4  ;;  %s6109_s26 = smov [#allocation34]   ;;  %s290_s29 = int_to_ptr.vmem [resolvable:$true] %s289_s29 }
 0x10a   :  { %s312_s20 = sshll.u32 %s6109_s26, 4  ;;  %s5957_s25 = scalar_lea.vmem %s290_s29, 16  ;;  %s313_s20 = int_to_ptr.vmem [resolvable:$true] %s312_s20 }
 0x10b   :  { %p5958_p11 = scmp.ne.s32.totalorder %s290_s29, %s5957_s25  ;;  %s5961_s3 = scalar_lea.vmem %s290_s29, 32 }
 0x10c   :  { %p5962_p12 = scmp.lt.s32.totalorder %s290_s29, %s290_s29  ;;  %p5963_p13 = scmp.lt.s32.totalorder %s5961_s3, %s5957_s25 }
 0x10e   :  { %272 = dma.hbm_to_vmem [thread:$0]  %s7918_s23, 2048, %s267_s6, [#allocation27], %s6086_s0, %s6086_s0, %s6087_s22  }
 0x10f   :  { %p5964_p0 = por %p5963_p13, %p5962_p12 }
 0x111   :  { %p5965_p1 = pnand %p5964_p0, %p5958_p11 }
 0x113   :  { %5968 = shalt.err (!%p5965_p1)
}
 0x114   :  { %s7919_s4 = sld [smem:[#allocation60_spill]]  ;;  %s5977_s8 = scalar_lea.vmem %s313_s20, 1024 }
 0x115   :  { %p5978_p2 = scmp.ne.s32.totalorder %s313_s20, %s5977_s8  ;;  %p5982_p3 = scmp.lt.s32.totalorder %s313_s20, %s313_s20 }
 0x116   :  { %p5983_p4 = scmp.lt.s32.totalorder %s5977_s8, %s5977_s8 }
 0x118   :  { %p5984_p5 = por %p5983_p4, %p5982_p3 }
 0x11a   :  { %292 = dma.hbm_to_vmem [thread:$0]  %s7919_s4, 16, %s290_s29, [#allocation30]  }
 0x11b   :  { %p5985_p6 = pnand %p5984_p5, %p5978_p2 }
 0x11d   :  { %5988 = shalt.err (!%p5985_p6)
}
 0x11e   :  { %s7920_s1 = sld [smem:[#allocation63_spill]]  ;;  %s6110_s2 = smov [#allocation35]  }
 0x11f   :  { %s326_s17 = sshll.u32 %s6110_s2, 4  ;;  %s327_s17 = int_to_ptr.vmem [resolvable:$true] %s326_s17 }
 0x120   :  { %s5997_s14 = scalar_lea.vmem %s327_s17, 1024  ;;  %p6002_p8 = scmp.lt.s32.totalorder %s327_s17, %s327_s17 }
 0x121   :  { %p5998_p7 = scmp.ne.s32.totalorder %s327_s17, %s5997_s14  ;;  %p6003_p9 = scmp.lt.s32.totalorder %s5997_s14, %s5997_s14 }
 0x123   :  { %p6004_p10 = por %p6003_p9, %p6002_p8 }
 0x124   :  { %318 = dma.hbm_to_vmem [thread:$0]  %s7920_s1, 1024, %s313_s20, [#allocation33], %s6090_s7, %s6090_s7, %s6091_s10  }
 0x125   :  { %p6005_p11 = pnand %p6004_p10, %p5998_p7 }
 0x127   :  { %6008 = shalt.err (!%p6005_p11)
}
 0x128   :  { %332 = dma.hbm_to_vmem [thread:$0]  %s6261_s5, 1024, %s327_s17, [#allocation36], %s6090_s7, %s6090_s7, %s6091_s10  }
 0x129   :  { %6029 = dma.done.wait [#allocation3], 2048  }
 0x12a   :  { %6030 = vsyncadd [#allocation3], 4294965248 }
 0x12b   :  { %6031 = dma.done.wait [#allocation6], 3072  }
 0x12c   :  { %6032 = vsyncadd [#allocation6], 4294964224 }
 0x12d   :  { %6033 = dma.done.wait [#allocation9], 144  }
 0x12e   :  { %6034 = vsyncadd [#allocation9], 4294967152 }
 0x12f   :  { %6035 = dma.done.wait [#allocation12], 80  }
 0x130   :  { %6036 = vsyncadd [#allocation12], 4294967216 }
 0x131   :  { %6037 = dma.done.wait [#allocation15], 1072  }
 0x132   :  { %6038 = vsyncadd [#allocation15], 4294966224 }
 0x133   :  { %6039 = dma.done.wait [#allocation18], 32  }
 0x134   :  { %6040 = vsyncadd [#allocation18], 4294967264 }
 0x135   :  { %6041 = dma.done.wait [#allocation21], 1040  }
 0x136   :  { %6042 = vsyncadd [#allocation21], 4294966256 }
 0x137   :  { %6043 = dma.done.wait [#allocation24], 1040  }
 0x138   :  { %6044 = vsyncadd [#allocation24], 4294966256 }
 0x139   :  { %6045 = dma.done.wait [#allocation27], 2064  }
 0x13a   :  { %6046 = vsyncadd [#allocation27], 4294965232 }
 0x13b   :  { %6047 = dma.done.wait [#allocation30], 48  }
 0x13c   :  { %6048 = vsyncadd [#allocation30], 4294967248 }
 0x13d   :  { %6049 = dma.done.wait [#allocation33], 1040  }
 0x13e   :  { %6050 = vsyncadd [#allocation33], 4294966256 }
 0x13f   :  { %6051 = dma.done.wait [#allocation36], 1024  }
 0x140   :  { %6052 = vsyncadd [#allocation36], 4294966272  ;;  %s7921_s5 = sld [smem:[#allocation52_spill]]  ;;  %vm620_vm0 = vcmask 1043456   ;;  %v587_v0 = vld [vmem:[#allocation11] sm:$0xf] }
 0x141   :  { %s7922_s7 = sld [smem:[#allocation51_spill]]  ;;  %5141 = vmatprep.subr.msk.bf16.mxu1 %vm620_vm0, %v587_v0  ;;  %v622_v1 = vsel %vm620_vm0, %v587_v0, 0  ;;  %v5200_v2 = vld [vmem:[#allocation8] sm:$0xff]   ;;  %vm595_vm1 = vcmask 64512   ;;  %vm441_vm2 = vcmask 130048  }
 0x142   :  { %4772 = vmatpush3.bf16.msra.mxu1 %v622_v1  ;;  %4753 = vmatprep.subr.bf16.mxu0 %v5200_v2  ;;  %s7923_s10 = sld [smem:[#allocation54_spill]] }
 0x143   :  { %4754 = vmatpush3.bf16.msra.mxu0 %v5200_v2  ;;  %s7942_s11 = sld [smem:[#allocation53_spill]] }
 0x144   :  { %s7970_s19 = sld [smem:[#allocation61_spill]] }
 0x145   :  { %s7971_s9 = sld [smem:[#allocation62_spill]] }
 0x146   :  { %v563_v3 = vld [vmem:[%s7921_s5] sm:$0xff]  ;;  %v564_v4 = vld [vmem:[%s7921_s5 + $0x8] sm:$0xff]  ;;  %v565_v6 = vld [vmem:[%s7921_s5 + $0x10] sm:$0xff] }
 0x147   :  { %v579_v5 = vpack.c.bf16 %v564_v4, %v563_v3  ;;  %v566_v7 = vld [vmem:[%s7921_s5 + $0x18] sm:$0xff]  ;;  %v402_v8 = vld [vmem:[%s7922_s7] sm:$0xff]  ;;  %v403_v10 = vld [vmem:[%s7922_s7 + $0x8] sm:$0xff] }
 0x148   :  { %v580_v9 = vpack.c.bf16 %v566_v7, %v565_v6  ;;  %v404_v11 = vld [vmem:[%s7922_s7 + $0x10] sm:$0xff]  ;;  %v405_v12 = vld [vmem:[%s7922_s7 + $0x18] sm:$0xff]  ;;  %v418_v13 = vpack.c.bf16 %v403_v10, %v402_v8  ;;  %v406_v15 = vld [vmem:[%s7922_s7 + $0x20] sm:$0xff] }
 0x149   :  { %4773 = vmatprep.mubr.msk.bf16.mxu1 %vm595_vm1, %v579_v5  ;;  %v419_v14 = vpack.c.bf16 %v405_v12, %v404_v11  ;;  %v407_v16 = vld [vmem:[%s7922_s7 + $0x28] sm:$0xff]  ;;  %v567_v17 = vld [vmem:[%s7921_s5 + $0x20] sm:$0xff]  ;;  %v569_v21 = vld [vmem:[%s7921_s5 + $0x30] sm:$0xff]  ;;  %v7882_v11 = vmov 0  }
 0x14a   :  { %4774 = vmatmul.mubr.msk.bf16.vlgmr.msra.gmra.mxu1 %vm595_vm1, %v580_v9  ;;  %v420_v18 = vpack.c.bf16 %v407_v16, %v406_v15  ;;  %v568_v19 = vld [vmem:[%s7921_s5 + $0x28] sm:$0xff]  ;;  %4755 = vmatprep.mubr.msk.bf16.mxu0 %vm441_vm2, %v418_v13  ;;  %v570_v22 = vld [vmem:[%s7921_s5 + $0x38] sm:$0xff]  ;;  %v571_v23 = vld [vmem:[%s7921_s5 + $0x40] sm:$0xff] }
 0x14b   :  { %v581_v20 = vpack.c.bf16 %v568_v19, %v567_v17  ;;  %4756 = vmatmul.mubr.msk.bf16.vlgmr.msra.gmra.mxu0 %vm441_vm2, %v419_v14  ;;  %v572_v24 = vld [vmem:[%s7921_s5 + $0x48] sm:$0xff]  ;;  %v408_v25 = vld [vmem:[%s7922_s7 + $0x30] sm:$0xff]  ;;  %v409_v26 = vld [vmem:[%s7922_s7 + $0x38] sm:$0xff]  ;;  %v582_v27 = vpack.c.bf16 %v570_v22, %v569_v21 }
 0x14c   :  { %4759 = vmatprep.mubr.msk.bf16.mxu0 %vm441_vm2, %v420_v18  ;;  %v410_v28 = vld [vmem:[%s7922_s7 + $0x40] sm:$0xff]  ;;  %v411_v29 = vld [vmem:[%s7922_s7 + $0x48] sm:$0xff]  ;;  %v583_v30 = vpack.c.bf16 %v572_v24, %v571_v23  ;;  %v421_v31 = vpack.c.bf16 %v409_v26, %v408_v25  ;;  %v573_v33 = vld [vmem:[%s7921_s5 + $0x50] sm:$0xff] }
 0x14d   :  { %4777 = vmatprep.mubr.msk.bf16.mxu1 %vm595_vm1, %v581_v20  ;;  %v422_v32 = vpack.c.bf16 %v411_v29, %v410_v28  ;;  %v574_v34 = vld [vmem:[%s7921_s5 + $0x58] sm:$0xff]  ;;  %v5201_v35 = vld [vmem:[%s7923_s10 + $0xa8] ss:$12 sps:$4 sm:$0xff]   ;;  %v575_v36 = vld [vmem:[%s7921_s5 + $0x60] sm:$0xff] }
 0x14e   :  { %v576_v37 = vld [vmem:[%s7921_s5 + $0x68] sm:$0xff]  ;;  %v412_v39 = vld [vmem:[%s7922_s7 + $0x50] sm:$0xff]  ;;  %v413_v40 = vld [vmem:[%s7922_s7 + $0x58] sm:$0xff]  ;;  %v584_v46 = vpack.c.bf16 %v574_v34, %v573_v33 }
 0x14f   :  { %v5203_v38 = vld [vmem:[%s7923_s10 + $0xac] ss:$12 sps:$4 sm:$0xff]   ;;  %v5204_v41 = vld [vmem:[%s7923_s10 + $0xb0] ss:$12 sps:$4 sm:$0xff]   ;;  %v414_v42 = vld [vmem:[%s7922_s7 + $0x60] sm:$0xff]  ;;  %v585_v49 = vpack.c.bf16 %v576_v37, %v575_v36  ;;  %v423_v51 = vpack.c.bf16 %v413_v40, %v412_v39 }
 0x150   :  { %954 = vmatprep.subr.bf16.mxu0 %v5203_v38  ;;  %v5205_v43 = vld [vmem:[%s7923_s10 + $0x90] ss:$12 sps:$4 sm:$0xff]   ;;  %v5207_v44 = vld [vmem:[%s7923_s10 + $0x94] ss:$12 sps:$4 sm:$0xff]   ;;  %v5208_v45 = vld [vmem:[%s7923_s10 + $0x98] ss:$12 sps:$4 sm:$0xff]   ;;  %4789 = vmatprep.subr.bf16.mxu1 %v5204_v41 }
 0x151   :  { %955 = vmatpush1.bf16.msra.mxu0 %v5201_v35  ;;  %v415_v47 = vld [vmem:[%s7922_s7 + $0x68] sm:$0xff]  ;;  %4790 = vmatpush3.bf16.msra.mxu1 %v5204_v41  ;;  %v5209_v50 = vld [vmem:[%s7923_s10 + $0x78] ss:$12 sps:$4 sm:$0xff]   ;;  %v577_v54 = vld [vmem:[%s7921_s5 + $0x70] sm:$0xff] }
 0x152   :  { %4778 = vmatmul.mubr.msk.bf16.gmra.mxu1 %vm595_vm1, %v582_v27  ;;  %956 = vmatprep.subr.bf16.mxu0 %v5207_v44  ;;  %v5211_v48 = vld [vmem:[%s7923_s10 + $0x7c] ss:$12 sps:$4 sm:$0xff]   ;;  %v5212_v52 = vld [vmem:[%s7923_s10 + $0x80] ss:$12 sps:$4 sm:$0xff]   ;;  %v424_v53 = vpack.c.bf16 %v415_v47, %v414_v42  ;;  %v5215_v56 = vld [vmem:[%s7923_s10 + $0x64] ss:$12 sps:$4 sm:$0xff]  }
 0x153   :  { %4781 = vmatprep.mubr.msk.bf16.mxu1 %vm595_vm1, %v583_v30  ;;  %4760 = vmatmul.mubr.msk.bf16.gmra.mxu0 %vm441_vm2, %v421_v31  ;;  %v578_v55 = vld [vmem:[%s7921_s5 + $0x78] sm:$0xff]  ;;  %v5216_v57 = vld [vmem:[%s7923_s10 + $0x68] ss:$12 sps:$4 sm:$0xff]   ;;  %v5213_v60 = vld [vmem:[%s7923_s10 + $0x60] ss:$12 sps:$4 sm:$0xff]  }
 0x154   :  { %4763 = vmatprep.mubr.msk.bf16.mxu0 %vm441_vm2, %v422_v32  ;;  %4791 = vmatprep.subr.bf16.mxu1 %v5208_v45  ;;  %v416_v58 = vld [vmem:[%s7922_s7 + $0x70] sm:$0xff]  ;;  %v417_v59 = vld [vmem:[%s7922_s7 + $0x78] sm:$0xff]  ;;  %v586_v61 = vpack.c.bf16 %v578_v55, %v577_v54  ;;  %v5228_v7 = vld [vmem:[%s7923_s10 + $0x20] ss:$12 sps:$4 sm:$0xff]  }
 0x155   :  { %957 = vmatpush1.bf16.msra.mxu0 %v5205_v43  ;;  %4792 = vmatpush3.bf16.msra.mxu1 %v5208_v45  ;;  %v425_v62 = vpack.c.bf16 %v417_v59, %v416_v58  ;;  %v5219_v63 = vld [vmem:[%s7923_s10 + $0x4c] ss:$12 sps:$4 sm:$0xff]   ;;  %v5217_v0 = vld [vmem:[%s7923_s10 + $0x48] ss:$12 sps:$4 sm:$0xff]   ;;  %v5220_v1 = vld [vmem:[%s7923_s10 + $0x50] ss:$12 sps:$4 sm:$0xff]  }
 0x156   :  { %958 = vmatprep.subr.bf16.mxu0 %v5211_v48  ;;  %4793 = vmatprep.subr.bf16.mxu1 %v5212_v52  ;;  %v5223_v2 = vld [vmem:[%s7923_s10 + $0x34] ss:$12 sps:$4 sm:$0xff]   ;;  %v5221_v3 = vld [vmem:[%s7923_s10 + $0x30] ss:$12 sps:$4 sm:$0xff]   ;;  %v5224_v4 = vld [vmem:[%s7923_s10 + $0x38] ss:$12 sps:$4 sm:$0xff]  }
 0x157   :  { %v5227_v5 = vld [vmem:[%s7923_s10 + $0x1c] ss:$12 sps:$4 sm:$0xff]   ;;  %v5225_v6 = vld [vmem:[%s7923_s10 + $0x18] ss:$12 sps:$4 sm:$0xff]   ;;  %v5229_v9 = vld [vmem:[%s7923_s10] ss:$12 sps:$4 sm:$0xff]  }
 0x158   :  { %v5231_v8 = vld [vmem:[%s7923_s10 + $0x4] ss:$12 sps:$4 sm:$0xff]   ;;  %v5232_v10 = vld [vmem:[%s7923_s10 + $0x8] ss:$12 sps:$4 sm:$0xff]   ;;  %v6401_v14 = vld [vmem:[#allocation13] ss:$0 sm:$0xff] }
 0x159   :  { %959 = vmatpush1.bf16.msra.mxu0 %v5209_v50  ;;  %4794 = vmatpush3.bf16.msra.mxu1 %v5212_v52  ;;  %v6398_v12 = vld [vmem:[#allocation16 + $0x38] sm:$0xff]   ;;  %v6403_v17 = vld [vmem:[#allocation10] ss:$0 sm:$0xff]  ;;  %v740_v33 = vld [vmem:[#allocation2 + $0x18] sm:$0xff] }
 0x15a   :  { %4782 = vmatmul.mubr.msk.bf16.gmra.mxu1 %vm595_vm1, %v584_v46  ;;  %960 = vmatprep.subr.bf16.mxu0 %v5215_v56  ;;  %v737_v36 = vld [vmem:[#allocation2] sm:$0xff]  ;;  %v738_v37 = vld [vmem:[#allocation2 + $0x8] sm:$0xff]  ;;  %v739_v41 = vld [vmem:[#allocation2 + $0x10] sm:$0xff] }
 0x15b   :  { %4785 = vmatprep.mubr.msk.bf16.mxu1 %vm595_vm1, %v585_v49  ;;  %4764 = vmatmul.mubr.msk.bf16.gmra.mxu0 %vm441_vm2, %v423_v51  ;;  %v741_v59 = vld [vmem:[#allocation2 + $0x20] sm:$0xff] }
 0x15c   :  { %4767 = vmatprep.mubr.msk.bf16.mxu0 %vm441_vm2, %v424_v53  ;;  %4795 = vmatprep.subr.bf16.mxu1 %v5216_v57 }
 0x15d   :  { %961 = vmatpush1.bf16.msra.mxu0 %v5213_v60  ;;  %4796 = vmatpush3.bf16.msra.mxu1 %v5216_v57  ;;  %v743_v57 = vld [vmem:[#allocation2 + $0x30] sm:$0xff] }
 0x15e   :  { %962 = vmatprep.subr.bf16.mxu0 %v5219_v63  ;;  %4797 = vmatprep.subr.bf16.mxu1 %v5220_v1 }
 0x161   :  { %963 = vmatpush1.bf16.msra.mxu0 %v5217_v0  ;;  %4798 = vmatpush3.bf16.msra.mxu1 %v5220_v1 }
 0x162   :  { %4786 = vmatmul.mubr.msk.bf16.gmra.mxu1 %vm595_vm1, %v586_v61  ;;  %964 = vmatprep.subr.bf16.mxu0 %v5223_v2  ;;  %v5234_v2 = vld [vmem:[#allocation16 + $0x30] sm:$0xff]  }
 0x163   :  { %4768 = vmatmul.mubr.msk.bf16.gmra.mxu0 %vm441_vm2, %v425_v62  ;;  %4799 = vmatprep.subr.bf16.mxu1 %v5224_v4  ;;  %v744_v62 = vld [vmem:[#allocation2 + $0x38] sm:$0xff] }
 0x164   :  { %986 = vmatprep.mubr.bf16.mxu0 %v7882_v11 }
 0x165   :  { %965 = vmatpush1.bf16.msra.mxu0 %v5221_v3  ;;  %4800 = vmatpush3.bf16.msra.mxu1 %v5224_v4 }
 0x166   :  { %966 = vmatprep.subr.bf16.mxu0 %v5227_v5  ;;  %4801 = vmatprep.subr.bf16.mxu1 %v5228_v7 }
 0x169   :  { %967 = vmatpush1.bf16.msra.mxu0 %v5225_v6  ;;  %4802 = vmatpush3.bf16.msra.mxu1 %v5228_v7  ;;  %v742_v7 = vld [vmem:[#allocation2 + $0x28] sm:$0xff] }
 0x16a   :  { %968 = vmatprep.subr.bf16.mxu0 %v5231_v8  ;;  %4803 = vmatprep.subr.bf16.mxu1 %v5232_v10 }
 0x16d   :  { %969 = vmatpush1.bf16.msra.mxu0 %v5229_v9  ;;  %4804 = vmatpush3.bf16.msra.mxu1 %v5232_v10 }
 0x16e   :  { %4821 = vmatprep.subr.bf16.mxu1 %v6398_v12 }
 0x20a   :  { %v4775_v13 = vpop.f32.mrf.mxu1 }
 0x20b   :  { %v4757_v15 = vpop.f32.mrf.mxu0  ;;  %v667_v23 = vadd.f32 %v4775_v13, %v6401_v14 }
 0x20c   :  { %v658_v16 = vpop.f32.mrf.mxu1  ;;  %v509_v24 = vadd.f32 %v4757_v15, %v6403_v17 }
 0x20d   :  { %v500_v18 = vpop.f32.mrf.mxu0  ;;  %v659_v20 = vadd.f32 %v6401_v14, %v658_v16 }
 0x20e   :  { %v4776_v19 = vpop.f32.mrf.mxu1  ;;  %v501_v21 = vadd.f32 %v6403_v17, %v500_v18  ;;  %v723_v35 = vadd.f32 %v667_v23, %v509_v24 }
 0x20f   :  { %v670_v22 = vadd.f32 %v4776_v19, %v6401_v14  ;;  %v4758_v25 = vpop.f32.mrf.mxu0 }
 0x210   :  { %v661_v26 = vpop.f32.mrf.mxu1  ;;  %v512_v27 = vadd.f32 %v4758_v25, %v6403_v17  ;;  %v721_v31 = vadd.f32 %v659_v20, %v501_v21  ;;  %v6423_v51 = vadd.f32 %v739_v41, %v723_v35  ;;  %v5235_v21 = vld [vmem:[#allocation16 + $0x28] sm:$0xff]  }
 0x211   :  { %v662_v28 = vadd.f32 %v6401_v14, %v661_v26  ;;  %v503_v29 = vpop.f32.mrf.mxu0 }
 0x212   :  { %v4779_v30 = vpop.f32.mrf.mxu1  ;;  %v724_v32 = vadd.f32 %v670_v22, %v512_v27  ;;  %v504_v34 = vadd.f32 %v6403_v17, %v503_v29  ;;  %v6418_v48 = vadd.f32 %v737_v36, %v721_v31  ;;  %7927 = vst [vmem:[#allocation67_spill] sm:$0xff] %v6423_v51  ;;  %v747_v29 = vld [vmem:[#allocation2 + $0x50] sm:$0xff] }
 0x213   :  { %v4761_v38 = vpop.f32.mrf.mxu0  ;;  %v683_v39 = vadd.f32 %v4779_v30, %v6401_v14 }
 0x214   :  { %v674_v40 = vpop.f32.mrf.mxu1  ;;  %v722_v42 = vadd.f32 %v662_v28, %v504_v34  ;;  %v525_v43 = vadd.f32 %v4761_v38, %v6403_v17  ;;  %v6416_v45 = vadd.f32 %v740_v33, %v724_v32  ;;  %7925 = vst [vmem:[#allocation65_spill] sm:$0xff] %v6418_v48  ;;  %v748_v33 = vld [vmem:[#allocation2 + $0x58] sm:$0xff] }
 0x215   :  { %v675_v44 = vadd.f32 %v6401_v14, %v674_v40  ;;  %v516_v46 = vpop.f32.mrf.mxu0 }
 0x216   :  { %7924 = vst [vmem:[#allocation64_spill] sm:$0xff] %v6416_v45  ;;  %v4780_v47 = vpop.f32.mrf.mxu1  ;;  %v6420_v49 = vadd.f32 %v738_v37, %v722_v42  ;;  %v517_v50 = vadd.f32 %v6403_v17, %v516_v46  ;;  %v727_v52 = vadd.f32 %v683_v39, %v525_v43  ;;  %v770_v61 = vpack.c.bf16 %v6416_v45, %v6423_v51  ;;  %v5236_v37 = vld [vmem:[#allocation16 + $0x20] sm:$0xff]   ;;  %v746_v42 = vld [vmem:[#allocation2 + $0x48] sm:$0xff] }
 0x217   :  { %v4762_v53 = vpop.f32.mrf.mxu0  ;;  %v686_v54 = vadd.f32 %v4780_v47, %v6401_v14 }
 0x218   :  { %7926 = vst [vmem:[#allocation66_spill] sm:$0xff] %v6420_v49  ;;  %v677_v55 = vpop.f32.mrf.mxu1  ;;  %v769_v56 = vpack.c.bf16 %v6420_v49, %v6418_v48  ;;  %v725_v58 = vadd.f32 %v675_v44, %v517_v50  ;;  %v528_v60 = vadd.f32 %v4762_v53, %v6403_v17  ;;  %v6433_v5 = vadd.f32 %v743_v57, %v727_v52 }
 0x219   :  { %v519_v63 = vpop.f32.mrf.mxu0  ;;  %v678_v0 = vadd.f32 %v6401_v14, %v677_v55 }
 0x21a   :  { %v4783_v1 = vpop.f32.mrf.mxu1  ;;  %v728_v3 = vadd.f32 %v686_v54, %v528_v60  ;;  %v520_v4 = vadd.f32 %v6403_v17, %v519_v63  ;;  %987 = vmatmul.mubr.bf16.vlgmr.msra.gmra.mxu0 %v769_v56  ;;  %4805 = vmatprep.mubr.bf16.mxu1 %v769_v56  ;;  %7928 = vst [vmem:[#allocation68_spill] sm:$0xff] %v6433_v5  ;;  %v5237_v56 = vld [vmem:[#allocation16 + $0x18] sm:$0xff]  }
 0x21b   :  { %v6435_v6 = vadd.f32 %v741_v59, %v725_v58  ;;  %4806 = vmatmul.mubr.bf16.vlgmr.msra.gmra.mxu1 %v770_v61  ;;  %v4765_v8 = vpop.f32.mrf.mxu0  ;;  %v699_v9 = vadd.f32 %v4783_v1, %v6401_v14  ;;  %996 = vmatprep.mubr.bf16.mxu0 %v7882_v11  ;;  %v751_v1 = vld [vmem:[#allocation2 + $0x70] sm:$0xff] }
 0x21c   :  { %v690_v10 = vpop.f32.mrf.mxu1  ;;  %v6439_v13 = vadd.f32 %v744_v62, %v728_v3  ;;  %v726_v15 = vadd.f32 %v678_v0, %v520_v4  ;;  %v541_v16 = vadd.f32 %v4765_v8, %v6403_v17  ;;  %4822 = vmatpush3.bf16.msra.mxu1 %v6398_v12  ;;  %v745_v12 = vld [vmem:[#allocation2 + $0x40] sm:$0xff] }
 0x21d   :  { %7929 = vst [vmem:[#allocation69_spill] sm:$0xff] %v6435_v6  ;;  %v691_v18 = vadd.f32 %v6401_v14, %v690_v10  ;;  %v532_v19 = vpop.f32.mrf.mxu0  ;;  %4823 = vmatprep.subr.bf16.mxu1 %v5234_v2  ;;  %v749_v4 = vld [vmem:[#allocation2 + $0x60] sm:$0xff] }
 0x21e   :  { %7930 = vst [vmem:[#allocation70_spill] sm:$0xff] %v6439_v13  ;;  %v4784_v20 = vpop.f32.mrf.mxu1  ;;  %v6444_v22 = vadd.f32 %v742_v7, %v726_v15  ;;  %v533_v23 = vadd.f32 %v6403_v17, %v532_v19  ;;  %v731_v25 = vadd.f32 %v699_v9, %v541_v16  ;;  %v6450_v27 = vpack.c.bf16 %v6439_v13, %v6433_v5  ;;  %v752_v7 = vld [vmem:[#allocation2 + $0x78] sm:$0xff]  ;;  %v5238_v10 = vld [vmem:[#allocation16 + $0x10] sm:$0xff]  }
 0x21f   :  { %v702_v24 = vadd.f32 %v4784_v20, %v6401_v14  ;;  %v4766_v26 = vpop.f32.mrf.mxu0  ;;  %v750_v19 = vld [vmem:[#allocation2 + $0x68] sm:$0xff] }
 0x220   :  { %7931 = vst [vmem:[#allocation71_spill] sm:$0xff] %v6444_v22  ;;  %v693_v28 = vpop.f32.mrf.mxu1  ;;  %v729_v30 = vadd.f32 %v691_v18, %v533_v23  ;;  %v544_v31 = vadd.f32 %v4766_v26, %v6403_v17  ;;  %v771_v32 = vpack.c.bf16 %v6444_v22, %v6435_v6  ;;  %4824 = vmatpush3.bf16.msra.mxu1 %v5234_v2  ;;  %v5240_v26 = vld [vmem:[#allocation16] sm:$0xff]  }
 0x221   :  { %v535_v34 = vpop.f32.mrf.mxu0  ;;  %v694_v35 = vadd.f32 %v6401_v14, %v693_v28  ;;  %4825 = vmatprep.subr.bf16.mxu1 %v5235_v21  ;;  %v6457_v40 = vadd.f32 %v747_v29, %v731_v25  ;;  %v1190_v28 = vld [vmem:[#allocation5 + $0x10] sm:$0xff]  ;;  %v1191_v29 = vld [vmem:[#allocation5 + $0x18] sm:$0xff] }
 0x222   :  { %v4787_v36 = vpop.f32.mrf.mxu1  ;;  %v732_v38 = vadd.f32 %v702_v24, %v544_v31  ;;  %997 = vmatmul.mubr.bf16.gmra.mxu0 %v770_v61  ;;  %4809 = vmatprep.mubr.bf16.mxu1 %v771_v32  ;;  %v536_v39 = vadd.f32 %v6403_v17, %v535_v34  ;;  %v6459_v41 = vadd.f32 %v745_v12, %v729_v30  ;;  %v1194_v12 = vld [vmem:[#allocation5 + $0x30] sm:$0xff]  ;;  %v1195_v31 = vld [vmem:[#allocation5 + $0x38] sm:$0xff] }
 0x223   :  { %7932 = vst [vmem:[#allocation72_spill] sm:$0xff] %v6457_v40  ;;  %4810 = vmatmul.mubr.bf16.gmra.mxu1 %v6450_v27  ;;  %1006 = vmatprep.mubr.bf16.mxu0 %v7882_v11  ;;  %v4769_v43 = vpop.f32.mrf.mxu0  ;;  %v715_v44 = vadd.f32 %v4787_v36, %v6401_v14  ;;  %v1205_v30 = vpack.c.bf16 %v1191_v29, %v1190_v28  ;;  %v1203_v36 = vld [vmem:[#allocation5 + $0x78] sm:$0xff] }
 0x224   :  { %7933 = vst [vmem:[#allocation73_spill] sm:$0xff] %v6459_v41  ;;  %v706_v46 = vpop.f32.mrf.mxu1  ;;  %v6464_v47 = vadd.f32 %v748_v33, %v732_v38  ;;  %v730_v50 = vadd.f32 %v694_v35, %v536_v39  ;;  %v557_v52 = vadd.f32 %v4769_v43, %v6403_v17  ;;  %4826 = vmatpush3.bf16.msra.mxu1 %v5235_v21  ;;  %v1199_v33 = vld [vmem:[#allocation5 + $0x58] sm:$0xff]  ;;  %v1202_v35 = vld [vmem:[#allocation5 + $0x70] sm:$0xff]  ;;  %v811_v38 = vlaneseq }
 0x225   :  { %v707_v53 = vadd.f32 %v6401_v14, %v706_v46  ;;  %v548_v54 = vpop.f32.mrf.mxu0  ;;  %4827 = vmatprep.subr.bf16.mxu1 %v5236_v37  ;;  %v6500_v43 = vld [vmem:[#allocation14] sm:$0x7] }
 0x226   :  { %7934 = vst [vmem:[#allocation74_spill] sm:$0xff] %v6464_v47  ;;  %v4788_v55 = vpop.f32.mrf.mxu1  ;;  %v6468_v57 = vadd.f32 %v746_v42, %v730_v50  ;;  %v549_v58 = vadd.f32 %v6403_v17, %v548_v54  ;;  %v735_v59 = vadd.f32 %v715_v44, %v557_v52  ;;  %v774_v60 = vpack.c.bf16 %v6464_v47, %v6457_v40 }
 0x227   :  { %v4770_v61 = vpop.f32.mrf.mxu0  ;;  %v718_v62 = vadd.f32 %v4788_v55, %v6401_v14  ;;  %v6497_v39 = vshrl.u32 %v811_v38, 7 }
 0x228   :  { %7935 = vst [vmem:[#allocation75_spill] sm:$0xff] %v6468_v57  ;;  %v709_v63 = vpop.f32.mrf.mxu1  ;;  %v773_v0 = vpack.c.bf16 %v6468_v57, %v6459_v41  ;;  %v733_v2 = vadd.f32 %v707_v53, %v549_v58  ;;  %v560_v3 = vadd.f32 %v4770_v61, %v6403_v17  ;;  %4828 = vmatpush3.bf16.msra.mxu1 %v5236_v37 }
 0x229   :  { %v551_v8 = vpop.f32.mrf.mxu0  ;;  %v710_v9 = vadd.f32 %v6401_v14, %v709_v63  ;;  %4829 = vmatprep.subr.bf16.mxu1 %v5237_v56  ;;  %v6479_v18 = vadd.f32 %v751_v1, %v735_v59  ;;  %v5239_v14 = vld [vmem:[#allocation16 + $0x8] sm:$0xff]   ;;  %v1211_v37 = vpack.c.bf16 %v1203_v36, %v1202_v35  ;;  %v821_v42 = vsub.s32 2, %v6497_v39 }
 0x22a   :  { %1007 = vmatmul.mubr.bf16.gmra.mxu0 %v771_v32  ;;  %4813 = vmatprep.mubr.bf16.mxu1 %v773_v0  ;;  %v736_v15 = vadd.f32 %v718_v62, %v560_v3  ;;  %v552_v16 = vadd.f32 %v6403_v17, %v551_v8  ;;  %v6482_v20 = vadd.f32 %v749_v4, %v733_v2  ;;  %v7881_v44 = vsub.s32 0, %v6497_v39 }
 0x22b   :  { %7936 = vst [vmem:[#allocation76_spill] sm:$0xff] %v6479_v18  ;;  %4814 = vmatmul.mubr.bf16.gmra.mxu1 %v774_v60  ;;  %1016 = vmatprep.mubr.bf16.mxu0 %v7882_v11  ;;  %v1207_v32 = vpack.c.bf16 %v1195_v31, %v1194_v12  ;;  %v6504_v46 = vrot.slane %v6500_v43, %v821_v42 }
 0x22c   :  { %7937 = vst [vmem:[#allocation77_spill] sm:$0xff] %v6482_v20  ;;  %v6484_v21 = vadd.f32 %v752_v7, %v736_v15  ;;  %v734_v23 = vadd.f32 %v710_v9, %v552_v16  ;;  %4830 = vmatpush3.bf16.msra.mxu1 %v5237_v56  ;;  %v6509_v52 = vrot.slane %v6500_v43, %v7881_v44 }
 0x22d   :  { %4831 = vmatprep.subr.bf16.mxu1 %v5238_v10 }
 0x22e   :  { %7938 = vst [vmem:[#allocation78_spill] sm:$0xff] %v6484_v21  ;;  %v6486_v24 = vadd.f32 %v750_v19, %v734_v23  ;;  %v776_v25 = vpack.c.bf16 %v6484_v21, %v6479_v18 }
 0x230   :  { %7939 = vst [vmem:[#allocation79_spill] sm:$0xff] %v6486_v24  ;;  %v775_v17 = vpack.c.bf16 %v6486_v24, %v6482_v20  ;;  %4832 = vmatpush3.bf16.msra.mxu1 %v5238_v10 }
 0x231   :  { %4833 = vmatprep.subr.bf16.mxu1 %v5239_v14 }
 0x232   :  { %1017 = vmatmul.mubr.bf16.gmra.mxu0 %v6450_v27  ;;  %4817 = vmatprep.mubr.bf16.mxu1 %v775_v17  ;;  %v1198_v27 = vld [vmem:[#allocation5 + $0x50] sm:$0xff] }
 0x233   :  { %1026 = vmatprep.mubr.bf16.mxu0 %v7882_v11  ;;  %4818 = vmatmul.mubr.bf16.gmra.mxu1 %v776_v25  ;;  %v1209_v34 = vpack.c.bf16 %v1199_v33, %v1198_v27 }
 0x234   :  { %4834 = vmatpush3.bf16.msra.mxu1 %v5239_v14 }
 0x235   :  { %4835 = vmatprep.subr.bf16.mxu1 %v5240_v26 }
 0x238   :  { %4836 = vmatpush3.bf16.msra.mxu1 %v5240_v26 }
 0x23a   :  { %1027 = vmatmul.mubr.bf16.gmra.mxu0 %v773_v0 }
 0x23b   :  { %1036 = vmatprep.mubr.bf16.mxu0 %v7882_v11  ;;  %4838 = vmatmul.mubr.bf16.vlgmr.msra.gmra.mxu1 %v1205_v30 }
 0x242   :  { %1037 = vmatmul.mubr.bf16.gmra.mxu0 %v774_v60 }
 0x243   :  { %1046 = vmatprep.mubr.bf16.mxu0 %v7882_v11  ;;  %4842 = vmatmul.mubr.bf16.gmra.mxu1 %v1207_v32 }
 0x24a   :  { %1047 = vmatmul.mubr.bf16.gmra.mxu0 %v775_v17 }
 0x24b   :  { %1056 = vmatprep.mubr.bf16.mxu0 %v7882_v11  ;;  %4846 = vmatmul.mubr.bf16.gmra.mxu1 %v1209_v34 }
 0x252   :  { %1057 = vmatmul.mubr.bf16.gmra.mxu0 %v776_v25 }
 0x253   :  { %4850 = vmatmul.mubr.bf16.gmra.mxu1 %v1211_v37 }
 0x2da   :  { %v988_v50 = vpop.f32.mrf.mxu0 }
 0x2db   :  { %v4807_v53 = vpop.f32.mrf.mxu1  ;;  %v989_v59 = vadd.f32 %v988_v50, %v6509_v52 }
 0x2dc   :  { %v6512_v54 = vadd.f32 %v4807_v53, %v6504_v46  ;;  %v6514_v55 = vpop.f32.mrf.mxu0 }
 0x2dd   :  { %v1101_v56 = vpop.f32.mrf.mxu1 }
 0x2de   :  { %v992_v58 = vpop.f32.mrf.mxu0  ;;  %v6526_v2 = vadd.f32 %v1101_v56, %v6504_v46 }
 0x2df   :  { %v993_v60 = vadd.f32 %v992_v58, %v6509_v52  ;;  %v4808_v61 = vpop.f32.mrf.mxu1 }
 0x2e0   :  { %v6519_v62 = vadd.f32 %v4808_v61, %v6504_v46  ;;  %v6521_v63 = vpop.f32.mrf.mxu0 }
 0x2e1   :  { %v6523_v0 = vpack.c.bf16 %v993_v60, %v989_v59  ;;  %v1104_v1 = vpop.f32.mrf.mxu1 }
 0x2e2   :  { %v6531_v4 = vadd.f32 %v1104_v1, %v6504_v46  ;;  %v998_v7 = vpop.f32.mrf.mxu0 }
 0x2e3   :  { %v4811_v8 = vpop.f32.mrf.mxu1  ;;  %v999_v14 = vadd.f32 %v998_v7, %v6509_v52 }
 0x2e4   :  { %v6536_v10 = vadd.f32 %v4811_v8, %v6504_v46  ;;  %v6538_v15 = vpop.f32.mrf.mxu0 }
 0x2e5   :  { %v1117_v16 = vpop.f32.mrf.mxu1 }
 0x2e6   :  { %v6541_v19 = vadd.f32 %v1117_v16, %v6504_v46  ;;  %v1002_v23 = vpop.f32.mrf.mxu0 }
 0x2e7   :  { %v1003_v25 = vadd.f32 %v1002_v23, %v6509_v52  ;;  %v4812_v17 = vpop.f32.mrf.mxu1 }
 0x2e8   :  { %v6546_v26 = vadd.f32 %v4812_v17, %v6504_v46  ;;  %v6548_v28 = vpop.f32.mrf.mxu0 }
 0x2e9   :  { %v6550_v29 = vpack.c.bf16 %v1003_v25, %v999_v14  ;;  %v1120_v30 = vpop.f32.mrf.mxu1 }
 0x2ea   :  { %v6555_v31 = vadd.f32 %v1120_v30, %v6504_v46  ;;  %v1008_v32 = vpop.f32.mrf.mxu0 }
 0x2eb   :  { %v4815_v27 = vpop.f32.mrf.mxu1  ;;  %v1009_v42 = vadd.f32 %v1008_v32, %v6509_v52 }
 0x2ec   :  { %v6559_v34 = vpop.f32.mrf.mxu0  ;;  %v6562_v35 = vadd.f32 %v4815_v27, %v6504_v46 }
 0x2ed   :  { %v1133_v36 = vpop.f32.mrf.mxu1 }
 0x2ee   :  { %v1012_v37 = vpop.f32.mrf.mxu0  ;;  %v6565_v38 = vadd.f32 %v1133_v36, %v6504_v46 }
 0x2ef   :  { %v1013_v50 = vadd.f32 %v1012_v37, %v6509_v52  ;;  %v4816_v53 = vpop.f32.mrf.mxu1 }
 0x2f0   :  { %v6569_v56 = vpop.f32.mrf.mxu0  ;;  %v6572_v58 = vadd.f32 %v4816_v53, %v6504_v46 }
 0x2f1   :  { %v6574_v59 = vpack.c.bf16 %v1013_v50, %v1009_v42  ;;  %v1136_v60 = vpop.f32.mrf.mxu1  ;;  %v6600_v42 = vld [vmem:[#allocation17] ss:$0 sm:$0xff] }
 0x2f2   :  { %v6576_v61 = vpop.f32.mrf.mxu0  ;;  %v6581_v7 = vadd.f32 %v1136_v60, %v6504_v46 }
 0x2f3   :  { %v4819_v8 = vpop.f32.mrf.mxu1 }
 0x2f4   :  { %v6583_v16 = vpop.f32.mrf.mxu0  ;;  %v6588_v14 = vadd.f32 %v4819_v8, %v6504_v46 }
 0x2f5   :  { %v1149_v25 = vpop.f32.mrf.mxu1 }
 0x2f6   :  { %7940 = vst [vmem:[#allocation80_spill] sm:$0xff] %v6588_v14  ;;  %v6590_v17 = vpop.f32.mrf.mxu0  ;;  %v6593_v30 = vadd.f32 %v1149_v25, %v6504_v46 }
 0x2f7   :  { %v4820_v32 = vpop.f32.mrf.mxu1 }
 0x2f8   :  { %v6595_v27 = vpop.f32.mrf.mxu0  ;;  %v6598_v36 = vadd.f32 %v4820_v32, %v6504_v46 }
 0x2f9   :  { %v1152_v37 = vpop.f32.mrf.mxu1 }
 0x2fa   :  { %v6602_v50 = vpop.f32.mrf.mxu0  ;;  %v6607_v60 = vadd.f32 %v1152_v37, %v6504_v46 }
 0x2fb   :  { %v4839_v8 = vpop.f32.mrf.mxu1 }
 0x2fc   :  { %v1030_v25 = vpop.f32.mrf.mxu0  ;;  %v6612_v23 = vadd.f32 %v4839_v8, %v6600_v42 }
 0x2fd   :  { %v1317_v32 = vpop.f32.mrf.mxu1 }
 0x2fe   :  { %v1032_v12 = vpop.f32.mrf.mxu0  ;;  %v1318_v44 = vadd.f32 %v6600_v42, %v1317_v32 }
 0x2ff   :  { %v4840_v33 = vpop.f32.mrf.mxu1 }
 0x300   :  { %v1034_v3 = vpop.f32.mrf.mxu0  ;;  %v6616_v9 = vadd.f32 %v4840_v33, %v6600_v42  ;;  %v817_v33 = vsub.s32 1, %v6497_v39 }
 0x301   :  { %v1320_v53 = vpop.f32.mrf.mxu1 }
 0x302   :  { %v1038_v46 = vpop.f32.mrf.mxu0  ;;  %v1321_v11 = vadd.f32 %v6600_v42, %v1320_v53  ;;  %v818_v37 = vrot.slane %v6500_v43, %v817_v33 }
 0x304   :  { %v1040_v1 = vpop.f32.mrf.mxu0  ;;  %v1380_v21 = vpack.c.bf16 %v1321_v11, %v1318_v44 }
 0x306   :  { %v1042_v8 = vpop.f32.mrf.mxu0  ;;  %4869 = vmatprep.mubr.bf16.mxu0 %v1380_v21 }
 0x308   :  { %v1044_v24 = vpop.f32.mrf.mxu0 }
 0x309   :  { %v1045_v14 = vadd.f32 %v1044_v24, %v818_v37  ;;  %v1029_v24 = vadd.f32 %v6602_v50, %v6509_v52  ;;  %v991_v50 = vadd.f32 %v6514_v55, %v818_v37 }
 0x30a   :  { %v1048_v18 = vpop.f32.mrf.mxu0 }
 0x30b   :  { %v1049_v44 = vadd.f32 %v1048_v18, %v6509_v52  ;;  %v1035_v18 = vadd.f32 %v1034_v3, %v818_v37  ;;  %v1011_v3 = vadd.f32 %v6559_v34, %v818_v37  ;;  %v1019_v34 = vadd.f32 %v6576_v61, %v6509_v52 }
 0x30c   :  { %v1050_v20 = vpop.f32.mrf.mxu0 }
 0x30d   :  { %v1051_v49 = vadd.f32 %v1050_v20, %v818_v37 }
 0x30e   :  { %v1052_v47 = vpop.f32.mrf.mxu0 }
 0x30f   :  { %v1053_v53 = vadd.f32 %v1052_v47, %v6509_v52  ;;  %v1041_v47 = vadd.f32 %v1040_v1, %v818_v37  ;;  %v1005_v1 = vadd.f32 %v6548_v28, %v818_v37 }
 0x310   :  { %v1054_v57 = vpop.f32.mrf.mxu0 }
 0x311   :  { %v1055_v22 = vadd.f32 %v1054_v57, %v818_v37  ;;  %v1182_v51 = vpack.c.bf16 %v1053_v53, %v1049_v44  ;;  %v1039_v57 = vadd.f32 %v1038_v46, %v6509_v52  ;;  %v4843_v46 = vpop.f32.mrf.mxu1 }
 0x312   :  { %v1058_v32 = vpop.f32.mrf.mxu0 }
 0x313   :  { %v1059_v11 = vadd.f32 %v1058_v32, %v6509_v52  ;;  %v1183_v43 = vpack.c.bf16 %v1055_v22, %v1051_v49  ;;  %v1033_v49 = vadd.f32 %v1032_v12, %v6509_v52  ;;  %v1001_v12 = vadd.f32 %v6538_v15, %v818_v37  ;;  %v1333_v15 = vpop.f32.mrf.mxu1 }
 0x314   :  { %v1060_v40 = vpop.f32.mrf.mxu0 }
 0x315   :  { %v1061_v5 = vadd.f32 %v1060_v40, %v818_v37  ;;  %v1180_v40 = vpack.c.bf16 %v1045_v14, %v1041_v47 }
 0x316   :  { %v1062_v41 = vpop.f32.mrf.mxu0 }
 0x317   :  { %v1063_v21 = vadd.f32 %v1062_v41, %v6509_v52  ;;  %v1043_v41 = vadd.f32 %v1042_v8, %v6509_v52  ;;  %v1334_v8 = vadd.f32 %v6600_v42, %v1333_v15 }
 0x318   :  { %v1064_v13 = vpop.f32.mrf.mxu0 }
 0x319   :  { %v1185_v6 = vpack.c.bf16 %v1063_v21, %v1059_v11  ;;  %v1065_v45 = vadd.f32 %v1064_v13, %v818_v37  ;;  %v1031_v13 = vadd.f32 %v1030_v25, %v818_v37  ;;  %v1179_v20 = vpack.c.bf16 %v1043_v41, %v1039_v57 }
 0x31b   :  { %v1186_v48 = vpack.c.bf16 %v1065_v45, %v1061_v5  ;;  %4853 = vmatprep.subr.bf16.mxu0 %v1185_v6  ;;  %v1025_v45 = vadd.f32 %v6595_v27, %v818_v37  ;;  %v1177_v5 = vpack.c.bf16 %v1035_v18, %v1031_v13  ;;  %v1168_v27 = vpack.c.bf16 %v1005_v1, %v1001_v12 }
 0x31c   :  { %4854 = vmatpush3.bf16.xpose.msra.mxu0 %v1185_v6  ;;  %v1015_v6 = vadd.f32 %v6569_v56, %v818_v37  ;;  %v1023_v56 = vadd.f32 %v6590_v17, %v6509_v52 }
 0x31d   :  { %4855 = vmatprep.subr.bf16.mxu0 %v1182_v51  ;;  %4885 = vmatprep.subr.bf16.mxu1 %v1186_v48 }
 0x31e   :  { %4886 = vmatpush3.bf16.msra.mxu1 %v1186_v48  ;;  %v1021_v48 = vadd.f32 %v6583_v16, %v818_v37  ;;  %v1171_v14 = vpack.c.bf16 %v1015_v6, %v1011_v3  ;;  %v995_v16 = vadd.f32 %v6521_v63, %v818_v37  ;;  %v1173_v25 = vpack.c.bf16 %v1023_v56, %v1019_v34  ;;  %v4844_v63 = vpop.f32.mrf.mxu1  ;;  %v4545_v6 = vld [vmem:[%s7942_s11 + $0x8] sm:$0xff]  }
 0x31f   :  { %4887 = vmatprep.subr.bf16.mxu1 %v1183_v43  ;;  %v1345_v44 = vadd.f32 %v4844_v63, %v6600_v42 }
 0x320   :  { %v1174_v22 = vpack.c.bf16 %v1025_v45, %v1021_v48  ;;  %v1165_v28 = vpack.c.bf16 %v995_v16, %v991_v50  ;;  %v1336_v17 = vpop.f32.mrf.mxu1 }
 0x321   :  { %v1337_v32 = vadd.f32 %v6600_v42, %v1336_v17 }
 0x322   :  { %4888 = vmatpush3.bf16.msra.mxu1 %v1183_v43  ;;  %v4847_v52 = vpop.f32.mrf.mxu1 }
 0x323   :  { %4889 = vmatprep.subr.bf16.mxu1 %v1180_v40  ;;  %v1382_v11 = vpack.c.bf16 %v1337_v32, %v1334_v8 }
 0x324   :  { %4856 = vmatpush3.bf16.xpose.msra.mxu0 %v1182_v51  ;;  %v1176_v51 = vpack.c.bf16 %v1033_v49, %v1029_v24  ;;  %v1349_v55 = vpop.f32.mrf.mxu1  ;;  %v4482_v24 = vld [vmem:[%s7942_s11] sm:$0xff]  }
 0x325   :  { %4857 = vmatprep.subr.bf16.mxu0 %v1179_v20  ;;  %v1350_v43 = vadd.f32 %v6600_v42, %v1349_v55  ;;  %v4483_v56 = vunpack.c.l.bf16 %v4482_v24  ;;  %v4484_v63 = vunpack.c.h.bf16 %v4482_v24 }
 0x326   :  { %4890 = vmatpush3.bf16.msra.mxu1 %v1180_v40  ;;  %v4848_v61 = vpop.f32.mrf.mxu1  ;;  %v1358_v40 = vadd.f32 %v4847_v52, %v6600_v42  ;;  %v4546_v52 = vld [vmem:[%s7942_s11 + $0x10] sm:$0xff]  }
 0x327   :  { %4891 = vmatprep.subr.bf16.mxu1 %v1177_v5  ;;  %v1361_v13 = vadd.f32 %v4848_v61, %v6600_v42 }
 0x328   :  { %v1352_v37 = vpop.f32.mrf.mxu1 }
 0x32a   :  { %4892 = vmatpush3.bf16.msra.mxu1 %v1177_v5  ;;  %v4851_v53 = vpop.f32.mrf.mxu1 }
 0x32b   :  { %4893 = vmatprep.subr.bf16.mxu1 %v1174_v22  ;;  %v1374_v5 = vadd.f32 %v4851_v53, %v6600_v42 }
 0x32c   :  { %4858 = vmatpush3.bf16.xpose.msra.mxu0 %v1179_v20  ;;  %v1365_v21 = vpop.f32.mrf.mxu1 }
 0x32d   :  { %4859 = vmatprep.subr.bf16.mxu0 %v1176_v51  ;;  %v1366_v20 = vadd.f32 %v6600_v42, %v1365_v21  ;;  %v4547_v21 = vld [vmem:[%s7942_s11 + $0x18] sm:$0xff]  }
 0x32e   :  { %4894 = vmatpush3.bf16.msra.mxu1 %v1174_v22  ;;  %v4852_v47 = vpop.f32.mrf.mxu1 }
 0x32f   :  { %4895 = vmatprep.subr.bf16.mxu1 %v1171_v14  ;;  %v1377_v48 = vadd.f32 %v4852_v47, %v6600_v42 }
 0x330   :  { %v1368_v57 = vpop.f32.mrf.mxu1 }
 0x331   :  { %v1387_v49 = vpack.c.bf16 %v1377_v48, %v1374_v5  ;;  %v4549_v48 = vld [vmem:[%s7942_s11 + $0x28] sm:$0xff]  }
 0x332   :  { %4896 = vmatpush3.bf16.msra.mxu1 %v1171_v14 }
 0x333   :  { %4897 = vmatprep.subr.bf16.mxu1 %v1168_v27 }
 0x334   :  { %4860 = vmatpush3.bf16.xpose.msra.mxu0 %v1176_v51  ;;  %v4487_v51 = vunpack.c.l.bf16 %v4545_v6 }
 0x335   :  { %4861 = vmatprep.subr.bf16.mxu0 %v1173_v25 }
 0x336   :  { %4898 = vmatpush3.bf16.msra.mxu1 %v1168_v27 }
 0x337   :  { %4899 = vmatprep.subr.bf16.mxu1 %v1165_v28 }
 0x33a   :  { %4900 = vmatpush3.bf16.msra.mxu1 %v1165_v28 }
 0x33c   :  { %4862 = vmatpush3.bf16.xpose.msra.mxu0 %v1173_v25 }
 0x33d   :  { %4863 = vmatprep.subr.bf16.mxu0 %v6574_v59 }
 0x344   :  { %4864 = vmatpush3.bf16.xpose.msra.mxu0 %v6574_v59  ;;  %v1342_v59 = vadd.f32 %v4843_v46, %v6600_v42 }
 0x345   :  { %4865 = vmatprep.subr.bf16.mxu0 %v6550_v29 }
 0x346   :  { %v1383_v41 = vpack.c.bf16 %v1345_v44, %v1342_v59 }
 0x34c   :  { %4866 = vmatpush3.bf16.xpose.msra.mxu0 %v6550_v29  ;;  %v7941_v29 = vpack.c.bf16 %v6616_v9, %v6612_v23  ;;  %v1369_v9 = vadd.f32 %v6600_v42, %v1368_v57  ;;  %v1385_v23 = vpack.c.bf16 %v1361_v13, %v1358_v40  ;;  %v4548_v40 = vld [vmem:[%s7942_s11 + $0x20] sm:$0xff]  }
 0x34d   :  { %4867 = vmatprep.subr.bf16.mxu0 %v6523_v0  ;;  %v4499_v5 = vunpack.c.l.bf16 %v4548_v40 }
 0x34e   :  { %v1386_v45 = vpack.c.bf16 %v1369_v9, %v1366_v20 }
 0x354   :  { %4868 = vmatpush3.bf16.xpose.msra.mxu0 %v6523_v0  ;;  %v1353_v0 = vadd.f32 %v6600_v42, %v1352_v37  ;;  %v4488_v42 = vunpack.c.h.bf16 %v4545_v6 }
 0x356   :  { %v1384_v18 = vpack.c.bf16 %v1353_v0, %v1350_v43  ;;  %v4495_v43 = vunpack.c.l.bf16 %v4547_v21  ;;  %v4492_v0 = vunpack.c.h.bf16 %v4546_v52 }
 0x35b   :  { %4870 = vmatmul.mubr.bf16.vlgmr.msra.gmra.mxu0 %v7941_v29 }
 0x35c   :  { %4873 = vmatprep.mubr.bf16.mxu0 %v1382_v11  ;;  %v4491_v11 = vunpack.c.l.bf16 %v4546_v52 }
 0x363   :  { %4874 = vmatmul.mubr.bf16.gmra.mxu0 %v1383_v41 }
 0x364   :  { %4877 = vmatprep.mubr.bf16.mxu0 %v1384_v18 }
 0x36b   :  { %4878 = vmatmul.mubr.bf16.gmra.mxu0 %v1385_v23 }
 0x36c   :  { %4881 = vmatprep.mubr.bf16.mxu0 %v1386_v45  ;;  %v4496_v45 = vunpack.c.h.bf16 %v4547_v21 }
 0x373   :  { %4882 = vmatmul.mubr.bf16.gmra.mxu0 %v1387_v49 }
 0x41b   :  { %v4871_v22 = vpop.f32.mrf.mxu0 }
 0x41c   :  { %v1487_v3 = vmul.f32 0.01, %v4871_v22 }
 0x41d   :  { %v1422_v1 = vpop.f32.mrf.mxu0 }
 0x41e   :  { %v1503_v14 = vmax.f32 %v4871_v22, %v1487_v3  ;;  %v1485_v12 = vmul.f32 0.01, %v1422_v1 }
 0x41f   :  { %v4872_v16 = vpop.f32.mrf.mxu0 }
 0x420   :  { %v1501_v27 = vmax.f32 %v1422_v1, %v1485_v12  ;;  %v1488_v34 = vmul.f32 0.01, %v4872_v16  ;;  %v6669_v50 = vadd.f32 %v4487_v51, %v1503_v14  ;;  %v4503_v14 = vunpack.c.l.bf16 %v4549_v48 }
 0x421   :  { %v1425_v25 = vpop.f32.mrf.mxu0 }
 0x422   :  { %v1504_v28 = vmax.f32 %v4872_v16, %v1488_v34  ;;  %v1486_v46 = vmul.f32 0.01, %v1425_v25  ;;  %1569 = vmax.xlane.f32.xlu1 %v6669_v50  ;;  %v6672_v15 = vadd.f32 %v4483_v56, %v1501_v27  ;;  %v4500_v56 = vunpack.c.h.bf16 %v4548_v40 }
 0x423   :  { %v4875_v17 = vpop.f32.mrf.mxu0 }
 0x424   :  { %v1502_v55 = vmax.f32 %v1425_v25, %v1486_v46  ;;  %1565 = vmax.xlane.f32.xlu0 %v6672_v15  ;;  %v6676_v61 = vadd.f32 %v4488_v42, %v1504_v28  ;;  %v1491_v8 = vmul.f32 0.01, %v4875_v17  ;;  %v4550_v28 = vld [vmem:[%s7942_s11 + $0x30] sm:$0xff]  }
 0x425   :  { %v1438_v37 = vpop.f32.mrf.mxu0  ;;  %v4507_v21 = vunpack.c.l.bf16 %v4550_v28 }
 0x426   :  { %v1489_v32 = vmul.f32 0.01, %v1438_v37  ;;  %1571 = vmax.xlane.f32.xlu1 %v6676_v61  ;;  %v6679_v53 = vadd.f32 %v4484_v63, %v1502_v55  ;;  %v1507_v47 = vmax.f32 %v4875_v17, %v1491_v8  ;;  %v4504_v55 = vunpack.c.h.bf16 %v4549_v48 }
 0x427   :  { %v4876_v59 = vpop.f32.mrf.mxu0 }
 0x428   :  { %v1505_v44 = vmax.f32 %v1438_v37, %v1489_v32  ;;  %1567 = vmax.xlane.f32.xlu0 %v6679_v53  ;;  %v1492_v41 = vmul.f32 0.01, %v4876_v59  ;;  %v6688_v22 = vadd.f32 %v4495_v43, %v1507_v47  ;;  %v4551_v37 = vld [vmem:[%s7942_s11 + $0x38] sm:$0xff]  }
 0x429   :  { %v1441_v29 = vpop.f32.mrf.mxu0 }
 0x42a   :  { %v1490_v18 = vmul.f32 0.01, %v1441_v29  ;;  %v6683_v57 = vadd.f32 %v4491_v11, %v1505_v44  ;;  %v1508_v49 = vmax.f32 %v4876_v59, %v1492_v41 }
 0x42b   :  { %v4879_v13 = vpop.f32.mrf.mxu0 }
 0x42c   :  { %v1506_v20 = vmax.f32 %v1441_v29, %v1490_v18  ;;  %v1495_v9 = vmul.f32 0.01, %v4879_v13  ;;  %1573 = vmax.xlane.f32.xlu0 %v6683_v57  ;;  %v6694_v34 = vadd.f32 %v4496_v45, %v1508_v49  ;;  %v4512_v45 = vunpack.c.h.bf16 %v4551_v37 }
 0x42d   :  { %v1454_v23 = vpop.f32.mrf.mxu0 }
 0x42e   :  { %v1493_v6 = vmul.f32 0.01, %v1454_v23  ;;  %v6690_v24 = vadd.f32 %v4492_v0, %v1506_v20  ;;  %v1511_v51 = vmax.f32 %v4879_v13, %v1495_v9  ;;  %v4511_v0 = vunpack.c.l.bf16 %v4551_v37 }
 0x42f   :  { %v4880_v3 = vpop.f32.mrf.mxu0  ;;  %v4508_v13 = vunpack.c.h.bf16 %v4550_v28 }
 0x430   :  { %v1509_v1 = vmax.f32 %v1454_v23, %v1493_v6  ;;  %1577 = vmax.xlane.f32.xlu0 %v6688_v22  ;;  %1575 = vmax.xlane.f32.xlu1 %v6690_v24  ;;  %v1496_v16 = vmul.f32 0.01, %v4880_v3  ;;  %v6701_v17 = vadd.f32 %v4503_v14, %v1511_v51 }
 0x431   :  { %v1457_v12 = vpop.f32.mrf.mxu0 }
 0x432   :  { %v1494_v27 = vmul.f32 0.01, %v1457_v12  ;;  %v6696_v42 = vadd.f32 %v4499_v5, %v1509_v1  ;;  %v1512_v8 = vmax.f32 %v4880_v3, %v1496_v16 }
 0x433   :  { %v4883_v25 = vpop.f32.mrf.mxu0 }
 0x434   :  { %v1510_v46 = vmax.f32 %v1457_v12, %v1494_v27  ;;  %v1499_v63 = vmul.f32 0.01, %v4883_v25  ;;  %1579 = vmax.xlane.f32.xlu1 %v6694_v34  ;;  %1581 = vmax.xlane.f32.xlu0 %v6696_v42  ;;  %v6708_v18 = vadd.f32 %v4504_v55, %v1512_v8 }
 0x435   :  { %v1470_v52 = vpop.f32.mrf.mxu0 }
 0x436   :  { %v1497_v32 = vmul.f32 0.01, %v1470_v52  ;;  %v6704_v11 = vadd.f32 %v4500_v56, %v1510_v46  ;;  %v1515_v44 = vmax.f32 %v4883_v25, %v1499_v63 }
 0x437   :  { %v4884_v59 = vpop.f32.mrf.mxu0 }
 0x438   :  { %v1513_v29 = vmax.f32 %v1470_v52, %v1497_v32  ;;  %v1500_v43 = vmul.f32 0.01, %v4884_v59  ;;  %1585 = vmax.xlane.f32.xlu0 %v6701_v17  ;;  %1583 = vmax.xlane.f32.xlu1 %v6704_v11  ;;  %v6714_v23 = vadd.f32 %v4511_v0, %v1515_v44 }
 0x439   :  { %v1473_v47 = vpop.f32.mrf.mxu0 }
 0x43a   :  { %v1498_v41 = vmul.f32 0.01, %v1473_v47  ;;  %v6710_v40 = vadd.f32 %v4507_v21, %v1513_v29  ;;  %v1516_v20 = vmax.f32 %v4884_v59, %v1500_v43 }
 0x43c   :  { %v1514_v9 = vmax.f32 %v1473_v47, %v1498_v41  ;;  %1587 = vmax.xlane.f32.xlu1 %v6708_v18  ;;  %1589 = vmax.xlane.f32.xlu0 %v6710_v40  ;;  %v6720_v48 = vadd.f32 %v4512_v45, %v1516_v20 }
 0x43e   :  { %v6716_v5 = vadd.f32 %v4508_v13, %v1514_v9 }
 0x440   :  { %1593 = vmax.xlane.f32.xlu0 %v6714_v23  ;;  %1591 = vmax.xlane.f32.xlu1 %v6716_v5 }
 0x444   :  { %1595 = vmax.xlane.f32.xlu1 %v6720_v48 }
 0x4ab   :  { %v1570_v49 = vpop.xlane.xlu1 %1569 }
 0x4ac   :  { %v1599_v6 = vsub.f32 %v6669_v50, %v1570_v49 }
 0x4ad   :  { %v1566_v3 = vpop.xlane.xlu0 %1565 }
 0x4ae   :  { %v1597_v51 = vsub.f32 %v6672_v15, %v1566_v3  ;;  %v1617_v12 = vmul.f32 1.442695, %v1599_v6 }
 0x4af   :  { %v1572_v1 = vpop.xlane.xlu1 %1571 }
 0x4b0   :  { %v1613_v14 = vmul.f32 1.442695, %v1597_v51  ;;  %v1600_v56 = vsub.f32 %v6676_v61, %v1572_v1 }
 0x4b1   :  { %v1568_v16 = vpop.xlane.xlu0 %1567 }
 0x4b2   :  { %5305 = vpow2.f32 %v1613_v14  ;;  %v1598_v27 = vsub.f32 %v6679_v53, %v1568_v16  ;;  %v1619_v28 = vmul.f32 1.442695, %v1600_v56 }
 0x4b3   :  { %5307 = vpow2.f32 %v1617_v12 }
 0x4b4   :  { %v1615_v25 = vmul.f32 1.442695, %v1598_v27 }
 0x4b5   :  { %v1574_v46 = vpop.xlane.xlu0 %1573 }
 0x4b6   :  { %5309 = vpow2.f32 %v1615_v25  ;;  %v1601_v63 = vsub.f32 %v6683_v57, %v1574_v46 }
 0x4b7   :  { %5311 = vpow2.f32 %v1619_v28 }
 0x4b8   :  { %v1621_v50 = vmul.f32 1.442695, %v1601_v63 }
 0x4b9   :  { %v1578_v52 = vpop.xlane.xlu0 %1577  ;;  %v1576_v15 = vpop.xlane.xlu1 %1575 }
 0x4ba   :  { %5313 = vpow2.f32 %v1621_v50  ;;  %v1603_v55 = vsub.f32 %v6688_v22, %v1578_v52  ;;  %v1602_v61 = vsub.f32 %v6690_v24, %v1576_v15 }
 0x4bc   :  { %v1625_v37 = vmul.f32 1.442695, %v1603_v55  ;;  %v1623_v8 = vmul.f32 1.442695, %v1602_v61 }
 0x4bd   :  { %v1580_v32 = vpop.xlane.xlu1 %1579  ;;  %v1582_v53 = vpop.xlane.xlu0 %1581 }
 0x4be   :  { %5315 = vpow2.f32 %v1625_v37  ;;  %v1604_v21 = vsub.f32 %v6694_v34, %v1580_v32  ;;  %v1605_v59 = vsub.f32 %v6696_v42, %v1582_v53 }
 0x4bf   :  { %v6732_v44 = vpop.eup %5305  ;;  %5317 = vpow2.f32 %v1623_v8 }
 0x4c0   :  { %v1627_v57 = vmul.f32 1.442695, %v1604_v21  ;;  %v1629_v29 = vmul.f32 1.442695, %v1605_v59  ;;  %1645 = vadd.xlane.f32.xlu0 %v6732_v44  ;;  %v6735_v0 = vpop.eup %5307 }
 0x4c1   :  { %v1586_v43 = vpop.xlane.xlu0 %1585  ;;  %v1584_v22 = vpop.xlane.xlu1 %1583 }
 0x4c2   :  { %5319 = vpow2.f32 %v1627_v57  ;;  %v1607_v24 = vsub.f32 %v6701_v17, %v1586_v43  ;;  %v1606_v47 = vsub.f32 %v6704_v11, %v1584_v22 }
 0x4c3   :  { %v6739_v41 = vpop.eup %5309  ;;  %5321 = vpow2.f32 %v1629_v29 }
 0x4c4   :  { %v1633_v34 = vmul.f32 1.442695, %v1607_v24  ;;  %v1631_v42 = vmul.f32 1.442695, %v1606_v47  ;;  %1649 = vadd.xlane.f32.xlu0 %v6735_v0  ;;  %1647 = vadd.xlane.f32.xlu1 %v6739_v41  ;;  %v6743_v9 = vpop.eup %5311 }
 0x4c5   :  { %v1588_v13 = vpop.xlane.xlu1 %1587  ;;  %v1590_v20 = vpop.xlane.xlu0 %1589 }
 0x4c6   :  { %5323 = vpow2.f32 %v1633_v34  ;;  %v1608_v45 = vsub.f32 %v6708_v18, %v1588_v13  ;;  %v1609_v17 = vsub.f32 %v6710_v40, %v1590_v20 }
 0x4c7   :  { %v6747_v49 = vpop.eup %5313  ;;  %5325 = vpow2.f32 %v1631_v42 }
 0x4c8   :  { %v1635_v11 = vmul.f32 1.442695, %v1608_v45  ;;  %v1637_v6 = vmul.f32 1.442695, %v1609_v17  ;;  %1653 = vadd.xlane.f32.xlu0 %v6747_v49  ;;  %1651 = vadd.xlane.f32.xlu1 %v6743_v9 }
 0x4c9   :  { %v1594_v3 = vpop.xlane.xlu0 %1593  ;;  %v1592_v51 = vpop.xlane.xlu1 %1591 }
 0x4ca   :  { %5327 = vpow2.f32 %v1635_v11  ;;  %v1611_v1 = vsub.f32 %v6714_v23, %v1594_v3  ;;  %v1610_v14 = vsub.f32 %v6716_v5, %v1592_v51 }
 0x4cb   :  { %v6753_v12 = vpop.eup %5315  ;;  %5329 = vpow2.f32 %v1637_v6 }
 0x4cc   :  { %v6755_v18 = vpop.eup %5317  ;;  %v1641_v40 = vmul.f32 1.442695, %v1611_v1  ;;  %v1639_v56 = vmul.f32 1.442695, %v1610_v14  ;;  %1657 = vadd.xlane.f32.xlu0 %v6753_v12 }
 0x4cd   :  { %1655 = vadd.xlane.f32.xlu1 %v6755_v18  ;;  %v1596_v16 = vpop.xlane.xlu1 %1595 }
 0x4ce   :  { %5331 = vpow2.f32 %v1641_v40  ;;  %v1612_v27 = vsub.f32 %v6720_v48, %v1596_v16 }
 0x4cf   :  { %v6760_v25 = vpop.eup %5319  ;;  %5333 = vpow2.f32 %v1639_v56 }
 0x4d0   :  { %v6762_v23 = vpop.eup %5321  ;;  %v1643_v5 = vmul.f32 1.442695, %v1612_v27 }
 0x4d1   :  { %1661 = vadd.xlane.f32.xlu0 %v6762_v23  ;;  %1659 = vadd.xlane.f32.xlu1 %v6760_v25 }
 0x4d2   :  { %5335 = vpow2.f32 %v1643_v5 }
 0x4d3   :  { %v6766_v28 = vpop.eup %5323 }
 0x4d4   :  { %v6768_v46 = vpop.eup %5325 }
 0x4d5   :  { %1665 = vadd.xlane.f32.xlu0 %v6766_v28  ;;  %1663 = vadd.xlane.f32.xlu1 %v6768_v46 }
 0x4d7   :  { %v6772_v48 = vpop.eup %5327 }
 0x4d8   :  { %v6774_v63 = vpop.eup %5329 }
 0x4d9   :  { %1669 = vadd.xlane.f32.xlu0 %v6774_v63  ;;  %1667 = vadd.xlane.f32.xlu1 %v6772_v48 }
 0x4db   :  { %v6778_v50 = vpop.eup %5331 }
 0x4dc   :  { %v6780_v52 = vpop.eup %5333 }
 0x4dd   :  { %1673 = vadd.xlane.f32.xlu0 %v6778_v50  ;;  %1671 = vadd.xlane.f32.xlu1 %v6780_v52 }
 0x4df   :  { %v6784_v15 = vpop.eup %5335 }
 0x4e1   :  { %1675 = vadd.xlane.f32.xlu1 %v6784_v15 }
 0x549   :  { %v1646_v55 = vpop.xlane.xlu0 %1645 }
 0x54a   :  { %5337 = vrcp.f32 %v1646_v55 }
 0x54d   :  { %v1650_v61 = vpop.xlane.xlu0 %1649  ;;  %v1648_v37 = vpop.xlane.xlu1 %1647 }
 0x54e   :  { %5339 = vrcp.f32 %v1648_v37 }
 0x54f   :  { %5341 = vrcp.f32 %v1650_v61 }
 0x551   :  { %v1654_v8 = vpop.xlane.xlu0 %1653  ;;  %v1652_v32 = vpop.xlane.xlu1 %1651 }
 0x552   :  { %5343 = vrcp.f32 %v1652_v32 }
 0x553   :  { %5345 = vrcp.f32 %v1654_v8 }
 0x555   :  { %v1658_v53 = vpop.xlane.xlu0 %1657 }
 0x556   :  { %v1656_v21 = vpop.xlane.xlu1 %1655 }
 0x557   :  { %5347 = vrcp.f32 %v1656_v21  ;;  %v5338_v59 = vpop.eup %5337 }
 0x558   :  { %5349 = vrcp.f32 %v1658_v53  ;;  %v1693_v22 = vmul.f32 %v5338_v59, %v6732_v44 }
 0x55a   :  { %v1662_v57 = vpop.xlane.xlu0 %1661  ;;  %v1660_v29 = vpop.xlane.xlu1 %1659 }
 0x55b   :  { %v5340_v43 = vpop.eup %5339  ;;  %5351 = vrcp.f32 %v1660_v29 }
 0x55c   :  { %v1694_v24 = vmul.f32 %v5340_v43, %v6739_v41  ;;  %v5342_v47 = vpop.eup %5341  ;;  %5353 = vrcp.f32 %v1662_v57 }
 0x55d   :  { %v1695_v45 = vmul.f32 %v5342_v47, %v6735_v0 }
 0x55e   :  { %v1666_v34 = vpop.xlane.xlu0 %1665  ;;  %v1664_v42 = vpop.xlane.xlu1 %1663  ;;  %v1709_v13 = vpack.c.bf16 %v1694_v24, %v1693_v22 }
 0x55f   :  { %v5344_v20 = vpop.eup %5343  ;;  %5355 = vrcp.f32 %v1664_v42 }
 0x560   :  { %4901 = vmatprep.mubr.bf16.mxu1 %v1709_v13  ;;  %v1696_v17 = vmul.f32 %v5344_v20, %v6743_v9  ;;  %v5346_v11 = vpop.eup %5345  ;;  %5357 = vrcp.f32 %v1666_v34 }
 0x561   :  { %v1697_v41 = vmul.f32 %v5346_v11, %v6747_v49 }
 0x562   :  { %v1670_v6 = vpop.xlane.xlu0 %1669  ;;  %v1668_v3 = vpop.xlane.xlu1 %1667  ;;  %v1710_v51 = vpack.c.bf16 %v1696_v17, %v1695_v45 }
 0x563   :  { %5359 = vrcp.f32 %v1668_v3  ;;  %v5562_v3 = vld [vmem:[#allocation5 + $0x18] sm:$0xff] }
 0x564   :  { %v5348_v44 = vpop.eup %5347  ;;  %4902 = vmatmul.mubr.bf16.vlgmr.msra.gmra.mxu1 %v1710_v51  ;;  %5361 = vrcp.f32 %v1670_v6 }
 0x565   :  { %v1698_v1 = vmul.f32 %v5348_v44, %v6755_v18  ;;  %v5350_v56 = vpop.eup %5349 }
 0x566   :  { %v1674_v14 = vpop.xlane.xlu0 %1673  ;;  %v1672_v40 = vpop.xlane.xlu1 %1671  ;;  %v1699_v27 = vmul.f32 %v5350_v56, %v6753_v12  ;;  %v5563_v56 = vld [vmem:[#allocation5 + $0x30] sm:$0xff] }
 0x567   :  { %v1711_v16 = vpack.c.bf16 %v1698_v1, %v1697_v41  ;;  %5363 = vrcp.f32 %v1672_v40 }
 0x568   :  { %v5352_v0 = vpop.eup %5351  ;;  %5365 = vrcp.f32 %v1674_v14  ;;  %v6817_v14 = vld [vmem:[#allocation5 + $0x28] sm:$0xff] }
 0x569   :  { %4905 = vmatprep.mubr.bf16.mxu1 %v1711_v16  ;;  %v1700_v5 = vmul.f32 %v5352_v0, %v6760_v25  ;;  %v5354_v55 = vpop.eup %5353 }
 0x56a   :  { %v1676_v9 = vpop.xlane.xlu1 %1675  ;;  %v1701_v18 = vmul.f32 %v5354_v55, %v6762_v23  ;;  %v5564_v55 = vld [vmem:[#allocation5 + $0x38] sm:$0xff] }
 0x56b   :  { %5367 = vrcp.f32 %v1676_v9  ;;  %v1712_v61 = vpack.c.bf16 %v1700_v5, %v1699_v27  ;;  %v6825_v27 = vld [vmem:[#allocation5 + $0x40] sm:$0xff] }
 0x56c   :  { %v5356_v49 = vpop.eup %5355 }
 0x56d   :  { %4906 = vmatmul.mubr.bf16.gmra.mxu1 %v1712_v61  ;;  %v1702_v37 = vmul.f32 %v5356_v49, %v6768_v46  ;;  %v5358_v8 = vpop.eup %5357 }
 0x56e   :  { %v1703_v21 = vmul.f32 %v5358_v8, %v6766_v28  ;;  %v1188_v28 = vld [vmem:[#allocation5] sm:$0xff] }
 0x56f   :  { %v1713_v32 = vpack.c.bf16 %v1702_v37, %v1701_v18  ;;  %v6834_v37 = vld [vmem:[#allocation5 + $0x48] sm:$0xff] }
 0x570   :  { %v5360_v53 = vpop.eup %5359 }
 0x571   :  { %4909 = vmatprep.mubr.bf16.mxu1 %v1713_v32  ;;  %v1704_v59 = vmul.f32 %v5360_v53, %v6772_v48  ;;  %v5362_v12 = vpop.eup %5361  ;;  %v1189_v48 = vld [vmem:[#allocation5 + $0x8] sm:$0xff]  ;;  %v5565_v32 = vld [vmem:[#allocation5 + $0x50] sm:$0xff] }
 0x572   :  { %v1705_v43 = vmul.f32 %v5362_v12, %v6774_v63  ;;  %v1204_v42 = vpack.c.bf16 %v1189_v48, %v1188_v28  ;;  %v6843_v12 = vld [vmem:[#allocation5 + $0x60] sm:$0xff] }
 0x573   :  { %v1714_v57 = vpack.c.bf16 %v1704_v59, %v1703_v21 }
 0x574   :  { %v5364_v25 = vpop.eup %5363  ;;  %4837 = vmatprep.mubr.bf16.mxu0 %v1204_v42 }
 0x575   :  { %v5366_v29 = vpop.eup %5365  ;;  %4910 = vmatmul.mubr.bf16.gmra.mxu1 %v1714_v57  ;;  %v1706_v22 = vmul.f32 %v5364_v25, %v6780_v52  ;;  %v5561_v52 = vld [vmem:[#allocation5 + $0x10] sm:$0xff]  ;;  %v5566_v25 = vld [vmem:[#allocation5 + $0x58] sm:$0xff] }
 0x576   :  { %v1707_v46 = vmul.f32 %v5366_v29, %v6778_v50 }
 0x577   :  { %v1715_v24 = vpack.c.bf16 %v1706_v22, %v1705_v43 }
 0x578   :  { %v5368_v23 = vpop.eup %5367 }
 0x579   :  { %v1708_v47 = vmul.f32 %v5368_v23, %v6784_v15  ;;  %4913 = vmatprep.mubr.bf16.mxu1 %v1715_v24  ;;  %v6809_v15 = vld [vmem:[#allocation5 + $0x20] sm:$0xff]  ;;  %v6852_v23 = vld [vmem:[#allocation5 + $0x68] sm:$0xff] }
 0x57b   :  { %v1716_v34 = vpack.c.bf16 %v1708_v47, %v1707_v46  ;;  %v5567_v46 = vld [vmem:[#allocation5 + $0x70] sm:$0xff] }
 0x57d   :  { %4914 = vmatmul.mubr.bf16.gmra.mxu1 %v1716_v34 }
 0x624   :  { %v4903_v13 = vpop.f32.mrf.mxu1 }
 0x625   :  { %v6803_v11 = vadd.f32 %v5561_v52, %v4903_v13 }
 0x626   :  { %v1751_v20 = vpop.f32.mrf.mxu1 }
 0x627   :  { %v1752_v45 = vadd.f32 %v1751_v20, %v1188_v28  ;;  %v5568_v28 = vld [vmem:[#allocation5 + $0x78] sm:$0xff] }
 0x628   :  { %v4904_v17 = vpop.f32.mrf.mxu1 }
 0x629   :  { %1814 = vadd.xlane.f32.xlu0 %v1752_v45  ;;  %v6811_v51 = vadd.f32 %v5562_v3, %v4904_v17 }
 0x62a   :  { %v1754_v63 = vpop.f32.mrf.mxu1 }
 0x62b   :  { %v6805_v6 = vadd.f32 %v1754_v63, %v1189_v48 }
 0x62d   :  { %v4907_v50 = vpop.f32.mrf.mxu1  ;;  %1816 = vadd.xlane.f32.xlu1 %v6805_v6  ;;  %1818 = vadd.xlane.f32.xlu0 %v6803_v11 }
 0x62e   :  { %v6820_v16 = vadd.f32 %v5563_v56, %v4907_v50 }
 0x62f   :  { %v1767_v44 = vpop.f32.mrf.mxu1 }
 0x630   :  { %v6814_v41 = vadd.f32 %v1767_v44, %v6809_v15 }
 0x631   :  { %v4908_v1 = vpop.f32.mrf.mxu1  ;;  %1820 = vadd.xlane.f32.xlu1 %v6811_v51 }
 0x632   :  { %1822 = vadd.xlane.f32.xlu0 %v6814_v41  ;;  %v6829_v61 = vadd.f32 %v5564_v55, %v4908_v1 }
 0x633   :  { %v1770_v40 = vpop.f32.mrf.mxu1 }
 0x634   :  { %v6823_v0 = vadd.f32 %v1770_v40, %v6817_v14 }
 0x635   :  { %v4911_v9 = vpop.f32.mrf.mxu1 }
 0x636   :  { %1824 = vadd.xlane.f32.xlu1 %v6823_v0  ;;  %1826 = vadd.xlane.f32.xlu0 %v6820_v16  ;;  %v6838_v53 = vadd.f32 %v5565_v32, %v4911_v9 }
 0x637   :  { %v1783_v5 = vpop.f32.mrf.mxu1 }
 0x638   :  { %v6832_v49 = vadd.f32 %v1783_v5, %v6825_v27 }
 0x639   :  { %v4912_v18 = vpop.f32.mrf.mxu1 }
 0x63a   :  { %1828 = vadd.xlane.f32.xlu1 %v6829_v61  ;;  %1830 = vadd.xlane.f32.xlu0 %v6832_v49  ;;  %v6847_v29 = vadd.f32 %v5566_v25, %v4912_v18 }
 0x63b   :  { %v1786_v8 = vpop.f32.mrf.mxu1 }
 0x63c   :  { %v6841_v21 = vadd.f32 %v1786_v8, %v6834_v37 }
 0x63d   :  { %v4915_v59 = vpop.f32.mrf.mxu1 }
 0x63e   :  { %1832 = vadd.xlane.f32.xlu1 %v6841_v21  ;;  %1834 = vadd.xlane.f32.xlu0 %v6838_v53  ;;  %v6856_v47 = vadd.f32 %v5567_v46, %v4915_v59 }
 0x63f   :  { %v1799_v57 = vpop.f32.mrf.mxu1 }
 0x640   :  { %v6850_v43 = vadd.f32 %v1799_v57, %v6843_v12 }
 0x641   :  { %v4916_v22 = vpop.f32.mrf.mxu1 }
 0x642   :  { %1836 = vadd.xlane.f32.xlu1 %v6847_v29  ;;  %1838 = vadd.xlane.f32.xlu0 %v6850_v43  ;;  %v6863_v48 = vadd.f32 %v5568_v28, %v4916_v22 }
 0x643   :  { %v1802_v24 = vpop.f32.mrf.mxu1 }
 0x644   :  { %v6859_v34 = vadd.f32 %v1802_v24, %v6852_v23 }
 0x646   :  { %1840 = vadd.xlane.f32.xlu1 %v6859_v34  ;;  %1842 = vadd.xlane.f32.xlu0 %v6856_v47 }
 0x64a   :  { %1844 = vadd.xlane.f32.xlu1 %v6863_v48 }
 0x6b2   :  { %v1815_v42 = vpop.xlane.xlu0 %1814 }
 0x6b3   :  { %v1847_v13 = vmul.f32 0.0078125, %v1815_v42 }
 0x6b5   :  { %v6866_v20 = vsub.f32 %v1752_v45, %v1847_v13 }
 0x6b6   :  { %v1819_v17 = vpop.xlane.xlu0 %1818  ;;  %v1817_v63 = vpop.xlane.xlu1 %1816 }
 0x6b7   :  { %v1849_v52 = vmul.f32 0.0078125, %v1819_v17  ;;  %v1848_v50 = vmul.f32 0.0078125, %v1817_v63  ;;  %v1879_v3 = vmul.f32 %v6866_v20, %v6866_v20  ;;  %v5241_v17 = vld [vmem:[#allocation22 + $0x38] sm:$0xff]  }
 0x6b8   :  { %4917 = vmatprep.subr.bf16.mxu0 %v5241_v17 }
 0x6b9   :  { %1895 = vadd.xlane.f32.xlu0 %v1879_v3  ;;  %v6871_v44 = vsub.f32 %v6803_v11, %v1849_v52  ;;  %v6874_v1 = vsub.f32 %v6805_v6, %v1848_v50  ;;  %4918 = vmatpush3.bf16.msra.mxu0 %v5241_v17 }
 0x6ba   :  { %v1821_v40 = vpop.xlane.xlu1 %1820 }
 0x6bb   :  { %v1823_v56 = vpop.xlane.xlu0 %1822  ;;  %v1850_v9 = vmul.f32 0.0078125, %v1821_v40  ;;  %v1881_v45 = vmul.f32 %v6871_v44, %v6871_v44  ;;  %v1880_v5 = vmul.f32 %v6874_v1, %v6874_v1 }
 0x6bc   :  { %v1851_v55 = vmul.f32 0.0078125, %v1823_v56 }
 0x6bd   :  { %1899 = vadd.xlane.f32.xlu0 %v1881_v45  ;;  %1897 = vadd.xlane.f32.xlu1 %v1880_v5  ;;  %v6881_v18 = vsub.f32 %v6811_v51, %v1850_v9  ;;  %v5242_v9 = vld [vmem:[#allocation22 + $0x30] sm:$0xff]  }
 0x6be   :  { %v6884_v11 = vsub.f32 %v6814_v41, %v1851_v55  ;;  %4919 = vmatprep.subr.bf16.mxu0 %v5242_v9 }
 0x6bf   :  { %v1827_v6 = vpop.xlane.xlu0 %1826  ;;  %v1825_v8 = vpop.xlane.xlu1 %1824  ;;  %v1882_v32 = vmul.f32 %v6881_v18, %v6881_v18  ;;  %4920 = vmatpush3.bf16.msra.mxu0 %v5242_v9  ;;  %v1208_v9 = vpack.c.bf16 %v6834_v37, %v6825_v27  ;;  %v5253_v27 = vld [vmem:[#allocation25 + $0x18] sm:$0xff]  }
 0x6c0   :  { %v1853_v59 = vmul.f32 0.0078125, %v1827_v6  ;;  %v1852_v57 = vmul.f32 0.0078125, %v1825_v8  ;;  %v1883_v25 = vmul.f32 %v6884_v11, %v6884_v11 }
 0x6c1   :  { %1901 = vadd.xlane.f32.xlu1 %v1882_v32 }
 0x6c2   :  { %1903 = vadd.xlane.f32.xlu0 %v1883_v25  ;;  %v6891_v22 = vsub.f32 %v6820_v16, %v1853_v59  ;;  %v6894_v51 = vsub.f32 %v6823_v0, %v1852_v57  ;;  %v5243_v59 = vld [vmem:[#allocation22 + $0x28] sm:$0xff]  }
 0x6c3   :  { %v1831_v41 = vpop.xlane.xlu0 %1830  ;;  %v1829_v24 = vpop.xlane.xlu1 %1828  ;;  %4921 = vmatprep.subr.bf16.mxu0 %v5243_v59 }
 0x6c4   :  { %v1855_v46 = vmul.f32 0.0078125, %v1831_v41  ;;  %v1854_v28 = vmul.f32 0.0078125, %v1829_v24  ;;  %v1885_v42 = vmul.f32 %v6891_v22, %v6891_v22  ;;  %v1884_v13 = vmul.f32 %v6894_v51, %v6894_v51  ;;  %4922 = vmatpush3.bf16.msra.mxu0 %v5243_v59 }
 0x6c6   :  { %1907 = vadd.xlane.f32.xlu0 %v1885_v42  ;;  %1905 = vadd.xlane.f32.xlu1 %v1884_v13  ;;  %v6901_v63 = vsub.f32 %v6832_v49, %v1855_v46  ;;  %v6904_v16 = vsub.f32 %v6829_v61, %v1854_v28  ;;  %v5244_v42 = vld [vmem:[#allocation22 + $0x20] sm:$0xff]  }
 0x6c7   :  { %v1835_v0 = vpop.xlane.xlu0 %1834  ;;  %v1833_v52 = vpop.xlane.xlu1 %1832  ;;  %4923 = vmatprep.subr.bf16.mxu0 %v5244_v42 }
 0x6c8   :  { %v1857_v50 = vmul.f32 0.0078125, %v1835_v0  ;;  %v1856_v3 = vmul.f32 0.0078125, %v1833_v52  ;;  %v1887_v40 = vmul.f32 %v6901_v63, %v6901_v63  ;;  %v1886_v56 = vmul.f32 %v6904_v16, %v6904_v16  ;;  %4924 = vmatpush3.bf16.msra.mxu0 %v5244_v42 }
 0x6ca   :  { %1911 = vadd.xlane.f32.xlu0 %v1887_v40  ;;  %1909 = vadd.xlane.f32.xlu1 %v1886_v56  ;;  %v6911_v49 = vsub.f32 %v6838_v53, %v1857_v50  ;;  %v6914_v61 = vsub.f32 %v6841_v21, %v1856_v3  ;;  %v5245_v50 = vld [vmem:[#allocation22 + $0x18] sm:$0xff]   ;;  %v5247_v40 = vld [vmem:[#allocation22 + $0x8] sm:$0xff]   ;;  %v1206_v56 = vpack.c.bf16 %v6817_v14, %v6809_v15 }
 0x6cb   :  { %v1839_v45 = vpop.xlane.xlu0 %1838  ;;  %v1837_v5 = vpop.xlane.xlu1 %1836  ;;  %4925 = vmatprep.subr.bf16.mxu0 %v5245_v50  ;;  %v5251_v15 = vld [vmem:[#allocation25 + $0x28] sm:$0xff]   ;;  %v5252_v14 = vld [vmem:[#allocation25 + $0x20] sm:$0xff]  }
 0x6cc   :  { %v1859_v55 = vmul.f32 0.0078125, %v1839_v45  ;;  %v1858_v6 = vmul.f32 0.0078125, %v1837_v5  ;;  %v1889_v8 = vmul.f32 %v6911_v49, %v6911_v49  ;;  %v1888_v32 = vmul.f32 %v6914_v61, %v6914_v61  ;;  %4926 = vmatpush3.bf16.msra.mxu0 %v5245_v50  ;;  %4841 = vmatprep.mubr.bf16.mxu0 %v1206_v56  ;;  %v5248_v45 = vld [vmem:[#allocation22] sm:$0xff]  }
 0x6cd   :  { %4845 = vmatprep.mubr.bf16.mxu0 %v1208_v9  ;;  %v5249_v5 = vld [vmem:[#allocation25 + $0x38] sm:$0xff]  }
 0x6ce   :  { %1915 = vadd.xlane.f32.xlu0 %v1889_v8  ;;  %1913 = vadd.xlane.f32.xlu1 %v1888_v32  ;;  %v6921_v53 = vsub.f32 %v6850_v43, %v1859_v55  ;;  %v6924_v21 = vsub.f32 %v6847_v29, %v1858_v6  ;;  %v5250_v55 = vld [vmem:[#allocation25 + $0x30] sm:$0xff]  }
 0x6cf   :  { %v1843_v57 = vpop.xlane.xlu0 %1842  ;;  %v1841_v25 = vpop.xlane.xlu1 %1840  ;;  %4949 = vmatprep.subr.bf16.mxu1 %v5249_v5 }
 0x6d0   :  { %v1861_v41 = vmul.f32 0.0078125, %v1843_v57  ;;  %v1860_v24 = vmul.f32 0.0078125, %v1841_v25  ;;  %v1891_v46 = vmul.f32 %v6921_v53, %v6921_v53  ;;  %v1890_v28 = vmul.f32 %v6924_v21, %v6924_v21  ;;  %4950 = vmatpush3.bf16.msra.mxu1 %v5249_v5 }
 0x6d1   :  { %4951 = vmatprep.subr.bf16.mxu1 %v5250_v55 }
 0x6d2   :  { %1919 = vadd.xlane.f32.xlu0 %v1891_v46  ;;  %1917 = vadd.xlane.f32.xlu1 %v1890_v28  ;;  %v6931_v43 = vsub.f32 %v6856_v47, %v1861_v41  ;;  %v6934_v29 = vsub.f32 %v6859_v34, %v1860_v24  ;;  %v5246_v34 = vld [vmem:[#allocation22 + $0x10] sm:$0xff]  }
 0x6d3   :  { %v1845_v13 = vpop.xlane.xlu1 %1844  ;;  %4927 = vmatprep.subr.bf16.mxu0 %v5246_v34 }
 0x6d4   :  { %v1862_v17 = vmul.f32 0.0078125, %v1845_v13  ;;  %v1893_v0 = vmul.f32 %v6931_v43, %v6931_v43  ;;  %v1892_v52 = vmul.f32 %v6934_v29, %v6934_v29  ;;  %4928 = vmatpush3.bf16.msra.mxu0 %v5246_v34  ;;  %4952 = vmatpush3.bf16.msra.mxu1 %v5250_v55 }
 0x6d5   :  { %4929 = vmatprep.subr.bf16.mxu0 %v5247_v40  ;;  %4953 = vmatprep.subr.bf16.mxu1 %v5251_v15 }
 0x6d6   :  { %1923 = vadd.xlane.f32.xlu0 %v1893_v0  ;;  %1921 = vadd.xlane.f32.xlu1 %v1892_v52  ;;  %v6941_v3 = vsub.f32 %v6863_v48, %v1862_v17  ;;  %v1210_v48 = vpack.c.bf16 %v6852_v23, %v6843_v12 }
 0x6d8   :  { %v1894_v47 = vmul.f32 %v6941_v3, %v6941_v3  ;;  %4930 = vmatpush3.bf16.msra.mxu0 %v5247_v40  ;;  %4849 = vmatprep.mubr.bf16.mxu0 %v1210_v48 }
 0x6d9   :  { %4931 = vmatprep.subr.bf16.mxu0 %v5248_v45  ;;  %4954 = vmatpush3.bf16.msra.mxu1 %v5251_v15 }
 0x6da   :  { %1925 = vadd.xlane.f32.xlu1 %v1894_v47  ;;  %4955 = vmatprep.subr.bf16.mxu1 %v5252_v14 }
 0x6dc   :  { %4932 = vmatpush3.bf16.msra.mxu0 %v5248_v45 }
 0x6dd   :  { %4956 = vmatpush3.bf16.msra.mxu1 %v5252_v14 }
 0x6de   :  { %4957 = vmatprep.subr.bf16.mxu1 %v5253_v27 }
 0x6e1   :  { %4958 = vmatpush3.bf16.msra.mxu1 %v5253_v27 }
 0x742   :  { %v1896_v37 = vpop.xlane.xlu0 %1895 }
 0x743   :  { %v1927_v12 = vmul.f32 0.0078125, %v1896_v37  ;;  %v6952_v37 = vld [vmem:[#allocation19] ss:$0 sm:$0xff] }
 0x745   :  { %v1943_v23 = vadd.f32 1e-05, %v1927_v12 }
 0x746   :  { %v1900_v6 = vpop.xlane.xlu0 %1899  ;;  %v1898_v8 = vpop.xlane.xlu1 %1897 }
 0x747   :  { %5369 = vrsqrt.f32 %v1943_v23  ;;  %v1929_v32 = vmul.f32 0.0078125, %v1900_v6  ;;  %v1928_v59 = vmul.f32 0.0078125, %v1898_v8 }
 0x749   :  { %v1945_v57 = vadd.f32 1e-05, %v1929_v32  ;;  %v1944_v25 = vadd.f32 1e-05, %v1928_v59 }
 0x74a   :  { %v1902_v41 = vpop.xlane.xlu1 %1901 }
 0x74b   :  { %5371 = vrsqrt.f32 %v1945_v57  ;;  %v1904_v24 = vpop.xlane.xlu0 %1903  ;;  %v1930_v46 = vmul.f32 0.0078125, %v1902_v41 }
 0x74c   :  { %5373 = vrsqrt.f32 %v1944_v25  ;;  %v1931_v28 = vmul.f32 0.0078125, %v1904_v24 }
 0x74d   :  { %v1946_v42 = vadd.f32 1e-05, %v1930_v46  ;;  %v6957_v46 = vld [vmem:[#allocation20] ss:$0 sm:$0xff] }
 0x74e   :  { %v1947_v13 = vadd.f32 1e-05, %v1931_v28 }
 0x74f   :  { %5375 = vrsqrt.f32 %v1946_v42  ;;  %v1908_v17 = vpop.xlane.xlu0 %1907  ;;  %v1906_v0 = vpop.xlane.xlu1 %1905 }
 0x750   :  { %5377 = vrsqrt.f32 %v1947_v13  ;;  %v1933_v52 = vmul.f32 0.0078125, %v1908_v17  ;;  %v1932_v50 = vmul.f32 0.0078125, %v1906_v0 }
 0x752   :  { %v1949_v47 = vadd.f32 1e-05, %v1933_v52  ;;  %v1948_v34 = vadd.f32 1e-05, %v1932_v50 }
 0x753   :  { %v1912_v40 = vpop.xlane.xlu0 %1911  ;;  %v1910_v56 = vpop.xlane.xlu1 %1909 }
 0x754   :  { %v5370_v9 = vpop.eup %5369  ;;  %5379 = vrsqrt.f32 %v1949_v47  ;;  %v1935_v48 = vmul.f32 0.0078125, %v1912_v40  ;;  %v1934_v45 = vmul.f32 0.0078125, %v1910_v56 }
 0x755   :  { %5381 = vrsqrt.f32 %v1948_v34  ;;  %v1975_v15 = vmul.f32 %v5370_v9, %v6866_v20 }
 0x756   :  { %v1951_v5 = vadd.f32 1e-05, %v1935_v48  ;;  %v1950_v55 = vadd.f32 1e-05, %v1934_v45 }
 0x757   :  { %v1916_v14 = vpop.xlane.xlu0 %1915  ;;  %v1914_v27 = vpop.xlane.xlu1 %1913  ;;  %v1998_v41 = vmul.f32 %v6952_v37, %v1975_v15 }
 0x758   :  { %v5372_v12 = vpop.eup %5371  ;;  %5383 = vrsqrt.f32 %v1951_v5  ;;  %v1937_v23 = vmul.f32 0.0078125, %v1916_v14  ;;  %v1936_v6 = vmul.f32 0.0078125, %v1914_v27 }
 0x759   :  { %v5374_v8 = vpop.eup %5373  ;;  %v1977_v32 = vmul.f32 %v5372_v12, %v6871_v44  ;;  %5385 = vrsqrt.f32 %v1950_v55  ;;  %v6963_v47 = vadd.f32 %v6957_v46, %v1998_v41 }
 0x75a   :  { %v1953_v59 = vadd.f32 1e-05, %v1937_v23  ;;  %v1952_v57 = vadd.f32 1e-05, %v1936_v6  ;;  %v1976_v25 = vmul.f32 %v5374_v8, %v6874_v1 }
 0x75b   :  { %v1920_v24 = vpop.xlane.xlu0 %1919  ;;  %v1918_v20 = vpop.xlane.xlu1 %1917  ;;  %v2000_v52 = vmul.f32 %v6952_v37, %v1977_v32 }
 0x75c   :  { %v5376_v28 = vpop.eup %5375  ;;  %5387 = vrsqrt.f32 %v1953_v59  ;;  %v1939_v42 = vmul.f32 0.0078125, %v1920_v24  ;;  %v1938_v13 = vmul.f32 0.0078125, %v1918_v20  ;;  %v1999_v17 = vmul.f32 %v6952_v37, %v1976_v25 }
 0x75d   :  { %v5378_v0 = vpop.eup %5377  ;;  %v1978_v44 = vmul.f32 %v5376_v28, %v6881_v18  ;;  %5389 = vrsqrt.f32 %v1952_v57  ;;  %v6973_v15 = vadd.f32 %v6957_v46, %v2000_v52 }
 0x75e   :  { %v1955_v50 = vadd.f32 1e-05, %v1939_v42  ;;  %v1954_v1 = vadd.f32 1e-05, %v1938_v13  ;;  %v6966_v34 = vadd.f32 %v6957_v46, %v1999_v17  ;;  %v1979_v48 = vmul.f32 %v5378_v0, %v6884_v11 }
 0x75f   :  { %v1924_v40 = vpop.xlane.xlu0 %1923  ;;  %v1922_v56 = vpop.xlane.xlu1 %1921  ;;  %v2001_v9 = vmul.f32 %v6952_v37, %v1978_v44 }
 0x760   :  { %5391 = vrsqrt.f32 %v1955_v50  ;;  %v1941_v45 = vmul.f32 0.0078125, %v1924_v40  ;;  %v1940_v18 = vmul.f32 0.0078125, %v1922_v56  ;;  %v2037_v5 = vpack.c.bf16 %v6966_v34, %v6963_v47 }
 0x761   :  { %v5380_v55 = vpop.eup %5379  ;;  %5393 = vrsqrt.f32 %v1954_v1  ;;  %v6976_v14 = vadd.f32 %v6957_v46, %v2001_v9  ;;  %v2002_v32 = vmul.f32 %v6952_v37, %v1979_v48 }
 0x762   :  { %v5382_v27 = vpop.eup %5381  ;;  %v1957_v12 = vadd.f32 1e-05, %v1941_v45  ;;  %v1956_v23 = vadd.f32 1e-05, %v1940_v18  ;;  %4933 = vmatprep.mubr.bf16.mxu0 %v2037_v5  ;;  %v1981_v59 = vmul.f32 %v5380_v55, %v6891_v22 }
 0x763   :  { %v1926_v6 = vpop.xlane.xlu1 %1925  ;;  %v2038_v11 = vpack.c.bf16 %v6976_v14, %v6973_v15  ;;  %v1980_v8 = vmul.f32 %v5382_v27, %v6894_v51  ;;  %v6986_v42 = vadd.f32 %v6957_v46, %v2002_v32 }
 0x764   :  { %5395 = vrsqrt.f32 %v1957_v12  ;;  %v1942_v57 = vmul.f32 0.0078125, %v1926_v6  ;;  %v2004_v22 = vmul.f32 %v6952_v37, %v1981_v59 }
 0x765   :  { %v5384_v25 = vpop.eup %5383  ;;  %5397 = vrsqrt.f32 %v1956_v23  ;;  %4934 = vmatmul.mubr.bf16.vlgmr.msra.gmra.mxu0 %v2038_v11  ;;  %v2003_v41 = vmul.f32 %v6952_v37, %v1980_v8 }
 0x766   :  { %v5386_v24 = vpop.eup %5385  ;;  %v1958_v20 = vadd.f32 1e-05, %v1942_v57  ;;  %v1983_v28 = vmul.f32 %v5384_v25, %v6901_v63  ;;  %v6998_v50 = vadd.f32 %v6957_v46, %v2004_v22 }
 0x767   :  { %v6989_v51 = vadd.f32 %v6957_v46, %v2003_v41  ;;  %v1982_v13 = vmul.f32 %v5386_v24, %v6904_v16 }
 0x768   :  { %5399 = vrsqrt.f32 %v1958_v20  ;;  %v2006_v63 = vmul.f32 %v6952_v37, %v1983_v28 }
 0x769   :  { %v5388_v17 = vpop.eup %5387  ;;  %v2039_v0 = vpack.c.bf16 %v6989_v51, %v6986_v42  ;;  %v2005_v44 = vmul.f32 %v6952_v37, %v1982_v13 }
 0x76a   :  { %v5390_v52 = vpop.eup %5389  ;;  %v1985_v40 = vmul.f32 %v5388_v17, %v6911_v49  ;;  %v7009_v18 = vadd.f32 %v6957_v46, %v2006_v63  ;;  %v7943_v17 = vmov 0  }
 0x76b   :  { %4937 = vmatprep.mubr.bf16.mxu0 %v2039_v0  ;;  %v7001_v1 = vadd.f32 %v6957_v46, %v2005_v44  ;;  %v1984_v16 = vmul.f32 %v5390_v52, %v6914_v61  ;;  %v5254_v0 = vld [vmem:[#allocation25 + $0x10] sm:$0xff]   ;;  %v5255_v44 = vld [vmem:[#allocation25 + $0x8] sm:$0xff]   ;;  %v5256_v52 = vld [vmem:[#allocation25] sm:$0xff]  }
 0x76c   :  { %v2008_v61 = vmul.f32 %v6952_v37, %v1985_v40  ;;  %4959 = vmatprep.subr.bf16.mxu1 %v5254_v0  ;;  %v4418_v40 = vld [vmem:[#allocation23] ss:$0 sm:$0xff] }
 0x76d   :  { %v5392_v56 = vpop.eup %5391  ;;  %v2040_v9 = vpack.c.bf16 %v7001_v1, %v6998_v50  ;;  %v2007_v48 = vmul.f32 %v6952_v37, %v1984_v16  ;;  %4960 = vmatpush3.bf16.msra.mxu1 %v5254_v0 }
 0x76e   :  { %v5394_v45 = vpop.eup %5393  ;;  %v1987_v49 = vmul.f32 %v5392_v56, %v6921_v53  ;;  %v7022_v8 = vadd.f32 %v6957_v46, %v2008_v61  ;;  %4961 = vmatprep.subr.bf16.mxu1 %v5255_v44 }
 0x76f   :  { %4938 = vmatmul.mubr.bf16.gmra.mxu0 %v2040_v9  ;;  %v7012_v5 = vadd.f32 %v6957_v46, %v2007_v48  ;;  %v1986_v55 = vmul.f32 %v5394_v45, %v6924_v21 }
 0x770   :  { %v2010_v53 = vmul.f32 %v6952_v37, %v1987_v49 }
 0x771   :  { %v5396_v27 = vpop.eup %5395  ;;  %v2041_v12 = vpack.c.bf16 %v7012_v5, %v7009_v18  ;;  %v2009_v23 = vmul.f32 %v6952_v37, %v1986_v55  ;;  %4962 = vmatpush3.bf16.msra.mxu1 %v5255_v44 }
 0x772   :  { %v5398_v6 = vpop.eup %5397  ;;  %v1989_v11 = vmul.f32 %v5396_v27, %v6931_v43  ;;  %v7035_v24 = vadd.f32 %v6957_v46, %v2010_v53  ;;  %4963 = vmatprep.subr.bf16.mxu1 %v5256_v52 }
 0x773   :  { %4941 = vmatprep.mubr.bf16.mxu0 %v2041_v12  ;;  %v7025_v32 = vadd.f32 %v6957_v46, %v2009_v23  ;;  %v1988_v21 = vmul.f32 %v5398_v6, %v6934_v29 }
 0x774   :  { %v2012_v43 = vmul.f32 %v6952_v37, %v1989_v11 }
 0x775   :  { %v5400_v59 = vpop.eup %5399  ;;  %v2042_v57 = vpack.c.bf16 %v7025_v32, %v7022_v8  ;;  %v2011_v25 = vmul.f32 %v6952_v37, %v1988_v21  ;;  %4964 = vmatpush3.bf16.msra.mxu1 %v5256_v52 }
 0x776   :  { %v1990_v41 = vmul.f32 %v5400_v59, %v6941_v3  ;;  %v7044_v13 = vadd.f32 %v6957_v46, %v2012_v43 }
 0x777   :  { %4942 = vmatmul.mubr.bf16.gmra.mxu0 %v2042_v57  ;;  %v7038_v20 = vadd.f32 %v6957_v46, %v2011_v25 }
 0x778   :  { %v2013_v29 = vmul.f32 %v6952_v37, %v1990_v41 }
 0x779   :  { %v2043_v28 = vpack.c.bf16 %v7038_v20, %v7035_v24 }
 0x77a   :  { %v7047_v22 = vadd.f32 %v6957_v46, %v2013_v29 }
 0x77b   :  { %4945 = vmatprep.mubr.bf16.mxu0 %v2043_v28 }
 0x77c   :  { %v2044_v3 = vpack.c.bf16 %v7047_v22, %v7044_v13 }
 0x77f   :  { %4946 = vmatmul.mubr.bf16.gmra.mxu0 %v2044_v3 }
 0x780   :  { %2777 = vmatprep.mubr.bf16.mxu0 %v7943_v17 }
 0x825   :  { %v4935_v63 = vpop.f32.mrf.mxu0 }
 0x826   :  { %v2159_v45 = vadd.f32 %v4935_v63, %v4418_v40 }
 0x827   :  { %v2150_v16 = vpop.f32.mrf.mxu0 }
 0x828   :  { %v2151_v9 = vadd.f32 %v4418_v40, %v2150_v16  ;;  %v2215_v23 = vmax.f32 %v2159_v45, 0.0 }
 0x829   :  { %v4936_v56 = vpop.f32.mrf.mxu0 }
 0x82a   :  { %v2162_v48 = vadd.f32 %v4936_v56, %v4418_v40  ;;  %v2213_v27 = vmax.f32 %v2151_v9, 0.0 }
 0x82b   :  { %v2153_v55 = vpop.f32.mrf.mxu0 }
 0x82c   :  { %v2154_v61 = vadd.f32 %v4418_v40, %v2153_v55  ;;  %v2216_v49 = vmax.f32 %v2162_v48, 0.0 }
 0x82e   :  { %v2214_v12 = vmax.f32 %v2154_v61, 0.0  ;;  %v2230_v21 = vpack.c.bf16 %v2216_v49, %v2215_v23 }
 0x82f   :  { %v4939_v6 = vpop.f32.mrf.mxu0 }
 0x830   :  { %v2229_v11 = vpack.c.bf16 %v2214_v12, %v2213_v27  ;;  %v2175_v41 = vadd.f32 %v4939_v6, %v4418_v40 }
 0x831   :  { %v2166_v53 = vpop.f32.mrf.mxu0 }
 0x832   :  { %4965 = vmatprep.mubr.bf16.mxu1 %v2229_v11  ;;  %v2167_v57 = vadd.f32 %v4418_v40, %v2166_v53  ;;  %v2219_v52 = vmax.f32 %v2175_v41, 0.0 }
 0x833   :  { %v4940_v59 = vpop.f32.mrf.mxu0  ;;  %4966 = vmatmul.mubr.bf16.vlgmr.msra.gmra.mxu1 %v2230_v21 }
 0x834   :  { %v2178_v25 = vadd.f32 %v4940_v59, %v4418_v40  ;;  %v2217_v0 = vmax.f32 %v2167_v57, 0.0 }
 0x835   :  { %v2169_v43 = vpop.f32.mrf.mxu0 }
 0x836   :  { %v2170_v29 = vadd.f32 %v4418_v40, %v2169_v43  ;;  %v2220_v28 = vmax.f32 %v2178_v25, 0.0 }
 0x837   :  { %v4943_v3 = vpop.f32.mrf.mxu0 }
 0x838   :  { %v2218_v44 = vmax.f32 %v2170_v29, 0.0  ;;  %v2232_v56 = vpack.c.bf16 %v2220_v28, %v2219_v52  ;;  %v2191_v55 = vadd.f32 %v4943_v3, %v4418_v40 }
 0x839   :  { %v2182_v63 = vpop.f32.mrf.mxu0 }
 0x83a   :  { %v2231_v16 = vpack.c.bf16 %v2218_v44, %v2217_v0  ;;  %v2183_v48 = vadd.f32 %v4418_v40, %v2182_v63  ;;  %v2223_v11 = vmax.f32 %v2191_v55, 0.0 }
 0x83b   :  { %v4944_v9 = vpop.f32.mrf.mxu0 }
 0x83c   :  { %v2194_v45 = vadd.f32 %v4944_v9, %v4418_v40  ;;  %4969 = vmatprep.mubr.bf16.mxu1 %v2231_v16  ;;  %v2221_v23 = vmax.f32 %v2183_v48, 0.0  ;;  %v4427_v48 = vld [vmem:[#allocation26] ss:$0 sm:$0xff] }
 0x83d   :  { %v2185_v61 = vpop.f32.mrf.mxu0  ;;  %4970 = vmatmul.mubr.bf16.gmra.mxu1 %v2232_v56  ;;  %v7944_v56 = vpack.c.bf16 %v6531_v4, %v6526_v2 }
 0x83e   :  { %v2186_v49 = vadd.f32 %v4418_v40, %v2185_v61  ;;  %v2224_v27 = vmax.f32 %v2194_v45, 0.0 }
 0x83f   :  { %v4947_v12 = vpop.f32.mrf.mxu0 }
 0x840   :  { %v2222_v6 = vmax.f32 %v2186_v49, 0.0  ;;  %v2234_v59 = vpack.c.bf16 %v2224_v27, %v2223_v11  ;;  %v2207_v43 = vadd.f32 %v4947_v12, %v4418_v40 }
 0x841   :  { %v2198_v21 = vpop.f32.mrf.mxu0 }
 0x842   :  { %v2233_v53 = vpack.c.bf16 %v2222_v6, %v2221_v23  ;;  %v2199_v25 = vadd.f32 %v4418_v40, %v2198_v21  ;;  %v2227_v52 = vmax.f32 %v2207_v43, 0.0 }
 0x843   :  { %v4948_v57 = vpop.f32.mrf.mxu0 }
 0x844   :  { %v2210_v41 = vadd.f32 %v4948_v57, %v4418_v40  ;;  %4973 = vmatprep.mubr.bf16.mxu1 %v2233_v53  ;;  %v2225_v0 = vmax.f32 %v2199_v25, 0.0 }
 0x845   :  { %v2201_v29 = vpop.f32.mrf.mxu0  ;;  %4974 = vmatmul.mubr.bf16.gmra.mxu1 %v2234_v59 }
 0x846   :  { %v2202_v28 = vadd.f32 %v4418_v40, %v2201_v29  ;;  %v2228_v3 = vmax.f32 %v2210_v41, 0.0 }
 0x848   :  { %v2226_v44 = vmax.f32 %v2202_v28, 0.0  ;;  %v2236_v16 = vpack.c.bf16 %v2228_v3, %v2227_v52 }
 0x84a   :  { %v2235_v63 = vpack.c.bf16 %v2226_v44, %v2225_v0 }
 0x84c   :  { %4977 = vmatprep.mubr.bf16.mxu1 %v2235_v63 }
 0x84d   :  { %4978 = vmatmul.mubr.bf16.gmra.mxu1 %v2236_v16 }
 0x84e   :  { %4997 = vmatprep.mubr.bf16.mxu1 %v7944_v56 }
 0x8f3   :  { %v4967_v9 = vpop.f32.mrf.mxu1 }
 0x8f4   :  { %v2351_v49 = vadd.f32 %v4967_v9, %v4427_v48 }
 0x8f5   :  { %v2342_v45 = vpop.f32.mrf.mxu1 }
 0x8f6   :  { %v2343_v55 = vadd.f32 %v4427_v48, %v2342_v45  ;;  %v7063_v2 = vadd.f32 %v2351_v49, %v6973_v15 }
 0x8f7   :  { %v4968_v61 = vpop.f32.mrf.mxu1 }
 0x8f8   :  { %v7056_v40 = vadd.f32 %v2343_v55, %v6963_v47  ;;  %v2354_v23 = vadd.f32 %v4968_v61, %v4427_v48 }
 0x8f9   :  { %v2345_v27 = vpop.f32.mrf.mxu1 }
 0x8fa   :  { %v2346_v12 = vadd.f32 %v4427_v48, %v2345_v27  ;;  %2421 = vadd.xlane.f32.xlu0 %v7056_v40  ;;  %v7068_v47 = vadd.f32 %v2354_v23, %v6976_v14  ;;  %v5259_v23 = vld [vmem:[#allocation28 + $0x74] ss:$8 sps:$4 sm:$0xff]  }
 0x8fb   :  { %2745 = vmatprep.subr.bf16.mxu0 %v5259_v23 }
 0x8fc   :  { %v7060_v6 = vadd.f32 %v2346_v12, %v6966_v34 }
 0x8fd   :  { %v4971_v4 = vpop.f32.mrf.mxu1 }
 0x8fe   :  { %2423 = vadd.xlane.f32.xlu1 %v7060_v6  ;;  %2425 = vadd.xlane.f32.xlu0 %v7063_v2  ;;  %v2367_v59 = vadd.f32 %v4971_v4, %v4427_v48 }
 0x8ff   :  { %v2358_v11 = vpop.f32.mrf.mxu1 }
 0x900   :  { %v2359_v21 = vadd.f32 %v4427_v48, %v2358_v11  ;;  %v7079_v29 = vadd.f32 %v2367_v59, %v6998_v50 }
 0x901   :  { %v4972_v53 = vpop.f32.mrf.mxu1 }
 0x902   :  { %2427 = vadd.xlane.f32.xlu1 %v7068_v47  ;;  %v7072_v34 = vadd.f32 %v2359_v21, %v6986_v42  ;;  %v2370_v41 = vadd.f32 %v4972_v53, %v4427_v48 }
 0x903   :  { %v2361_v57 = vpop.f32.mrf.mxu1 }
 0x904   :  { %v2362_v15 = vadd.f32 %v4427_v48, %v2361_v57  ;;  %2429 = vadd.xlane.f32.xlu0 %v7072_v34  ;;  %v7084_v0 = vadd.f32 %v2370_v41, %v7001_v1 }
 0x905   :  { %v4975_v25 = vpop.f32.mrf.mxu1 }
 0x906   :  { %v7076_v43 = vadd.f32 %v2362_v15, %v6989_v51  ;;  %v2383_v3 = vadd.f32 %v4975_v25, %v4427_v48 }
 0x907   :  { %v2374_v14 = vpop.f32.mrf.mxu1 }
 0x908   :  { %v2375_v28 = vadd.f32 %v4427_v48, %v2374_v14  ;;  %2431 = vadd.xlane.f32.xlu1 %v7076_v43  ;;  %2433 = vadd.xlane.f32.xlu0 %v7079_v29  ;;  %v7095_v56 = vadd.f32 %v2383_v3, %v7022_v8 }
 0x909   :  { %v4976_v42 = vpop.f32.mrf.mxu1 }
 0x90a   :  { %v7087_v44 = vadd.f32 %v2375_v28, %v7009_v18  ;;  %v2386_v63 = vadd.f32 %v4976_v42, %v4427_v48 }
 0x90b   :  { %v2377_v52 = vpop.f32.mrf.mxu1 }
 0x90c   :  { %v2378_v51 = vadd.f32 %v4427_v48, %v2377_v52  ;;  %2435 = vadd.xlane.f32.xlu1 %v7084_v0  ;;  %2437 = vadd.xlane.f32.xlu0 %v7087_v44  ;;  %v7100_v55 = vadd.f32 %v2386_v63, %v7025_v32 }
 0x90d   :  { %v4979_v50 = vpop.f32.mrf.mxu1 }
 0x90e   :  { %v7092_v16 = vadd.f32 %v2378_v51, %v7012_v5  ;;  %v2399_v45 = vadd.f32 %v4979_v50, %v4427_v48 }
 0x90f   :  { %v2390_v9 = vpop.f32.mrf.mxu1 }
 0x910   :  { %v2391_v1 = vadd.f32 %v4427_v48, %v2390_v9  ;;  %2439 = vadd.xlane.f32.xlu1 %v7092_v16  ;;  %2441 = vadd.xlane.f32.xlu0 %v7095_v56  ;;  %v7111_v12 = vadd.f32 %v2399_v45, %v7044_v13 }
 0x911   :  { %v4980_v18 = vpop.f32.mrf.mxu1 }
 0x912   :  { %v7103_v61 = vadd.f32 %v2391_v1, %v7035_v24  ;;  %v2402_v8 = vadd.f32 %v4980_v18, %v4427_v48  ;;  %v5257_v24 = vld [vmem:[#allocation28 + $0x70] ss:$8 sps:$4 sm:$0xff]  }
 0x913   :  { %v2393_v49 = vpop.f32.mrf.mxu1  ;;  %2746 = vmatpush1.bf16.msra.mxu0 %v5257_v24  ;;  %v5260_v24 = vld [vmem:[#allocation28 + $0x60] ss:$8 sps:$4 sm:$0xff]  }
 0x914   :  { %v2394_v5 = vadd.f32 %v4427_v48, %v2393_v49  ;;  %2443 = vadd.xlane.f32.xlu1 %v7100_v55  ;;  %2445 = vadd.xlane.f32.xlu0 %v7103_v61  ;;  %v7116_v32 = vadd.f32 %v2402_v8, %v7047_v22  ;;  %v5262_v8 = vld [vmem:[#allocation28 + $0x64] ss:$8 sps:$4 sm:$0xff]  }
 0x915   :  { %2747 = vmatprep.subr.bf16.mxu0 %v5262_v8 }
 0x916   :  { %v7108_v27 = vadd.f32 %v2394_v5, %v7038_v20 }
 0x917   :  { %2748 = vmatpush1.bf16.msra.mxu0 %v5260_v24 }
 0x918   :  { %2447 = vadd.xlane.f32.xlu1 %v7108_v27  ;;  %2449 = vadd.xlane.f32.xlu0 %v7111_v12 }
 0x91c   :  { %2451 = vadd.xlane.f32.xlu1 %v7116_v32 }
 0x983   :  { %v2422_v48 = vpop.xlane.xlu0 %2421 }
 0x984   :  { %v2453_v4 = vmul.f32 0.0078125, %v2422_v48 }
 0x986   :  { %v7120_v20 = vsub.f32 %v7056_v40, %v2453_v4 }
 0x987   :  { %v2426_v13 = vpop.xlane.xlu0 %2425  ;;  %v2424_v11 = vpop.xlane.xlu1 %2423 }
 0x988   :  { %v2455_v21 = vmul.f32 0.0078125, %v2426_v13  ;;  %v2454_v53 = vmul.f32 0.0078125, %v2424_v11  ;;  %v2485_v59 = vmul.f32 %v7120_v20, %v7120_v20 }
 0x98a   :  { %2501 = vadd.xlane.f32.xlu0 %v2485_v59  ;;  %v7125_v22 = vsub.f32 %v7063_v2, %v2455_v21  ;;  %v7128_v57 = vsub.f32 %v7060_v6, %v2454_v53  ;;  %v5265_v53 = vld [vmem:[#allocation28 + $0x54] ss:$8 sps:$4 sm:$0xff]   ;;  %v5263_v59 = vld [vmem:[#allocation28 + $0x50] ss:$8 sps:$4 sm:$0xff]  }
 0x98b   :  { %v2428_v15 = vpop.xlane.xlu1 %2427  ;;  %2749 = vmatprep.subr.bf16.mxu0 %v5265_v53 }
 0x98c   :  { %v2456_v25 = vmul.f32 0.0078125, %v2428_v15  ;;  %v2487_v40 = vmul.f32 %v7125_v22, %v7125_v22  ;;  %v2486_v41 = vmul.f32 %v7128_v57, %v7128_v57  ;;  %2750 = vmatpush1.bf16.msra.mxu0 %v5263_v59 }
 0x98d   :  { %v2430_v14 = vpop.xlane.xlu0 %2429 }
 0x98e   :  { %v2457_v28 = vmul.f32 0.0078125, %v2430_v14  ;;  %2505 = vadd.xlane.f32.xlu0 %v2487_v40  ;;  %2503 = vadd.xlane.f32.xlu1 %v2486_v41  ;;  %v7135_v42 = vsub.f32 %v7068_v47, %v2456_v25 }
 0x990   :  { %v7138_v2 = vsub.f32 %v7072_v34, %v2457_v28  ;;  %v2488_v6 = vmul.f32 %v7135_v42, %v7135_v42 }
 0x991   :  { %v2434_v3 = vpop.xlane.xlu0 %2433  ;;  %v2432_v52 = vpop.xlane.xlu1 %2431 }
 0x992   :  { %v2459_v51 = vmul.f32 0.0078125, %v2434_v3  ;;  %v2458_v50 = vmul.f32 0.0078125, %v2432_v52  ;;  %v2489_v63 = vmul.f32 %v7138_v2, %v7138_v2  ;;  %2507 = vadd.xlane.f32.xlu1 %v2488_v6  ;;  %v5268_v6 = vld [vmem:[#allocation28 + $0x44] ss:$8 sps:$4 sm:$0xff]   ;;  %v5266_v3 = vld [vmem:[#allocation28 + $0x40] ss:$8 sps:$4 sm:$0xff]  }
 0x993   :  { %2751 = vmatprep.subr.bf16.mxu0 %v5268_v6 }
 0x994   :  { %2509 = vadd.xlane.f32.xlu0 %v2489_v63  ;;  %v7145_v9 = vsub.f32 %v7079_v29, %v2459_v51  ;;  %v7148_v47 = vsub.f32 %v7076_v43, %v2458_v50  ;;  %2752 = vmatpush1.bf16.msra.mxu0 %v5266_v3 }
 0x995   :  { %v2438_v34 = vpop.xlane.xlu0 %2437  ;;  %v2436_v1 = vpop.xlane.xlu1 %2435 }
 0x996   :  { %v2461_v18 = vmul.f32 0.0078125, %v2438_v34  ;;  %v2460_v45 = vmul.f32 0.0078125, %v2436_v1  ;;  %v2491_v49 = vmul.f32 %v7145_v9, %v7145_v9  ;;  %v2490_v5 = vmul.f32 %v7148_v47, %v7148_v47 }
 0x998   :  { %2513 = vadd.xlane.f32.xlu0 %v2491_v49  ;;  %2511 = vadd.xlane.f32.xlu1 %v2490_v5  ;;  %v7155_v29 = vsub.f32 %v7087_v44, %v2461_v18  ;;  %v7158_v43 = vsub.f32 %v7084_v0, %v2460_v45  ;;  %v5271_v18 = vld [vmem:[#allocation28 + $0x34] ss:$8 sps:$4 sm:$0xff]   ;;  %v5269_v45 = vld [vmem:[#allocation28 + $0x30] ss:$8 sps:$4 sm:$0xff]  }
 0x999   :  { %v2442_v23 = vpop.xlane.xlu0 %2441  ;;  %v2440_v48 = vpop.xlane.xlu1 %2439  ;;  %2753 = vmatprep.subr.bf16.mxu0 %v5271_v18 }
 0x99a   :  { %v2463_v4 = vmul.f32 0.0078125, %v2442_v23  ;;  %v2462_v13 = vmul.f32 0.0078125, %v2440_v48  ;;  %v2493_v11 = vmul.f32 %v7155_v29, %v7155_v29  ;;  %v2492_v21 = vmul.f32 %v7158_v43, %v7158_v43  ;;  %2754 = vmatpush1.bf16.msra.mxu0 %v5269_v45  ;;  %v5274_v23 = vld [vmem:[#allocation28 + $0x24] ss:$8 sps:$4 sm:$0xff]   ;;  %v5272_v48 = vld [vmem:[#allocation28 + $0x20] ss:$8 sps:$4 sm:$0xff]  }
 0x99b   :  { %2755 = vmatprep.subr.bf16.mxu0 %v5274_v23 }
 0x99c   :  { %2517 = vadd.xlane.f32.xlu0 %v2493_v11  ;;  %2515 = vadd.xlane.f32.xlu1 %v2492_v21  ;;  %v7165_v44 = vsub.f32 %v7095_v56, %v2463_v4  ;;  %v7168_v0 = vsub.f32 %v7092_v16, %v2462_v13  ;;  %v5277_v4 = vld [vmem:[#allocation28 + $0x14] ss:$8 sps:$4 sm:$0xff]   ;;  %v5275_v13 = vld [vmem:[#allocation28 + $0x10] ss:$8 sps:$4 sm:$0xff]   ;;  %v5280_v11 = vld [vmem:[#allocation28 + $0x4] ss:$8 sps:$4 sm:$0xff]  }
 0x99d   :  { %v2446_v15 = vpop.xlane.xlu0 %2445  ;;  %v2444_v25 = vpop.xlane.xlu1 %2443  ;;  %v5278_v21 = vld [vmem:[#allocation28] ss:$8 sps:$4 sm:$0xff]  }
 0x99e   :  { %v2465_v40 = vmul.f32 0.0078125, %v2446_v15  ;;  %v2464_v41 = vmul.f32 0.0078125, %v2444_v25  ;;  %v2495_v14 = vmul.f32 %v7165_v44, %v7165_v44  ;;  %v2494_v28 = vmul.f32 %v7168_v0, %v7168_v0  ;;  %2756 = vmatpush1.bf16.msra.mxu0 %v5272_v48 }
 0x99f   :  { %2757 = vmatprep.subr.bf16.mxu0 %v5277_v4 }
 0x9a0   :  { %2521 = vadd.xlane.f32.xlu0 %v2495_v14  ;;  %2519 = vadd.xlane.f32.xlu1 %v2494_v28  ;;  %v7175_v56 = vsub.f32 %v7103_v61, %v2465_v40  ;;  %v7178_v16 = vsub.f32 %v7100_v55, %v2464_v41 }
 0x9a1   :  { %v2450_v52 = vpop.xlane.xlu0 %2449  ;;  %v2448_v51 = vpop.xlane.xlu1 %2447 }
 0x9a2   :  { %v2467_v50 = vmul.f32 0.0078125, %v2450_v52  ;;  %v2466_v63 = vmul.f32 0.0078125, %v2448_v51  ;;  %v2497_v34 = vmul.f32 %v7175_v56, %v7175_v56  ;;  %v2496_v1 = vmul.f32 %v7178_v16, %v7178_v16  ;;  %2758 = vmatpush1.bf16.msra.mxu0 %v5275_v13 }
 0x9a3   :  { %2759 = vmatprep.subr.bf16.mxu0 %v5280_v11 }
 0x9a4   :  { %2525 = vadd.xlane.f32.xlu0 %v2497_v34  ;;  %2523 = vadd.xlane.f32.xlu1 %v2496_v1  ;;  %v7185_v61 = vsub.f32 %v7111_v12, %v2467_v50  ;;  %v7188_v55 = vsub.f32 %v7108_v27, %v2466_v63 }
 0x9a5   :  { %v2452_v49 = vpop.xlane.xlu1 %2451 }
 0x9a6   :  { %v2468_v5 = vmul.f32 0.0078125, %v2452_v49  ;;  %v2499_v8 = vmul.f32 %v7185_v61, %v7185_v61  ;;  %v2498_v24 = vmul.f32 %v7188_v55, %v7188_v55  ;;  %2760 = vmatpush1.bf16.msra.mxu0 %v5278_v21 }
 0x9a8   :  { %2529 = vadd.xlane.f32.xlu0 %v2499_v8  ;;  %2527 = vadd.xlane.f32.xlu1 %v2498_v24  ;;  %v7195_v12 = vsub.f32 %v7116_v32, %v2468_v5 }
 0x9aa   :  { %v2500_v27 = vmul.f32 %v7195_v12, %v7195_v12 }
 0x9ac   :  { %2531 = vadd.xlane.f32.xlu1 %v2500_v27 }
 0xa13   :  { %v2502_v53 = vpop.xlane.xlu0 %2501 }
 0xa14   :  { %v2533_v59 = vmul.f32 0.0078125, %v2502_v53 }
 0xa16   :  { %v2549_v15 = vadd.f32 1e-05, %v2533_v59 }
 0xa17   :  { %v2506_v32 = vpop.xlane.xlu0 %2505  ;;  %v2504_v25 = vpop.xlane.xlu1 %2503 }
 0xa18   :  { %5401 = vrsqrt.f32 %v2549_v15  ;;  %v2535_v40 = vmul.f32 0.0078125, %v2506_v32  ;;  %v2534_v41 = vmul.f32 0.0078125, %v2504_v25 }
 0xa1a   :  { %v2550_v14 = vadd.f32 1e-05, %v2534_v41  ;;  %v2551_v28 = vadd.f32 1e-05, %v2535_v40 }
 0xa1b   :  { %v2508_v6 = vpop.xlane.xlu1 %2507 }
 0xa1c   :  { %v2536_v3 = vmul.f32 0.0078125, %v2508_v6  ;;  %5403 = vrsqrt.f32 %v2550_v14 }
 0xa1d   :  { %v2510_v52 = vpop.xlane.xlu0 %2509  ;;  %5405 = vrsqrt.f32 %v2551_v28 }
 0xa1e   :  { %v2537_v51 = vmul.f32 0.0078125, %v2510_v52  ;;  %v2552_v50 = vadd.f32 1e-05, %v2536_v3 }
 0xa20   :  { %5407 = vrsqrt.f32 %v2552_v50  ;;  %v2553_v34 = vadd.f32 1e-05, %v2537_v51 }
 0xa21   :  { %v2512_v63 = vpop.xlane.xlu1 %2511  ;;  %v2514_v18 = vpop.xlane.xlu0 %2513 }
 0xa22   :  { %v2538_v1 = vmul.f32 0.0078125, %v2512_v63  ;;  %5409 = vrsqrt.f32 %v2553_v34  ;;  %v2539_v8 = vmul.f32 0.0078125, %v2514_v18 }
 0xa24   :  { %v2554_v45 = vadd.f32 1e-05, %v2538_v1  ;;  %v2555_v4 = vadd.f32 1e-05, %v2539_v8 }
 0xa25   :  { %v5402_v49 = vpop.eup %5401  ;;  %v2516_v5 = vpop.xlane.xlu1 %2515 }
 0xa26   :  { %v2540_v24 = vmul.f32 0.0078125, %v2516_v5  ;;  %v2581_v23 = vmul.f32 %v5402_v49, %v7120_v20  ;;  %5411 = vrsqrt.f32 %v2554_v45  ;;  %v2518_v59 = vpop.xlane.xlu0 %2517 }
 0xa27   :  { %v2541_v20 = vmul.f32 0.0078125, %v2518_v59 }
 0xa28   :  { %v2556_v48 = vadd.f32 1e-05, %v2540_v24  ;;  %v2597_v21 = vmul.f32 %v6952_v37, %v2581_v23 }
 0xa29   :  { %v5404_v27 = vpop.eup %5403  ;;  %v2520_v13 = vpop.xlane.xlu1 %2519  ;;  %v2557_v50 = vadd.f32 1e-05, %v2541_v20 }
 0xa2a   :  { %v2582_v11 = vmul.f32 %v5404_v27, %v7128_v57  ;;  %v5406_v53 = vpop.eup %5405  ;;  %5413 = vrsqrt.f32 %v2556_v48  ;;  %v2542_v32 = vmul.f32 0.0078125, %v2520_v13  ;;  %v2613_v41 = vadd.f32 %v6957_v46, %v2597_v21  ;;  %v2522_v1 = vpop.xlane.xlu0 %2521 }
 0xa2b   :  { %5415 = vrsqrt.f32 %v2555_v4  ;;  %v2583_v28 = vmul.f32 %v5406_v53, %v7125_v22  ;;  %v2543_v45 = vmul.f32 0.0078125, %v2522_v1 }
 0xa2c   :  { %v2598_v25 = vmul.f32 %v6952_v37, %v2582_v11  ;;  %v2558_v57 = vadd.f32 1e-05, %v2542_v32 }
 0xa2d   :  { %v5408_v15 = vpop.eup %5407  ;;  %v2524_v52 = vpop.xlane.xlu1 %2523  ;;  %v2599_v63 = vmul.f32 %v6952_v37, %v2583_v28  ;;  %v2559_v13 = vadd.f32 1e-05, %v2543_v45 }
 0xa2e   :  { %v2584_v40 = vmul.f32 %v5408_v15, %v7135_v42  ;;  %v2614_v14 = vadd.f32 %v6957_v46, %v2598_v25  ;;  %5417 = vrsqrt.f32 %v2558_v57  ;;  %v2544_v42 = vmul.f32 0.0078125, %v2524_v52  ;;  %v2526_v21 = vpop.xlane.xlu0 %2525 }
 0xa2f   :  { %v5410_v51 = vpop.eup %5409  ;;  %5419 = vrsqrt.f32 %v2557_v50  ;;  %v2615_v49 = vadd.f32 %v6957_v46, %v2599_v63  ;;  %v2545_v59 = vmul.f32 0.0078125, %v2526_v21 }
 0xa30   :  { %v2629_v6 = vpack.c.bf16 %v2614_v14, %v2613_v41  ;;  %v2600_v3 = vmul.f32 %v6952_v37, %v2584_v40  ;;  %v2585_v5 = vmul.f32 %v5410_v51, %v7138_v2  ;;  %v2560_v8 = vadd.f32 1e-05, %v2544_v42 }
 0xa31   :  { %v2528_v27 = vpop.xlane.xlu1 %2527  ;;  %v2561_v28 = vadd.f32 1e-05, %v2545_v59 }
 0xa32   :  { %2778 = vmatmul.mubr.bf16.vlgmr.msra.gmra.mxu0 %v2629_v6  ;;  %v2616_v18 = vadd.f32 %v6957_v46, %v2600_v3  ;;  %v2601_v11 = vmul.f32 %v6952_v37, %v2585_v5  ;;  %5421 = vrsqrt.f32 %v2560_v8  ;;  %v2530_v3 = vpop.xlane.xlu0 %2529 }
 0xa33   :  { %v5412_v34 = vpop.eup %5411  ;;  %2787 = vmatprep.mubr.bf16.mxu0 %v7943_v17  ;;  %5423 = vrsqrt.f32 %v2559_v13  ;;  %v2547_v51 = vmul.f32 0.0078125, %v2530_v3 }
 0xa34   :  { %v2586_v22 = vmul.f32 %v5412_v34, %v7148_v47  ;;  %v2630_v24 = vpack.c.bf16 %v2616_v18, %v2615_v49  ;;  %v2546_v47 = vmul.f32 0.0078125, %v2528_v27  ;;  %v2617_v15 = vadd.f32 %v6957_v46, %v2601_v11 }
 0xa35   :  { %v2532_v14 = vpop.xlane.xlu1 %2531 }
 0xa36   :  { %v2602_v23 = vmul.f32 %v6952_v37, %v2586_v22  ;;  %v2562_v25 = vadd.f32 1e-05, %v2546_v47  ;;  %v2563_v22 = vadd.f32 1e-05, %v2547_v51 }
 0xa37   :  { %v5414_v48 = vpop.eup %5413 }
 0xa38   :  { %v5416_v4 = vpop.eup %5415  ;;  %v2618_v53 = vadd.f32 %v6957_v46, %v2602_v23  ;;  %v2588_v2 = vmul.f32 %v5414_v48, %v7158_v43  ;;  %5425 = vrsqrt.f32 %v2562_v25  ;;  %v2548_v43 = vmul.f32 0.0078125, %v2532_v14 }
 0xa39   :  { %v2587_v32 = vmul.f32 %v5416_v4, %v7145_v9  ;;  %5427 = vrsqrt.f32 %v2561_v28 }
 0xa3a   :  { %2788 = vmatmul.mubr.bf16.gmra.mxu0 %v2630_v24  ;;  %v2631_v40 = vpack.c.bf16 %v2618_v53, %v2617_v15  ;;  %v2604_v20 = vmul.f32 %v6952_v37, %v2588_v2  ;;  %v2564_v34 = vadd.f32 1e-05, %v2548_v43 }
 0xa3b   :  { %2797 = vmatprep.mubr.bf16.mxu0 %v7943_v17  ;;  %v5418_v41 = vpop.eup %5417  ;;  %v2603_v57 = vmul.f32 %v6952_v37, %v2587_v32 }
 0xa3c   :  { %v5420_v6 = vpop.eup %5419  ;;  %v2620_v52 = vadd.f32 %v6957_v46, %v2604_v20  ;;  %v2590_v9 = vmul.f32 %v5418_v41, %v7168_v0  ;;  %5429 = vrsqrt.f32 %v2564_v34 }
 0xa3d   :  { %v2619_v50 = vadd.f32 %v6957_v46, %v2603_v57  ;;  %v2589_v63 = vmul.f32 %v5420_v6, %v7155_v29  ;;  %5431 = vrsqrt.f32 %v2563_v22  ;;  %v2653_v57 = vld [vmem:[#allocation29] sm:$0x3]  ;;  %v7945_v6 = vsub.s32 0, %v6497_v39 }
 0xa3e   :  { %v2606_v42 = vmul.f32 %v6952_v37, %v2590_v9  ;;  %v7260_v43 = vrot.slane %v2653_v57, %v817_v33 }
 0xa3f   :  { %v2632_v1 = vpack.c.bf16 %v2620_v52, %v2619_v50  ;;  %v5422_v18 = vpop.eup %5421  ;;  %v2605_v45 = vmul.f32 %v6952_v37, %v2589_v63  ;;  %v7256_v3 = vrot.slane %v2653_v57, %v7945_v6 }
 0xa40   :  { %v5424_v49 = vpop.eup %5423  ;;  %v2622_v0 = vadd.f32 %v6957_v46, %v2606_v42  ;;  %v2592_v5 = vmul.f32 %v5422_v18, %v7178_v16 }
 0xa41   :  { %v2621_v29 = vadd.f32 %v6957_v46, %v2605_v45  ;;  %v2591_v8 = vmul.f32 %v5424_v49, %v7165_v44 }
 0xa42   :  { %2798 = vmatmul.mubr.bf16.gmra.mxu0 %v2631_v40  ;;  %v2608_v23 = vmul.f32 %v6952_v37, %v2592_v5 }
 0xa43   :  { %2807 = vmatprep.mubr.bf16.mxu0 %v7943_v17  ;;  %v2633_v24 = vpack.c.bf16 %v2622_v0, %v2621_v29  ;;  %v2607_v27 = vmul.f32 %v6952_v37, %v2591_v8 }
 0xa44   :  { %v2624_v13 = vadd.f32 %v6957_v46, %v2608_v23 }
 0xa45   :  { %v5426_v48 = vpop.eup %5425  ;;  %v2623_v16 = vadd.f32 %v6957_v46, %v2607_v27 }
 0xa46   :  { %v5428_v4 = vpop.eup %5427  ;;  %v2594_v11 = vmul.f32 %v5426_v48, %v7188_v55 }
 0xa47   :  { %v2593_v21 = vmul.f32 %v5428_v4, %v7175_v56  ;;  %v2634_v47 = vpack.c.bf16 %v2624_v13, %v2623_v16 }
 0xa48   :  { %v2610_v44 = vmul.f32 %v6952_v37, %v2594_v11 }
 0xa49   :  { %v5430_v53 = vpop.eup %5429  ;;  %v2609_v2 = vmul.f32 %v6952_v37, %v2593_v21 }
 0xa4a   :  { %2808 = vmatmul.mubr.bf16.gmra.mxu0 %v2632_v1  ;;  %v5432_v59 = vpop.eup %5431  ;;  %v2626_v15 = vadd.f32 %v6957_v46, %v2610_v44  ;;  %v2596_v32 = vmul.f32 %v5430_v53, %v7195_v12 }
 0xa4b   :  { %2817 = vmatprep.mubr.bf16.mxu0 %v7943_v17  ;;  %v2625_v55 = vadd.f32 %v6957_v46, %v2609_v2  ;;  %v2595_v25 = vmul.f32 %v5432_v59, %v7185_v61 }
 0xa4c   :  { %v2612_v56 = vmul.f32 %v6952_v37, %v2596_v32 }
 0xa4d   :  { %v2635_v40 = vpack.c.bf16 %v2626_v15, %v2625_v55  ;;  %v2611_v20 = vmul.f32 %v6952_v37, %v2595_v25 }
 0xa4e   :  { %v2628_v41 = vadd.f32 %v6957_v46, %v2612_v56 }
 0xa4f   :  { %v2627_v14 = vadd.f32 %v6957_v46, %v2611_v20 }
 0xa51   :  { %v2636_v28 = vpack.c.bf16 %v2628_v41, %v2627_v14 }
 0xa52   :  { %2818 = vmatmul.mubr.bf16.gmra.mxu0 %v2633_v24 }
 0xa53   :  { %2827 = vmatprep.mubr.bf16.mxu0 %v7943_v17 }
 0xa5a   :  { %2828 = vmatmul.mubr.bf16.gmra.mxu0 %v2634_v47 }
 0xa5b   :  { %2837 = vmatprep.mubr.bf16.mxu0 %v7943_v17 }
 0xa62   :  { %2838 = vmatmul.mubr.bf16.gmra.mxu0 %v2635_v40 }
 0xa63   :  { %2847 = vmatprep.mubr.bf16.mxu0 %v7943_v17 }
 0xa6a   :  { %2848 = vmatmul.mubr.bf16.gmra.mxu0 %v2636_v28 }
 0xaf2   :  { %v2779_v12 = vpop.f32.mrf.mxu0 }
 0xaf3   :  { %v2780_v17 = vadd.f32 %v2779_v12, %v7256_v3 }
 0xaf4   :  { %v2781_v61 = vpop.f32.mrf.mxu0 }
 0xaf5   :  { %v2782_v46 = vadd.f32 %v2781_v61, %v7260_v43 }
 0xaf6   :  { %v2783_v37 = vpop.f32.mrf.mxu0 }
 0xaf7   :  { %v2784_v52 = vadd.f32 %v2783_v37, %v7256_v3 }
 0xaf8   :  { %v2785_v9 = vpop.f32.mrf.mxu0 }
 0xaf9   :  { %v7265_v51 = vpack.c.bf16 %v2784_v52, %v2780_v17  ;;  %v2786_v50 = vadd.f32 %v2785_v9, %v7260_v43 }
 0xafa   :  { %v2789_v63 = vpop.f32.mrf.mxu0 }
 0xafb   :  { %v7268_v34 = vpack.c.bf16 %v2786_v50, %v2782_v46  ;;  %v2790_v39 = vadd.f32 %v2789_v63, %v7256_v3 }
 0xafc   :  { %v2791_v1 = vpop.f32.mrf.mxu0 }
 0xafd   :  { %v2792_v22 = vadd.f32 %v2791_v1, %v7260_v43 }
 0xafe   :  { %v2793_v42 = vpop.f32.mrf.mxu0 }
 0xaff   :  { %v2794_v33 = vadd.f32 %v2793_v42, %v7256_v3 }
 0xb00   :  { %v2795_v18 = vpop.f32.mrf.mxu0 }
 0xb01   :  { %v7273_v45 = vpack.c.bf16 %v2794_v33, %v2790_v39  ;;  %v2796_v49 = vadd.f32 %v2795_v18, %v7260_v43 }
 0xb02   :  { %v2799_v0 = vpop.f32.mrf.mxu0 }
 0xb03   :  { %v7276_v5 = vpack.c.bf16 %v2796_v49, %v2792_v22  ;;  %v2800_v24 = vadd.f32 %v2799_v0, %v7256_v3 }
 0xb04   :  { %v7278_v29 = vpop.f32.mrf.mxu0 }
 0xb06   :  { %v2803_v8 = vpop.f32.mrf.mxu0 }
 0xb07   :  { %v2804_v23 = vadd.f32 %v2803_v8, %v7256_v3 }
 0xb08   :  { %v2805_v48 = vpop.f32.mrf.mxu0 }
 0xb09   :  { %v7282_v27 = vpack.c.bf16 %v2804_v23, %v2800_v24 }
 0xb0a   :  { %v7284_v4 = vpop.f32.mrf.mxu0 }
 0xb0c   :  { %v2811_v13 = vpop.f32.mrf.mxu0 }
 0xb0e   :  { %v7286_v11 = vpop.f32.mrf.mxu0 }
 0xb10   :  { %v2815_v16 = vpop.f32.mrf.mxu0 }
 0xb11   :  { %v2816_v24 = vadd.f32 %v2815_v16, %v7260_v43 }
 0xb12   :  { %v2819_v21 = vpop.f32.mrf.mxu0 }
 0xb14   :  { %v2821_v47 = vpop.f32.mrf.mxu0 }
 0xb15   :  { %v2822_v0 = vadd.f32 %v2821_v47, %v7260_v43  ;;  %v2802_v47 = vadd.f32 %v7278_v29, %v7260_v43  ;;  %v4552_v29 = vld [vmem:[#allocation7 + $0x8] sm:$0xff]  }
 0xb16   :  { %v2823_v44 = vpop.f32.mrf.mxu0 }
 0xb18   :  { %v2825_v53 = vpop.f32.mrf.mxu0 }
 0xb19   :  { %v2826_v18 = vadd.f32 %v2825_v53, %v7260_v43  ;;  %v2806_v53 = vadd.f32 %v2805_v48, %v7260_v43  ;;  %v2810_v48 = vadd.f32 %v7284_v4, %v7256_v3 }
 0xb1a   :  { %v2829_v2 = vpop.f32.mrf.mxu0 }
 0xb1b   :  { %v2830_v22 = vadd.f32 %v2829_v2, %v7256_v3  ;;  %v2867_v23 = vpack.c.bf16 %v2826_v18, %v2822_v0  ;;  %v2863_v16 = vpack.c.bf16 %v2806_v53, %v2802_v47  ;;  %v4555_v18 = vld [vmem:[#allocation7 + $0x20] sm:$0xff]  }
 0xb1c   :  { %v2831_v59 = vpop.f32.mrf.mxu0 }
 0xb1d   :  { %v2832_v39 = vadd.f32 %v2831_v59, %v7260_v43  ;;  %v2812_v59 = vadd.f32 %v2811_v13, %v7260_v43  ;;  %v2814_v13 = vadd.f32 %v7286_v11, %v7256_v3  ;;  %v4519_v11 = vunpack.c.l.bf16 %v4552_v29 }
 0xb1e   :  { %v2833_v15 = vpop.f32.mrf.mxu0 }
 0xb1f   :  { %v2834_v33 = vadd.f32 %v2833_v15, %v7256_v3  ;;  %v2824_v15 = vadd.f32 %v2823_v44, %v7256_v3  ;;  %v2865_v2 = vpack.c.bf16 %v2816_v24, %v2812_v59  ;;  %v2864_v44 = vpack.c.bf16 %v2814_v13, %v2810_v48 }
 0xb20   :  { %v2835_v32 = vpop.f32.mrf.mxu0 }
 0xb21   :  { %v2836_v1 = vadd.f32 %v2835_v32, %v7260_v43  ;;  %v2868_v8 = vpack.c.bf16 %v2834_v33, %v2830_v22  ;;  %v2820_v32 = vadd.f32 %v2819_v21, %v7256_v3 }
 0xb22   :  { %v2839_v55 = vpop.f32.mrf.mxu0 }
 0xb23   :  { %v2840_v6 = vadd.f32 %v2839_v55, %v7256_v3  ;;  %v2869_v49 = vpack.c.bf16 %v2836_v1, %v2832_v39  ;;  %v2866_v55 = vpack.c.bf16 %v2824_v15, %v2820_v32 }
 0xb24   :  { %v2841_v25 = vpop.f32.mrf.mxu0 }
 0xb25   :  { %v2842_v46 = vadd.f32 %v2841_v25, %v7260_v43 }
 0xb26   :  { %v2843_v40 = vpop.f32.mrf.mxu0 }
 0xb27   :  { %v2844_v28 = vadd.f32 %v2843_v40, %v7256_v3  ;;  %v4553_v40 = vld [vmem:[#allocation7 + $0x10] sm:$0xff]  }
 0xb28   :  { %v2845_v56 = vpop.f32.mrf.mxu0 }
 0xb29   :  { %v2846_v37 = vadd.f32 %v2845_v56, %v7260_v43  ;;  %v2870_v50 = vpack.c.bf16 %v2844_v28, %v2840_v6  ;;  %v4523_v28 = vunpack.c.l.bf16 %v4553_v40  ;;  %v4554_v6 = vld [vmem:[#allocation7 + $0x18] sm:$0xff]  }
 0xb2a   :  { %v2849_v20 = vpop.f32.mrf.mxu0 }
 0xb2b   :  { %v2850_v57 = vadd.f32 %v2849_v20, %v7256_v3  ;;  %v2871_v42 = vpack.c.bf16 %v2846_v37, %v2842_v46  ;;  %v4520_v20 = vunpack.c.h.bf16 %v4552_v29  ;;  %v4527_v46 = vunpack.c.l.bf16 %v4554_v6 }
 0xb2c   :  { %v2851_v41 = vpop.f32.mrf.mxu0 }
 0xb2d   :  { %v2852_v17 = vadd.f32 %v2851_v41, %v7260_v43 }
 0xb2e   :  { %v2853_v14 = vpop.f32.mrf.mxu0 }
 0xb2f   :  { %v2854_v12 = vadd.f32 %v2853_v14, %v7256_v3  ;;  %v7946_v3 = vpack.c.bf16 %v6519_v62, %v6512_v54  ;;  %v7951_v54 = vpack.c.bf16 %v6607_v60, %v6593_v30  ;;  %v7952_v62 = vld [vmem:[#allocation80_spill] sm:$0xff] }
 0xb30   :  { %v2855_v61 = vpop.f32.mrf.mxu0 }
 0xb31   :  { %v2872_v52 = vpack.c.bf16 %v2854_v12, %v2850_v57  ;;  %v2856_v9 = vadd.f32 %v2855_v61, %v7260_v43  ;;  %v7947_v43 = vpack.c.bf16 %v6555_v31, %v6541_v19  ;;  %v7953_v19 = vpack.c.bf16 %v6598_v36, %v7952_v62 }
 0xb33   :  { %v2873_v63 = vpack.c.bf16 %v2856_v9, %v2852_v17  ;;  %4981 = vmatprep.subr.bf16.mxu1 %v2872_v52 }
 0xb34   :  { %4982 = vmatpush3.bf16.xpose.msra.mxu1 %v2872_v52 }
 0xb35   :  { %4983 = vmatprep.subr.bf16.mxu1 %v2870_v50  ;;  %5013 = vmatprep.subr.bf16.mxu0 %v2873_v63 }
 0xb36   :  { %5014 = vmatpush3.bf16.msra.mxu0 %v2873_v63  ;;  %v4524_v63 = vunpack.c.h.bf16 %v4553_v40 }
 0xb37   :  { %5015 = vmatprep.subr.bf16.mxu0 %v2871_v42 }
 0xb3a   :  { %5016 = vmatpush3.bf16.msra.mxu0 %v2871_v42 }
 0xb3b   :  { %5017 = vmatprep.subr.bf16.mxu0 %v2869_v49 }
 0xb3c   :  { %4984 = vmatpush3.bf16.xpose.msra.mxu1 %v2870_v50 }
 0xb3d   :  { %4985 = vmatprep.subr.bf16.mxu1 %v2868_v8 }
 0xb3e   :  { %5018 = vmatpush3.bf16.msra.mxu0 %v2869_v49 }
 0xb3f   :  { %5019 = vmatprep.subr.bf16.mxu0 %v2867_v23 }
 0xb42   :  { %5020 = vmatpush3.bf16.msra.mxu0 %v2867_v23  ;;  %v4531_v23 = vunpack.c.l.bf16 %v4555_v18 }
 0xb43   :  { %5021 = vmatprep.subr.bf16.mxu0 %v2865_v2 }
 0xb44   :  { %4986 = vmatpush3.bf16.xpose.msra.mxu1 %v2868_v8  ;;  %v4528_v8 = vunpack.c.h.bf16 %v4554_v6 }
 0xb45   :  { %4987 = vmatprep.subr.bf16.mxu1 %v2866_v55 }
 0xb46   :  { %5022 = vmatpush3.bf16.msra.mxu0 %v2865_v2  ;;  %v4556_v2 = vld [vmem:[#allocation7 + $0x28] sm:$0xff]  }
 0xb47   :  { %5023 = vmatprep.subr.bf16.mxu0 %v2863_v16 }
 0xb4a   :  { %5024 = vmatpush3.bf16.msra.mxu0 %v2863_v16  ;;  %v4535_v16 = vunpack.c.l.bf16 %v4556_v2 }
 0xb4b   :  { %5025 = vmatprep.subr.bf16.mxu0 %v7276_v5 }
 0xb4c   :  { %4988 = vmatpush3.bf16.xpose.msra.mxu1 %v2866_v55 }
 0xb4d   :  { %4989 = vmatprep.subr.bf16.mxu1 %v2864_v44 }
 0xb4e   :  { %5026 = vmatpush3.bf16.msra.mxu0 %v7276_v5  ;;  %v7949_v5 = vpack.c.bf16 %v6581_v7, %v6565_v38 }
 0xb4f   :  { %5027 = vmatprep.subr.bf16.mxu0 %v7268_v34 }
 0xb52   :  { %5028 = vmatpush3.bf16.msra.mxu0 %v7268_v34  ;;  %v7948_v34 = vpack.c.bf16 %v6546_v26, %v6536_v10 }
 0xb54   :  { %4990 = vmatpush3.bf16.xpose.msra.mxu1 %v2864_v44  ;;  %v4532_v44 = vunpack.c.h.bf16 %v4555_v18 }
 0xb55   :  { %4991 = vmatprep.subr.bf16.mxu1 %v7282_v27 }
 0xb5c   :  { %4992 = vmatpush3.bf16.xpose.msra.mxu1 %v7282_v27 }
 0xb5d   :  { %4993 = vmatprep.subr.bf16.mxu1 %v7273_v45 }
 0xb64   :  { %4994 = vmatpush3.bf16.xpose.msra.mxu1 %v7273_v45  ;;  %v7950_v45 = vpack.c.bf16 %v6572_v58, %v6562_v35 }
 0xb65   :  { %4995 = vmatprep.subr.bf16.mxu1 %v7265_v51 }
 0xb6c   :  { %4996 = vmatpush3.bf16.xpose.msra.mxu1 %v7265_v51  ;;  %v4514_v51 = vld [vmem:[#allocation7] sm:$0xff]  }
 0xb6d   :  { %v4515_v38 = vunpack.c.l.bf16 %v4514_v51  ;;  %v4516_v58 = vunpack.c.h.bf16 %v4514_v51 }
 0xb73   :  { %4998 = vmatmul.mubr.bf16.vlgmr.msra.gmra.mxu1 %v7946_v3 }
 0xb74   :  { %5001 = vmatprep.mubr.bf16.mxu1 %v7947_v43 }
 0xb7b   :  { %5002 = vmatmul.mubr.bf16.gmra.mxu1 %v7948_v34 }
 0xb7c   :  { %5005 = vmatprep.mubr.bf16.mxu1 %v7949_v5 }
 0xb83   :  { %5006 = vmatmul.mubr.bf16.gmra.mxu1 %v7950_v45  ;;  %v4557_v45 = vld [vmem:[#allocation7 + $0x30] sm:$0xff]  }
 0xb84   :  { %5009 = vmatprep.mubr.bf16.mxu1 %v7951_v54 }
 0xb8b   :  { %5010 = vmatmul.mubr.bf16.gmra.mxu1 %v7953_v19 }
 0xc33   :  { %v4999_v31 = vpop.f32.mrf.mxu1 }
 0xc34   :  { %v2973_v26 = vmul.f32 0.01, %v4999_v31 }
 0xc35   :  { %v2908_v10 = vpop.f32.mrf.mxu1 }
 0xc36   :  { %v2971_v27 = vmul.f32 0.01, %v2908_v10  ;;  %v2989_v21 = vmax.f32 %v4999_v31, %v2973_v26  ;;  %v4536_v31 = vunpack.c.h.bf16 %v4556_v2 }
 0xc37   :  { %v5000_v7 = vpop.f32.mrf.mxu1 }
 0xc38   :  { %v2987_v4 = vmax.f32 %v2908_v10, %v2971_v27  ;;  %v2974_v25 = vmul.f32 0.01, %v5000_v7  ;;  %v7347_v57 = vadd.f32 %v4519_v11, %v2989_v21  ;;  %v4539_v10 = vunpack.c.l.bf16 %v4557_v45 }
 0xc39   :  { %v2911_v35 = vpop.f32.mrf.mxu1 }
 0xc3a   :  { %v2972_v30 = vmul.f32 0.01, %v2911_v35  ;;  %v7344_v60 = vadd.f32 %v4515_v38, %v2987_v4  ;;  %v2990_v12 = vmax.f32 %v5000_v7, %v2974_v25  ;;  %v4558_v38 = vld [vmem:[#allocation7 + $0x38] sm:$0xff]   ;;  %v4540_v25 = vunpack.c.h.bf16 %v4557_v45 }
 0xc3b   :  { %v5003_v36 = vpop.f32.mrf.mxu1 }
 0xc3c   :  { %v2988_v56 = vmax.f32 %v2911_v35, %v2972_v30  ;;  %3051 = vmax.xlane.f32.xlu0 %v7344_v60  ;;  %v2977_v41 = vmul.f32 0.01, %v5003_v36  ;;  %v7353_v1 = vadd.f32 %v4520_v20, %v2990_v12 }
 0xc3d   :  { %v2924_v14 = vpop.f32.mrf.mxu1 }
 0xc3e   :  { %v2975_v61 = vmul.f32 0.01, %v2924_v14  ;;  %v7349_v37 = vadd.f32 %v4516_v58, %v2988_v56  ;;  %v2993_v9 = vmax.f32 %v5003_v36, %v2977_v41  ;;  %v4543_v58 = vunpack.c.l.bf16 %v4558_v38 }
 0xc3f   :  { %v5004_v17 = vpop.f32.mrf.mxu1 }
 0xc40   :  { %v2991_v52 = vmax.f32 %v2924_v14, %v2975_v61  ;;  %3055 = vmax.xlane.f32.xlu0 %v7347_v57  ;;  %3053 = vmax.xlane.f32.xlu1 %v7349_v37  ;;  %v2978_v39 = vmul.f32 0.01, %v5004_v17  ;;  %v7359_v0 = vadd.f32 %v4527_v46, %v2993_v9 }
 0xc41   :  { %v2927_v50 = vpop.f32.mrf.mxu1 }
 0xc42   :  { %v7355_v42 = vadd.f32 %v4523_v28, %v2991_v52  ;;  %v2976_v33 = vmul.f32 0.01, %v2927_v50  ;;  %v2994_v59 = vmax.f32 %v5004_v17, %v2978_v39  ;;  %v4544_v28 = vunpack.c.h.bf16 %v4558_v38 }
 0xc43   :  { %v5007_v22 = vpop.f32.mrf.mxu1 }
 0xc44   :  { %v2992_v49 = vmax.f32 %v2927_v50, %v2976_v33  ;;  %3057 = vmax.xlane.f32.xlu1 %v7353_v1  ;;  %3059 = vmax.xlane.f32.xlu0 %v7355_v42  ;;  %v2981_v53 = vmul.f32 0.01, %v5007_v22  ;;  %v7365_v3 = vadd.f32 %v4528_v8, %v2994_v59 }
 0xc45   :  { %v2940_v24 = vpop.f32.mrf.mxu1 }
 0xc46   :  { %v7361_v15 = vadd.f32 %v4524_v63, %v2992_v49  ;;  %v2979_v32 = vmul.f32 0.01, %v2940_v24  ;;  %v2997_v43 = vmax.f32 %v5007_v22, %v2981_v53 }
 0xc47   :  { %v5008_v47 = vpop.f32.mrf.mxu1 }
 0xc48   :  { %v2995_v55 = vmax.f32 %v2940_v24, %v2979_v32  ;;  %3063 = vmax.xlane.f32.xlu0 %v7359_v0  ;;  %3061 = vmax.xlane.f32.xlu1 %v7361_v15  ;;  %v2982_v13 = vmul.f32 0.01, %v5008_v47  ;;  %v7371_v26 = vadd.f32 %v4535_v16, %v2997_v43 }
 0xc49   :  { %v2943_v48 = vpop.f32.mrf.mxu1 }
 0xc4a   :  { %v7367_v34 = vadd.f32 %v4531_v23, %v2995_v55  ;;  %v2980_v5 = vmul.f32 0.01, %v2943_v48  ;;  %v2998_v19 = vmax.f32 %v5008_v47, %v2982_v13 }
 0xc4b   :  { %v5011_v54 = vpop.f32.mrf.mxu1 }
 0xc4c   :  { %v2996_v62 = vmax.f32 %v2943_v48, %v2980_v5  ;;  %3065 = vmax.xlane.f32.xlu1 %v7365_v3  ;;  %3067 = vmax.xlane.f32.xlu0 %v7367_v34  ;;  %v2985_v27 = vmul.f32 0.01, %v5011_v54  ;;  %v7377_v35 = vadd.f32 %v4536_v31, %v2998_v19 }
 0xc4d   :  { %v2956_v51 = vpop.f32.mrf.mxu1 }
 0xc4e   :  { %v7373_v29 = vadd.f32 %v4532_v44, %v2996_v62  ;;  %v2983_v7 = vmul.f32 0.01, %v2956_v51  ;;  %v3001_v30 = vmax.f32 %v5011_v54, %v2985_v27 }
 0xc4f   :  { %v5012_v4 = vpop.f32.mrf.mxu1 }
 0xc50   :  { %v2999_v11 = vmax.f32 %v2956_v51, %v2983_v7  ;;  %3071 = vmax.xlane.f32.xlu0 %v7371_v26  ;;  %3069 = vmax.xlane.f32.xlu1 %v7373_v29  ;;  %v2986_v36 = vmul.f32 0.01, %v5012_v4  ;;  %v7383_v41 = vadd.f32 %v4543_v58, %v3001_v30 }
 0xc51   :  { %v2959_v21 = vpop.f32.mrf.mxu1 }
 0xc52   :  { %v7379_v40 = vadd.f32 %v4539_v10, %v2999_v11  ;;  %v2984_v56 = vmul.f32 0.01, %v2959_v21  ;;  %v3002_v14 = vmax.f32 %v5012_v4, %v2986_v36 }
 0xc54   :  { %v3000_v20 = vmax.f32 %v2959_v21, %v2984_v56  ;;  %3073 = vmax.xlane.f32.xlu1 %v7377_v35  ;;  %3075 = vmax.xlane.f32.xlu0 %v7379_v40  ;;  %v7389_v6 = vadd.f32 %v4544_v28, %v3002_v14 }
 0xc56   :  { %v7385_v12 = vadd.f32 %v4540_v25, %v3000_v20 }
 0xc58   :  { %3079 = vmax.xlane.f32.xlu0 %v7383_v41  ;;  %3077 = vmax.xlane.f32.xlu1 %v7385_v12 }
 0xc5c   :  { %3081 = vmax.xlane.f32.xlu1 %v7389_v6 }
 0xcc5   :  { %v3052_v61 = vpop.xlane.xlu0 %3051 }
 0xcc6   :  { %v3083_v17 = vsub.f32 %v7344_v60, %v3052_v61 }
 0xcc8   :  { %v3099_v52 = vmul.f32 1.442695, %v3083_v17 }
 0xcc9   :  { %v3056_v9 = vpop.xlane.xlu0 %3055  ;;  %v3054_v46 = vpop.xlane.xlu1 %3053 }
 0xcca   :  { %5433 = vpow2.f32 %v3099_v52  ;;  %v3085_v50 = vsub.f32 %v7347_v57, %v3056_v9  ;;  %v3084_v63 = vsub.f32 %v7349_v37, %v3054_v46 }
 0xccc   :  { %v3103_v39 = vmul.f32 1.442695, %v3085_v50  ;;  %v3101_v33 = vmul.f32 1.442695, %v3084_v63 }
 0xccd   :  { %v3058_v18 = vpop.xlane.xlu1 %3057  ;;  %v3060_v22 = vpop.xlane.xlu0 %3059 }
 0xcce   :  { %5435 = vpow2.f32 %v3103_v39  ;;  %v3086_v49 = vsub.f32 %v7353_v1, %v3058_v18  ;;  %v3087_v8 = vsub.f32 %v7355_v42, %v3060_v22 }
 0xccf   :  { %5437 = vpow2.f32 %v3101_v33 }
 0xcd0   :  { %v3105_v24 = vmul.f32 1.442695, %v3086_v49  ;;  %v3107_v60 = vmul.f32 1.442695, %v3087_v8 }
 0xcd1   :  { %v3064_v23 = vpop.xlane.xlu0 %3063  ;;  %v3062_v59 = vpop.xlane.xlu1 %3061 }
 0xcd2   :  { %5439 = vpow2.f32 %v3105_v24  ;;  %v3089_v53 = vsub.f32 %v7359_v0, %v3064_v23  ;;  %v3088_v57 = vsub.f32 %v7361_v15, %v3062_v59 }
 0xcd3   :  { %5441 = vpow2.f32 %v3107_v60 }
 0xcd4   :  { %v3111_v37 = vmul.f32 1.442695, %v3089_v53  ;;  %v3109_v2 = vmul.f32 1.442695, %v3088_v57 }
 0xcd5   :  { %v3066_v32 = vpop.xlane.xlu1 %3065  ;;  %v3068_v47 = vpop.xlane.xlu0 %3067 }
 0xcd6   :  { %5443 = vpow2.f32 %v3111_v37  ;;  %v3090_v1 = vsub.f32 %v7365_v3, %v3066_v32  ;;  %v3091_v42 = vsub.f32 %v7367_v34, %v3068_v47 }
 0xcd7   :  { %v7401_v55 = vpop.eup %5433  ;;  %5445 = vpow2.f32 %v3109_v2 }
 0xcd8   :  { %v3113_v16 = vmul.f32 1.442695, %v3090_v1  ;;  %v3115_v13 = vmul.f32 1.442695, %v3091_v42  ;;  %3131 = vadd.xlane.f32.xlu0 %v7401_v55 }
 0xcd9   :  { %v3072_v0 = vpop.xlane.xlu0 %3071  ;;  %v3070_v48 = vpop.xlane.xlu1 %3069 }
 0xcda   :  { %5447 = vpow2.f32 %v3113_v16  ;;  %v3093_v15 = vsub.f32 %v7371_v26, %v3072_v0  ;;  %v3092_v44 = vsub.f32 %v7373_v29, %v3070_v48 }
 0xcdb   :  { %v7406_v43 = vpop.eup %5435  ;;  %5449 = vpow2.f32 %v3115_v13 }
 0xcdc   :  { %v7408_v3 = vpop.eup %5437  ;;  %v3119_v34 = vmul.f32 1.442695, %v3093_v15  ;;  %v3117_v5 = vmul.f32 1.442695, %v3092_v44  ;;  %3135 = vadd.xlane.f32.xlu0 %v7406_v43 }
 0xcdd   :  { %3133 = vadd.xlane.f32.xlu1 %v7408_v3  ;;  %v3074_v45 = vpop.xlane.xlu1 %3073  ;;  %v3076_v54 = vpop.xlane.xlu0 %3075 }
 0xcde   :  { %5451 = vpow2.f32 %v3119_v34  ;;  %v3094_v62 = vsub.f32 %v7377_v35, %v3074_v45  ;;  %v3095_v19 = vsub.f32 %v7379_v40, %v3076_v54 }
 0xcdf   :  { %v7414_v31 = vpop.eup %5439  ;;  %5453 = vpow2.f32 %v3117_v5 }
 0xce0   :  { %v7416_v51 = vpop.eup %5441  ;;  %v3121_v10 = vmul.f32 1.442695, %v3094_v62  ;;  %v3123_v26 = vmul.f32 1.442695, %v3095_v19 }
 0xce1   :  { %3139 = vadd.xlane.f32.xlu0 %v7416_v51  ;;  %3137 = vadd.xlane.f32.xlu1 %v7414_v31  ;;  %v3080_v29 = vpop.xlane.xlu0 %3079  ;;  %v3078_v27 = vpop.xlane.xlu1 %3077 }
 0xce2   :  { %5455 = vpow2.f32 %v3121_v10  ;;  %v3097_v38 = vsub.f32 %v7383_v41, %v3080_v29  ;;  %v3096_v7 = vsub.f32 %v7385_v12, %v3078_v27 }
 0xce3   :  { %v7422_v4 = vpop.eup %5443  ;;  %5457 = vpow2.f32 %v3123_v26 }
 0xce4   :  { %v7424_v11 = vpop.eup %5445  ;;  %v3127_v35 = vmul.f32 1.442695, %v3097_v38  ;;  %v3125_v58 = vmul.f32 1.442695, %v3096_v7 }
 0xce5   :  { %3143 = vadd.xlane.f32.xlu0 %v7422_v4  ;;  %3141 = vadd.xlane.f32.xlu1 %v7424_v11  ;;  %v3082_v21 = vpop.xlane.xlu1 %3081 }
 0xce6   :  { %5459 = vpow2.f32 %v3127_v35  ;;  %v3098_v25 = vsub.f32 %v7389_v6, %v3082_v21 }
 0xce7   :  { %v7429_v30 = vpop.eup %5447  ;;  %5461 = vpow2.f32 %v3125_v58 }
 0xce8   :  { %v7431_v40 = vpop.eup %5449  ;;  %v3129_v36 = vmul.f32 1.442695, %v3098_v25 }
 0xce9   :  { %3147 = vadd.xlane.f32.xlu0 %v7431_v40  ;;  %3145 = vadd.xlane.f32.xlu1 %v7429_v30 }
 0xcea   :  { %5463 = vpow2.f32 %v3129_v36 }
 0xceb   :  { %v7435_v56 = vpop.eup %5451 }
 0xcec   :  { %v7437_v20 = vpop.eup %5453 }
 0xced   :  { %3151 = vadd.xlane.f32.xlu0 %v7435_v56  ;;  %3149 = vadd.xlane.f32.xlu1 %v7437_v20 }
 0xcef   :  { %v7441_v41 = vpop.eup %5455 }
 0xcf0   :  { %v7443_v14 = vpop.eup %5457 }
 0xcf1   :  { %3155 = vadd.xlane.f32.xlu0 %v7443_v14  ;;  %3153 = vadd.xlane.f32.xlu1 %v7441_v41 }
 0xcf3   :  { %v7447_v28 = vpop.eup %5459 }
 0xcf4   :  { %v7449_v12 = vpop.eup %5461 }
 0xcf5   :  { %3159 = vadd.xlane.f32.xlu0 %v7447_v28  ;;  %3157 = vadd.xlane.f32.xlu1 %v7449_v12 }
 0xcf7   :  { %v7453_v6 = vpop.eup %5463 }
 0xcf9   :  { %3161 = vadd.xlane.f32.xlu1 %v7453_v6 }
 0xd61   :  { %v3132_v61 = vpop.xlane.xlu0 %3131 }
 0xd62   :  { %5465 = vrcp.f32 %v3132_v61 }
 0xd65   :  { %v3136_v17 = vpop.xlane.xlu0 %3135 }
 0xd66   :  { %v3134_v52 = vpop.xlane.xlu1 %3133 }
 0xd67   :  { %5467 = vrcp.f32 %v3134_v52  ;;  %v7955_v52 = vld [vmem:[#allocation67_spill] sm:$0xff] }
 0xd68   :  { %5469 = vrcp.f32 %v3136_v17 }
 0xd6a   :  { %v3140_v9 = vpop.xlane.xlu0 %3139  ;;  %v3138_v46 = vpop.xlane.xlu1 %3137 }
 0xd6b   :  { %5471 = vrcp.f32 %v3138_v46 }
 0xd6c   :  { %5473 = vrcp.f32 %v3140_v9  ;;  %v7956_v9 = vld [vmem:[#allocation66_spill] sm:$0xff] }
 0xd6e   :  { %v3144_v50 = vpop.xlane.xlu0 %3143  ;;  %v3142_v63 = vpop.xlane.xlu1 %3141 }
 0xd6f   :  { %5475 = vrcp.f32 %v3142_v63  ;;  %v5466_v39 = vpop.eup %5465  ;;  %v7958_v63 = vld [vmem:[#allocation69_spill] sm:$0xff] }
 0xd70   :  { %5477 = vrcp.f32 %v3144_v50  ;;  %v3179_v49 = vmul.f32 %v5466_v39, %v7401_v55  ;;  %v7957_v50 = vld [vmem:[#allocation64_spill] sm:$0xff] }
 0xd72   :  { %v3148_v33 = vpop.xlane.xlu0 %3147  ;;  %v3146_v18 = vpop.xlane.xlu1 %3145 }
 0xd73   :  { %5479 = vrcp.f32 %v3146_v18 }
 0xd74   :  { %v5468_v22 = vpop.eup %5467  ;;  %5481 = vrcp.f32 %v3148_v33 }
 0xd75   :  { %v3180_v8 = vmul.f32 %v5468_v22, %v7408_v3  ;;  %v5470_v23 = vpop.eup %5469  ;;  %v7959_v22 = vld [vmem:[#allocation68_spill] sm:$0xff] }
 0xd76   :  { %v3152_v24 = vpop.xlane.xlu0 %3151  ;;  %v3150_v60 = vpop.xlane.xlu1 %3149  ;;  %v3181_v57 = vmul.f32 %v5470_v23, %v7406_v43 }
 0xd77   :  { %v3195_v59 = vpack.c.bf16 %v3180_v8, %v3179_v49  ;;  %5483 = vrcp.f32 %v3150_v60  ;;  %v7960_v8 = vld [vmem:[#allocation71_spill] sm:$0xff] }
 0xd78   :  { %v5472_v53 = vpop.eup %5471  ;;  %5485 = vrcp.f32 %v3152_v24 }
 0xd79   :  { %5029 = vmatprep.mubr.bf16.mxu0 %v3195_v59  ;;  %v3182_v37 = vmul.f32 %v5472_v53, %v7414_v31  ;;  %v5474_v47 = vpop.eup %5473  ;;  %v7961_v59 = vld [vmem:[#allocation70_spill] sm:$0xff] }
 0xd7a   :  { %v3156_v2 = vpop.xlane.xlu0 %3155  ;;  %v3154_v32 = vpop.xlane.xlu1 %3153  ;;  %v3183_v13 = vmul.f32 %v5474_v47, %v7416_v51  ;;  %v7963_v47 = vld [vmem:[#allocation72_spill] sm:$0xff] }
 0xd7b   :  { %v3196_v1 = vpack.c.bf16 %v3182_v37, %v3181_v57  ;;  %5487 = vrcp.f32 %v3154_v32  ;;  %v7962_v57 = vld [vmem:[#allocation73_spill] sm:$0xff] }
 0xd7c   :  { %v5476_v42 = vpop.eup %5475  ;;  %5489 = vrcp.f32 %v3156_v2 }
 0xd7d   :  { %5030 = vmatmul.mubr.bf16.vlgmr.msra.gmra.mxu0 %v3196_v1  ;;  %v3184_v0 = vmul.f32 %v5476_v42, %v7424_v11  ;;  %v5478_v48 = vpop.eup %5477  ;;  %v7964_v42 = vld [vmem:[#allocation75_spill] sm:$0xff] }
 0xd7e   :  { %v3160_v55 = vpop.xlane.xlu0 %3159  ;;  %v3158_v16 = vpop.xlane.xlu1 %3157  ;;  %v3185_v3 = vmul.f32 %v5478_v48, %v7422_v4 }
 0xd7f   :  { %5491 = vrcp.f32 %v3158_v16  ;;  %v3197_v15 = vpack.c.bf16 %v3184_v0, %v3183_v13  ;;  %v7965_v0 = vld [vmem:[#allocation74_spill] sm:$0xff] }
 0xd80   :  { %v5480_v44 = vpop.eup %5479  ;;  %5493 = vrcp.f32 %v3160_v55 }
 0xd81   :  { %5033 = vmatprep.mubr.bf16.mxu0 %v3197_v15  ;;  %v3186_v34 = vmul.f32 %v5480_v44, %v7429_v30  ;;  %v5482_v5 = vpop.eup %5481  ;;  %v7966_v15 = vld [vmem:[#allocation77_spill] sm:$0xff] }
 0xd82   :  { %v3162_v43 = vpop.xlane.xlu1 %3161  ;;  %v3187_v62 = vmul.f32 %v5482_v5, %v7431_v40 }
 0xd83   :  { %5495 = vrcp.f32 %v3162_v43  ;;  %v3198_v45 = vpack.c.bf16 %v3186_v34, %v3185_v3  ;;  %v7967_v34 = vld [vmem:[#allocation76_spill] sm:$0xff] }
 0xd84   :  { %v5484_v54 = vpop.eup %5483 }
 0xd85   :  { %5034 = vmatmul.mubr.bf16.gmra.mxu0 %v3198_v45  ;;  %v3188_v19 = vmul.f32 %v5484_v54, %v7437_v20  ;;  %v5486_v31 = vpop.eup %5485  ;;  %v7954_v20 = vld [vmem:[#allocation65_spill] sm:$0xff]  ;;  %v7968_v45 = vld [vmem:[#allocation79_spill] sm:$0xff] }
 0xd86   :  { %v3189_v26 = vmul.f32 %v5486_v31, %v7435_v56 }
 0xd87   :  { %v3199_v51 = vpack.c.bf16 %v3188_v19, %v3187_v62  ;;  %v7969_v62 = vld [vmem:[#allocation78_spill] sm:$0xff] }
 0xd88   :  { %v5488_v10 = vpop.eup %5487 }
 0xd89   :  { %5037 = vmatprep.mubr.bf16.mxu0 %v3199_v51  ;;  %v3190_v29 = vmul.f32 %v5488_v10, %v7441_v41  ;;  %v5490_v27 = vpop.eup %5489 }
 0xd8a   :  { %v3191_v11 = vmul.f32 %v5490_v27, %v7443_v14 }
 0xd8b   :  { %v3200_v38 = vpack.c.bf16 %v3190_v29, %v3189_v26 }
 0xd8c   :  { %v5492_v7 = vpop.eup %5491 }
 0xd8d   :  { %v5494_v4 = vpop.eup %5493  ;;  %5038 = vmatmul.mubr.bf16.gmra.mxu0 %v3200_v38  ;;  %v3192_v35 = vmul.f32 %v5492_v7, %v7449_v12 }
 0xd8e   :  { %v3193_v25 = vmul.f32 %v5494_v4, %v7447_v28 }
 0xd8f   :  { %v3201_v21 = vpack.c.bf16 %v3192_v35, %v3191_v11 }
 0xd90   :  { %v5496_v58 = vpop.eup %5495 }
 0xd91   :  { %v3194_v30 = vmul.f32 %v5496_v58, %v7453_v6  ;;  %5041 = vmatprep.mubr.bf16.mxu0 %v3201_v21 }
 0xd93   :  { %v3202_v40 = vpack.c.bf16 %v3194_v30, %v3193_v25 }
 0xd95   :  { %5042 = vmatmul.mubr.bf16.gmra.mxu0 %v3202_v40 }
 0xe3d   :  { %v5031_v36 = vpop.f32.mrf.mxu0 }
 0xe3e   :  { %v3246_v14 = vadd.f32 %v5031_v36, %v7955_v52 }
 0xe3f   :  { %v3237_v56 = vpop.f32.mrf.mxu0 }
 0xe40   :  { %v3238_v41 = vadd.f32 %v3237_v56, %v7954_v20 }
 0xe41   :  { %v5032_v61 = vpop.f32.mrf.mxu0 }
 0xe42   :  { %3300 = vadd.xlane.f32.xlu0 %v3238_v41  ;;  %v3249_v6 = vadd.f32 %v5032_v61, %v7957_v50 }
 0xe43   :  { %v3240_v17 = vpop.f32.mrf.mxu0 }
 0xe44   :  { %v3241_v12 = vadd.f32 %v3240_v17, %v7956_v9 }
 0xe45   :  { %v5035_v46 = vpop.f32.mrf.mxu0 }
 0xe46   :  { %3302 = vadd.xlane.f32.xlu1 %v3241_v12  ;;  %3304 = vadd.xlane.f32.xlu0 %v3246_v14  ;;  %v3262_v49 = vadd.f32 %v5035_v46, %v7959_v22 }
 0xe47   :  { %v3253_v28 = vpop.f32.mrf.mxu0 }
 0xe48   :  { %v3254_v39 = vadd.f32 %v3253_v28, %v7958_v63 }
 0xe49   :  { %v5036_v33 = vpop.f32.mrf.mxu0 }
 0xe4a   :  { %3306 = vadd.xlane.f32.xlu1 %v3249_v6  ;;  %3308 = vadd.xlane.f32.xlu0 %v3254_v39  ;;  %v7480_v53 = vadd.f32 %v5036_v33, %v7961_v59  ;;  %v5281_v33 = vld [vmem:[%s7970_s19 + $0x38] sm:$0xff]  }
 0xe4b   :  { %v3256_v18 = vpop.f32.mrf.mxu0  ;;  %5045 = vmatprep.subr.bf16.mxu1 %v5281_v33 }
 0xe4c   :  { %v3257_v24 = vadd.f32 %v3256_v18, %v7960_v8  ;;  %5046 = vmatpush3.bf16.msra.mxu1 %v5281_v33 }
 0xe4d   :  { %v5039_v60 = vpop.f32.mrf.mxu0 }
 0xe4e   :  { %3310 = vadd.xlane.f32.xlu1 %v3257_v24  ;;  %3312 = vadd.xlane.f32.xlu0 %v3262_v49  ;;  %v7485_v1 = vadd.f32 %v5039_v60, %v7963_v47 }
 0xe4f   :  { %v3269_v23 = vpop.f32.mrf.mxu0 }
 0xe50   :  { %v3270_v37 = vadd.f32 %v3269_v23, %v7962_v57  ;;  %v5282_v57 = vld [vmem:[%s7970_s19 + $0x30] sm:$0xff]  }
 0xe51   :  { %v5040_v2 = vpop.f32.mrf.mxu0  ;;  %5047 = vmatprep.subr.bf16.mxu1 %v5282_v57 }
 0xe52   :  { %3314 = vadd.xlane.f32.xlu1 %v7480_v53  ;;  %3316 = vadd.xlane.f32.xlu0 %v3270_v37  ;;  %v7493_v48 = vadd.f32 %v5040_v2, %v7965_v0 }
 0xe53   :  { %v3272_v32 = vpop.f32.mrf.mxu0  ;;  %5048 = vmatpush3.bf16.msra.mxu1 %v5282_v57 }
 0xe54   :  { %v7488_v55 = vadd.f32 %v3272_v32, %v7964_v42 }
 0xe55   :  { %v5043_v16 = vpop.f32.mrf.mxu0 }
 0xe56   :  { %3318 = vadd.xlane.f32.xlu1 %v7488_v55  ;;  %3320 = vadd.xlane.f32.xlu0 %v7485_v1  ;;  %v7501_v5 = vadd.f32 %v5043_v16, %v7967_v34 }
 0xe57   :  { %v3285_v13 = vpop.f32.mrf.mxu0 }
 0xe58   :  { %v7496_v44 = vadd.f32 %v3285_v13, %v7966_v15 }
 0xe59   :  { %v5044_v43 = vpop.f32.mrf.mxu0 }
 0xe5a   :  { %3322 = vadd.xlane.f32.xlu1 %v7493_v48  ;;  %3324 = vadd.xlane.f32.xlu0 %v7496_v44  ;;  %v7509_v19 = vadd.f32 %v5044_v43, %v7969_v62 }
 0xe5b   :  { %v3288_v3 = vpop.f32.mrf.mxu0 }
 0xe5c   :  { %v7504_v54 = vadd.f32 %v3288_v3, %v7968_v45 }
 0xe5e   :  { %3326 = vadd.xlane.f32.xlu1 %v7504_v54  ;;  %3328 = vadd.xlane.f32.xlu0 %v7501_v5 }
 0xe62   :  { %3330 = vadd.xlane.f32.xlu1 %v7509_v19 }
 0xecb   :  { %v3301_v31 = vpop.xlane.xlu0 %3300 }
 0xecc   :  { %v3332_v51 = vmul.f32 0.0078125, %v3301_v31 }
 0xece   :  { %v7512_v10 = vsub.f32 %v3238_v41, %v3332_v51 }
 0xecf   :  { %v3305_v26 = vpop.xlane.xlu0 %3304  ;;  %v3303_v29 = vpop.xlane.xlu1 %3302 }
 0xed0   :  { %v3334_v27 = vmul.f32 0.0078125, %v3305_v26  ;;  %v3333_v38 = vmul.f32 0.0078125, %v3303_v29  ;;  %v3364_v7 = vmul.f32 %v7512_v10, %v7512_v10 }
 0xed2   :  { %v7516_v4 = vsub.f32 %v3246_v14, %v3334_v27  ;;  %v7518_v11 = vsub.f32 %v3241_v12, %v3333_v38  ;;  %3380 = vadd.xlane.f32.xlu0 %v3364_v7  ;;  %v5286_v7 = vld [vmem:[%s7970_s19 + $0x10] sm:$0xff]  }
 0xed3   :  { %v3309_v35 = vpop.xlane.xlu0 %3308  ;;  %v3307_v58 = vpop.xlane.xlu1 %3306 }
 0xed4   :  { %v3336_v21 = vmul.f32 0.0078125, %v3309_v35  ;;  %v3335_v25 = vmul.f32 0.0078125, %v3307_v58  ;;  %v3366_v30 = vmul.f32 %v7516_v4, %v7516_v4  ;;  %v3365_v40 = vmul.f32 %v7518_v11, %v7518_v11  ;;  %v5287_v35 = vld [vmem:[%s7970_s19 + $0x8] sm:$0xff]   ;;  %v5288_v58 = vld [vmem:[%s7970_s19] sm:$0xff]  }
 0xed6   :  { %v7524_v36 = vsub.f32 %v3254_v39, %v3336_v21  ;;  %v7526_v56 = vsub.f32 %v3249_v6, %v3335_v25  ;;  %3384 = vadd.xlane.f32.xlu0 %v3366_v30  ;;  %3382 = vadd.xlane.f32.xlu1 %v3365_v40  ;;  %v5289_v21 = vld [vmem:[#allocation34 + $0x38] sm:$0xff]   ;;  %v5291_v25 = vld [vmem:[#allocation34 + $0x28] sm:$0xff]   ;;  %v5292_v30 = vld [vmem:[#allocation34 + $0x20] sm:$0xff]  }
 0xed7   :  { %v3313_v20 = vpop.xlane.xlu0 %3312  ;;  %v3311_v41 = vpop.xlane.xlu1 %3310  ;;  %5077 = vmatprep.subr.bf16.mxu0 %v5289_v21  ;;  %v5293_v40 = vld [vmem:[#allocation34 + $0x18] sm:$0xff]  }
 0xed8   :  { %v3338_v61 = vmul.f32 0.0078125, %v3313_v20  ;;  %v3337_v17 = vmul.f32 0.0078125, %v3311_v41  ;;  %v3368_v52 = vmul.f32 %v7524_v36, %v7524_v36  ;;  %v3367_v14 = vmul.f32 %v7526_v56, %v7526_v56  ;;  %5078 = vmatpush3.bf16.msra.mxu0 %v5289_v21 }
 0xeda   :  { %v7532_v9 = vsub.f32 %v3262_v49, %v3338_v61  ;;  %v7534_v12 = vsub.f32 %v3257_v24, %v3337_v17  ;;  %3388 = vadd.xlane.f32.xlu0 %v3368_v52  ;;  %3386 = vadd.xlane.f32.xlu1 %v3367_v14 }
 0xedb   :  { %v3317_v46 = vpop.xlane.xlu0 %3316  ;;  %v3315_v28 = vpop.xlane.xlu1 %3314 }
 0xedc   :  { %v3340_v50 = vmul.f32 0.0078125, %v3317_v46  ;;  %v3339_v6 = vmul.f32 0.0078125, %v3315_v28  ;;  %v3370_v63 = vmul.f32 %v7532_v9, %v7532_v9  ;;  %v3369_v39 = vmul.f32 %v7534_v12, %v7534_v12 }
 0xede   :  { %v7541_v18 = vsub.f32 %v3270_v37, %v3340_v50  ;;  %v7544_v22 = vsub.f32 %v7480_v53, %v3339_v6  ;;  %3392 = vadd.xlane.f32.xlu0 %v3370_v63  ;;  %3390 = vadd.xlane.f32.xlu1 %v3369_v39 }
 0xedf   :  { %v3321_v49 = vpop.xlane.xlu0 %3320  ;;  %v3319_v8 = vpop.xlane.xlu1 %3318 }
 0xee0   :  { %v3342_v24 = vmul.f32 0.0078125, %v3321_v49  ;;  %v3341_v60 = vmul.f32 0.0078125, %v3319_v8  ;;  %v3372_v23 = vmul.f32 %v7541_v18, %v7541_v18  ;;  %v3371_v59 = vmul.f32 %v7544_v22, %v7544_v22 }
 0xee2   :  { %v7552_v37 = vsub.f32 %v7485_v1, %v3342_v24  ;;  %v7555_v53 = vsub.f32 %v7488_v55, %v3341_v60  ;;  %3396 = vadd.xlane.f32.xlu0 %v3372_v23  ;;  %3394 = vadd.xlane.f32.xlu1 %v3371_v59  ;;  %v5283_v1 = vld [vmem:[%s7970_s19 + $0x28] sm:$0xff]  }
 0xee3   :  { %v3325_v2 = vpop.xlane.xlu0 %3324  ;;  %v3323_v32 = vpop.xlane.xlu1 %3322  ;;  %5049 = vmatprep.subr.bf16.mxu1 %v5283_v1 }
 0xee4   :  { %v3344_v47 = vmul.f32 0.0078125, %v3325_v2  ;;  %v3343_v42 = vmul.f32 0.0078125, %v3323_v32  ;;  %v3374_v16 = vmul.f32 %v7552_v37, %v7552_v37  ;;  %v3373_v13 = vmul.f32 %v7555_v53, %v7555_v53  ;;  %5050 = vmatpush3.bf16.msra.mxu1 %v5283_v1 }
 0xee6   :  { %v7563_v0 = vsub.f32 %v7496_v44, %v3344_v47  ;;  %v7566_v55 = vsub.f32 %v7493_v48, %v3343_v42  ;;  %3400 = vadd.xlane.f32.xlu0 %v3374_v16  ;;  %3398 = vadd.xlane.f32.xlu1 %v3373_v13  ;;  %v5284_v44 = vld [vmem:[%s7970_s19 + $0x20] sm:$0xff]  }
 0xee7   :  { %v3329_v15 = vpop.xlane.xlu0 %3328  ;;  %v3327_v43 = vpop.xlane.xlu1 %3326  ;;  %5051 = vmatprep.subr.bf16.mxu1 %v5284_v44 }
 0xee8   :  { %v3346_v3 = vmul.f32 0.0078125, %v3329_v15  ;;  %v3345_v34 = vmul.f32 0.0078125, %v3327_v43  ;;  %v3376_v45 = vmul.f32 %v7563_v0, %v7563_v0  ;;  %v3375_v62 = vmul.f32 %v7566_v55, %v7566_v55  ;;  %5052 = vmatpush3.bf16.msra.mxu1 %v5284_v44  ;;  %v7593_v44 = vld [vmem:[#allocation31] ss:$0 sm:$0xff] }
 0xeea   :  { %v7574_v31 = vsub.f32 %v7501_v5, %v3346_v3  ;;  %v7577_v48 = vsub.f32 %v7504_v54, %v3345_v34  ;;  %3404 = vadd.xlane.f32.xlu0 %v3376_v45  ;;  %3402 = vadd.xlane.f32.xlu1 %v3375_v62  ;;  %v5285_v5 = vld [vmem:[%s7970_s19 + $0x18] sm:$0xff]  }
 0xeeb   :  { %v3331_v51 = vpop.xlane.xlu1 %3330  ;;  %5053 = vmatprep.subr.bf16.mxu1 %v5285_v5 }
 0xeec   :  { %v3347_v26 = vmul.f32 0.0078125, %v3331_v51  ;;  %v3378_v29 = vmul.f32 %v7574_v31, %v7574_v31  ;;  %v3377_v27 = vmul.f32 %v7577_v48, %v7577_v48  ;;  %5054 = vmatpush3.bf16.msra.mxu1 %v5285_v5 }
 0xeed   :  { %5055 = vmatprep.subr.bf16.mxu1 %v5286_v7 }
 0xeee   :  { %v7585_v38 = vsub.f32 %v7509_v19, %v3347_v26  ;;  %3408 = vadd.xlane.f32.xlu0 %v3378_v29  ;;  %3406 = vadd.xlane.f32.xlu1 %v3377_v27  ;;  %v5290_v19 = vld [vmem:[#allocation34 + $0x30] sm:$0xff]  }
 0xeef   :  { %5079 = vmatprep.subr.bf16.mxu0 %v5290_v19 }
 0xef0   :  { %v3379_v54 = vmul.f32 %v7585_v38, %v7585_v38  ;;  %5056 = vmatpush3.bf16.msra.mxu1 %v5286_v7  ;;  %5080 = vmatpush3.bf16.msra.mxu0 %v5290_v19  ;;  %v7598_v19 = vld [vmem:[#allocation32] ss:$0 sm:$0xff] }
 0xef1   :  { %5057 = vmatprep.subr.bf16.mxu1 %v5287_v35  ;;  %5081 = vmatprep.subr.bf16.mxu0 %v5291_v25 }
 0xef2   :  { %3410 = vadd.xlane.f32.xlu1 %v3379_v54 }
 0xef4   :  { %5058 = vmatpush3.bf16.msra.mxu1 %v5287_v35  ;;  %5082 = vmatpush3.bf16.msra.mxu0 %v5291_v25 }
 0xef5   :  { %5059 = vmatprep.subr.bf16.mxu1 %v5288_v58  ;;  %5083 = vmatprep.subr.bf16.mxu0 %v5292_v30 }
 0xef8   :  { %5060 = vmatpush3.bf16.msra.mxu1 %v5288_v58  ;;  %5084 = vmatpush3.bf16.msra.mxu0 %v5292_v30 }
 0xef9   :  { %5085 = vmatprep.subr.bf16.mxu0 %v5293_v40 }
 0xefc   :  { %5086 = vmatpush3.bf16.msra.mxu0 %v5293_v40 }
 0xf5b   :  { %v3381_v20 = vpop.xlane.xlu0 %3380 }
 0xf5c   :  { %v3412_v41 = vmul.f32 0.0078125, %v3381_v20 }
 0xf5e   :  { %v3428_v61 = vadd.f32 1e-05, %v3412_v41 }
 0xf5f   :  { %v3385_v17 = vpop.xlane.xlu0 %3384  ;;  %v3383_v52 = vpop.xlane.xlu1 %3382 }
 0xf60   :  { %5497 = vrsqrt.f32 %v3428_v61  ;;  %v3414_v14 = vmul.f32 0.0078125, %v3385_v17  ;;  %v3413_v46 = vmul.f32 0.0078125, %v3383_v52 }
 0xf62   :  { %v3430_v28 = vadd.f32 1e-05, %v3414_v14  ;;  %v3429_v50 = vadd.f32 1e-05, %v3413_v46 }
 0xf63   :  { %v3389_v6 = vpop.xlane.xlu0 %3388  ;;  %v3387_v63 = vpop.xlane.xlu1 %3386 }
 0xf64   :  { %5499 = vrsqrt.f32 %v3430_v28  ;;  %v3416_v39 = vmul.f32 0.0078125, %v3389_v6  ;;  %v3415_v33 = vmul.f32 0.0078125, %v3387_v63 }
 0xf65   :  { %5501 = vrsqrt.f32 %v3429_v50 }
 0xf66   :  { %v3432_v49 = vadd.f32 1e-05, %v3416_v39  ;;  %v3431_v8 = vadd.f32 1e-05, %v3415_v33 }
 0xf67   :  { %v3393_v24 = vpop.xlane.xlu0 %3392  ;;  %v3391_v60 = vpop.xlane.xlu1 %3390 }
 0xf68   :  { %5503 = vrsqrt.f32 %v3432_v49  ;;  %v3418_v23 = vmul.f32 0.0078125, %v3393_v24  ;;  %v3417_v59 = vmul.f32 0.0078125, %v3391_v60 }
 0xf69   :  { %5505 = vrsqrt.f32 %v3431_v8 }
 0xf6a   :  { %v3434_v57 = vadd.f32 1e-05, %v3418_v23  ;;  %v3433_v2 = vadd.f32 1e-05, %v3417_v59 }
 0xf6b   :  { %v3397_v32 = vpop.xlane.xlu0 %3396  ;;  %v3395_v47 = vpop.xlane.xlu1 %3394 }
 0xf6c   :  { %5507 = vrsqrt.f32 %v3434_v57  ;;  %v3420_v42 = vmul.f32 0.0078125, %v3397_v32  ;;  %v3419_v16 = vmul.f32 0.0078125, %v3395_v47 }
 0xf6d   :  { %v5498_v13 = vpop.eup %5497  ;;  %5509 = vrsqrt.f32 %v3433_v2 }
 0xf6e   :  { %v3436_v1 = vadd.f32 1e-05, %v3420_v42  ;;  %v3435_v15 = vadd.f32 1e-05, %v3419_v16  ;;  %v3460_v34 = vmul.f32 %v5498_v13, %v7512_v10 }
 0xf6f   :  { %v3401_v43 = vpop.xlane.xlu0 %3400  ;;  %v3399_v3 = vpop.xlane.xlu1 %3398 }
 0xf70   :  { %5511 = vrsqrt.f32 %v3436_v1  ;;  %v3422_v45 = vmul.f32 0.0078125, %v3401_v43  ;;  %v3421_v62 = vmul.f32 0.0078125, %v3399_v3  ;;  %v3483_v58 = vmul.f32 %v7593_v44, %v3460_v34 }
 0xf71   :  { %v5500_v51 = vpop.eup %5499  ;;  %5513 = vrsqrt.f32 %v3435_v15 }
 0xf72   :  { %v5502_v26 = vpop.eup %5501  ;;  %v3462_v29 = vmul.f32 %v5500_v51, %v7516_v4  ;;  %v3438_v27 = vadd.f32 1e-05, %v3422_v45  ;;  %v3437_v5 = vadd.f32 1e-05, %v3421_v62  ;;  %v7604_v52 = vadd.f32 %v7598_v19, %v3483_v58 }
 0xf73   :  { %v3405_v54 = vpop.xlane.xlu0 %3404  ;;  %v3403_v7 = vpop.xlane.xlu1 %3402  ;;  %v3461_v35 = vmul.f32 %v5502_v26, %v7518_v11 }
 0xf74   :  { %5515 = vrsqrt.f32 %v3438_v27  ;;  %v3424_v10 = vmul.f32 0.0078125, %v3405_v54  ;;  %v3423_v21 = vmul.f32 0.0078125, %v3403_v7  ;;  %v3485_v41 = vmul.f32 %v7593_v44, %v3462_v29 }
 0xf75   :  { %v5504_v25 = vpop.eup %5503  ;;  %5517 = vrsqrt.f32 %v3437_v5  ;;  %v3484_v30 = vmul.f32 %v7593_v44, %v3461_v35 }
 0xf76   :  { %v5506_v40 = vpop.eup %5505  ;;  %v3440_v20 = vadd.f32 1e-05, %v3424_v10  ;;  %v3439_v4 = vadd.f32 1e-05, %v3423_v21  ;;  %v3464_v46 = vmul.f32 %v5504_v25, %v7524_v36  ;;  %v7614_v8 = vadd.f32 %v7598_v19, %v3485_v41 }
 0xf77   :  { %v3463_v61 = vmul.f32 %v5506_v40, %v7526_v56  ;;  %v3409_v17 = vpop.xlane.xlu0 %3408  ;;  %v3407_v11 = vpop.xlane.xlu1 %3406  ;;  %v7607_v14 = vadd.f32 %v7598_v19, %v3484_v30 }
 0xf78   :  { %5519 = vrsqrt.f32 %v3440_v20  ;;  %v3426_v28 = vmul.f32 0.0078125, %v3409_v17  ;;  %v3425_v50 = vmul.f32 0.0078125, %v3407_v11  ;;  %v3487_v23 = vmul.f32 %v7593_v44, %v3464_v46 }
 0xf79   :  { %v5508_v6 = vpop.eup %5507  ;;  %5521 = vrsqrt.f32 %v3439_v4  ;;  %v3522_v63 = vpack.c.bf16 %v7607_v14, %v7604_v52  ;;  %v3486_v56 = vmul.f32 %v7593_v44, %v3463_v61 }
 0xf7a   :  { %v5510_v39 = vpop.eup %5509  ;;  %v3442_v33 = vadd.f32 1e-05, %v3426_v28  ;;  %v3441_v49 = vadd.f32 1e-05, %v3425_v50  ;;  %v3466_v59 = vmul.f32 %v5508_v6, %v7532_v9 }
 0xf7b   :  { %5061 = vmatprep.mubr.bf16.mxu1 %v3522_v63  ;;  %v3411_v24 = vpop.xlane.xlu1 %3410  ;;  %v7617_v36 = vadd.f32 %v7598_v19, %v3486_v56  ;;  %v3465_v60 = vmul.f32 %v5510_v39, %v7534_v12  ;;  %v7627_v12 = vadd.f32 %v7598_v19, %v3487_v23  ;;  %v5294_v56 = vld [vmem:[#allocation34 + $0x10] sm:$0xff]   ;;  %v5295_v39 = vld [vmem:[#allocation34 + $0x8] sm:$0xff]  }
 0xf7c   :  { %5523 = vrsqrt.f32 %v3442_v33  ;;  %v3427_v57 = vmul.f32 0.0078125, %v3411_v24  ;;  %v3489_v15 = vmul.f32 %v7593_v44, %v3466_v59  ;;  %5087 = vmatprep.subr.bf16.mxu0 %v5294_v56  ;;  %v5296_v33 = vld [vmem:[#allocation34] sm:$0xff]  }
 0xf7d   :  { %v5512_v2 = vpop.eup %5511  ;;  %5525 = vrsqrt.f32 %v3441_v49  ;;  %v3523_v32 = vpack.c.bf16 %v7617_v36, %v7614_v8  ;;  %v3488_v47 = vmul.f32 %v7593_v44, %v3465_v60  ;;  %5088 = vmatpush3.bf16.msra.mxu0 %v5294_v56  ;;  %v4454_v60 = vld [vmem:[%s7971_s9] ss:$0 sm:$0xff] }
 0xf7e   :  { %v5514_v42 = vpop.eup %5513  ;;  %v3443_v16 = vadd.f32 1e-05, %v3427_v57  ;;  %v3468_v13 = vmul.f32 %v5512_v2, %v7541_v18  ;;  %v7639_v62 = vadd.f32 %v7598_v19, %v3489_v15  ;;  %5089 = vmatprep.subr.bf16.mxu0 %v5295_v39 }
 0xf7f   :  { %5062 = vmatmul.mubr.bf16.vlgmr.msra.gmra.mxu1 %v3523_v32  ;;  %v7630_v1 = vadd.f32 %v7598_v19, %v3488_v47  ;;  %v3467_v9 = vmul.f32 %v5514_v42, %v7544_v22 }
 0xf80   :  { %5527 = vrsqrt.f32 %v3443_v16  ;;  %v3491_v18 = vmul.f32 %v7593_v44, %v3468_v13 }
 0xf81   :  { %v5516_v43 = vpop.eup %5515  ;;  %v3524_v3 = vpack.c.bf16 %v7630_v1, %v7627_v12  ;;  %v3490_v34 = vmul.f32 %v7593_v44, %v3467_v9  ;;  %5090 = vmatpush3.bf16.msra.mxu0 %v5295_v39 }
 0xf82   :  { %v5518_v45 = vpop.eup %5517  ;;  %v3470_v26 = vmul.f32 %v5516_v43, %v7552_v37  ;;  %v7650_v7 = vadd.f32 %v7598_v19, %v3491_v18  ;;  %5091 = vmatprep.subr.bf16.mxu0 %v5296_v33 }
 0xf83   :  { %5065 = vmatprep.mubr.bf16.mxu1 %v3524_v3  ;;  %v7642_v51 = vadd.f32 %v7598_v19, %v3490_v34  ;;  %v3469_v22 = vmul.f32 %v5518_v45, %v7555_v53 }
 0xf84   :  { %v3493_v53 = vmul.f32 %v7593_v44, %v3470_v26 }
 0xf85   :  { %v5520_v29 = vpop.eup %5519  ;;  %v3525_v27 = vpack.c.bf16 %v7642_v51, %v7639_v62  ;;  %v3492_v5 = vmul.f32 %v7593_v44, %v3469_v22  ;;  %5092 = vmatpush3.bf16.msra.mxu0 %v5296_v33 }
 0xf86   :  { %v5522_v54 = vpop.eup %5521  ;;  %v3472_v37 = vmul.f32 %v5520_v29, %v7563_v0  ;;  %v7663_v20 = vadd.f32 %v7598_v19, %v3493_v53 }
 0xf87   :  { %5066 = vmatmul.mubr.bf16.gmra.mxu1 %v3525_v27  ;;  %v7653_v35 = vadd.f32 %v7598_v19, %v3492_v5  ;;  %v3471_v58 = vmul.f32 %v5522_v54, %v7566_v55 }
 0xf88   :  { %v3495_v0 = vmul.f32 %v7593_v44, %v3472_v37 }
 0xf89   :  { %v5524_v10 = vpop.eup %5523  ;;  %v3526_v21 = vpack.c.bf16 %v7653_v35, %v7650_v7  ;;  %v3494_v25 = vmul.f32 %v7593_v44, %v3471_v58 }
 0xf8a   :  { %v5526_v30 = vpop.eup %5525  ;;  %v3474_v40 = vmul.f32 %v5524_v10, %v7574_v31  ;;  %v7676_v46 = vadd.f32 %v7598_v19, %v3495_v0 }
 0xf8b   :  { %5069 = vmatprep.mubr.bf16.mxu1 %v3526_v21  ;;  %v7666_v4 = vadd.f32 %v7598_v19, %v3494_v25  ;;  %v3473_v55 = vmul.f32 %v5526_v30, %v7577_v48 }
 0xf8c   :  { %v3497_v31 = vmul.f32 %v7593_v44, %v3474_v40 }
 0xf8d   :  { %v5528_v41 = vpop.eup %5527  ;;  %v3527_v61 = vpack.c.bf16 %v7666_v4, %v7663_v20  ;;  %v3496_v17 = vmul.f32 %v7593_v44, %v3473_v55 }
 0xf8e   :  { %v3475_v11 = vmul.f32 %v5528_v41, %v7585_v38  ;;  %v7685_v6 = vadd.f32 %v7598_v19, %v3497_v31 }
 0xf8f   :  { %5070 = vmatmul.mubr.bf16.gmra.mxu1 %v3527_v61  ;;  %v7679_v28 = vadd.f32 %v7598_v19, %v3496_v17 }
 0xf90   :  { %v3498_v48 = vmul.f32 %v7593_v44, %v3475_v11 }
 0xf91   :  { %v3528_v50 = vpack.c.bf16 %v7679_v28, %v7676_v46 }
 0xf92   :  { %v7688_v38 = vadd.f32 %v7598_v19, %v3498_v48 }
 0xf93   :  { %5073 = vmatprep.mubr.bf16.mxu1 %v3528_v50 }
 0xf94   :  { %v3529_v63 = vpack.c.bf16 %v7688_v38, %v7685_v6 }
 0xf97   :  { %5074 = vmatmul.mubr.bf16.gmra.mxu1 %v3529_v63 }
0x103f   :  { %v5063_v49 = vpop.f32.mrf.mxu1 }
0x1040   :  { %v3644_v2 = vadd.f32 %v5063_v49, %v4454_v60 }
0x1041   :  { %v3635_v24 = vpop.f32.mrf.mxu1 }
0x1042   :  { %v3636_v59 = vadd.f32 %v4454_v60, %v3635_v24  ;;  %v3700_v15 = vmax.f32 %v3644_v2, 0.0 }
0x1043   :  { %v5064_v23 = vpop.f32.mrf.mxu1 }
0x1044   :  { %v3647_v57 = vadd.f32 %v5064_v23, %v4454_v60  ;;  %v3698_v13 = vmax.f32 %v3636_v59, 0.0 }
0x1045   :  { %v3638_v32 = vpop.f32.mrf.mxu1 }
0x1046   :  { %v3639_v47 = vadd.f32 %v4454_v60, %v3638_v32  ;;  %v3701_v42 = vmax.f32 %v3647_v57, 0.0 }
0x1047   :  { %v5067_v16 = vpop.f32.mrf.mxu1 }
0x1048   :  { %v3699_v9 = vmax.f32 %v3639_v47, 0.0  ;;  %v3715_v34 = vpack.c.bf16 %v3701_v42, %v3700_v15  ;;  %v3660_v26 = vadd.f32 %v5067_v16, %v4454_v60  ;;  %v4463_v15 = vld [vmem:[%s6256_s30] ss:$0 sm:$0xff]  ;;  %s6112_s30 = smov [#allocation37]  }
0x1049   :  { %v3651_v43 = vpop.f32.mrf.mxu1 }
0x104a   :  { %v3714_v3 = vpack.c.bf16 %v3699_v9, %v3698_v13  ;;  %v3652_v18 = vadd.f32 %v4454_v60, %v3651_v43  ;;  %v3704_v37 = vmax.f32 %v3660_v26, 0.0 }
0x104b   :  { %v5068_v45 = vpop.f32.mrf.mxu1 }
0x104c   :  { %v3663_v22 = vadd.f32 %v5068_v45, %v4454_v60  ;;  %5093 = vmatprep.mubr.bf16.mxu0 %v3714_v3  ;;  %v3702_v58 = vmax.f32 %v3652_v18, 0.0 }
0x104d   :  { %v3654_v29 = vpop.f32.mrf.mxu1  ;;  %5094 = vmatmul.mubr.bf16.vlgmr.msra.gmra.mxu0 %v3715_v34 }
0x104e   :  { %v3655_v27 = vadd.f32 %v4454_v60, %v3654_v29  ;;  %v3705_v5 = vmax.f32 %v3663_v22, 0.0 }
0x104f   :  { %v5071_v54 = vpop.f32.mrf.mxu1 }
0x1050   :  { %v3703_v53 = vmax.f32 %v3655_v27, 0.0  ;;  %v3717_v25 = vpack.c.bf16 %v3705_v5, %v3704_v37  ;;  %v3676_v0 = vadd.f32 %v5071_v54, %v4454_v60 }
0x1051   :  { %v3667_v10 = vpop.f32.mrf.mxu1 }
0x1052   :  { %v3716_v21 = vpack.c.bf16 %v3703_v53, %v3702_v58  ;;  %v3668_v40 = vadd.f32 %v4454_v60, %v3667_v10  ;;  %v3708_v50 = vmax.f32 %v3676_v0, 0.0 }
0x1053   :  { %v5072_v30 = vpop.f32.mrf.mxu1 }
0x1054   :  { %v3679_v55 = vadd.f32 %v5072_v30, %v4454_v60  ;;  %5097 = vmatprep.mubr.bf16.mxu0 %v3716_v21  ;;  %v3706_v31 = vmax.f32 %v3668_v40, 0.0 }
0x1055   :  { %v3670_v41 = vpop.f32.mrf.mxu1  ;;  %5098 = vmatmul.mubr.bf16.gmra.mxu0 %v3717_v25 }
0x1056   :  { %v3671_v61 = vadd.f32 %v4454_v60, %v3670_v41  ;;  %v3709_v17 = vmax.f32 %v3679_v55, 0.0 }
0x1057   :  { %v5075_v11 = vpop.f32.mrf.mxu1 }
0x1058   :  { %v3707_v48 = vmax.f32 %v3671_v61, 0.0  ;;  %v3719_v39 = vpack.c.bf16 %v3709_v17, %v3708_v50  ;;  %v3692_v23 = vadd.f32 %v5075_v11, %v4454_v60 }
0x1059   :  { %v3683_v63 = vpop.f32.mrf.mxu1 }
0x105a   :  { %v3718_v56 = vpack.c.bf16 %v3707_v48, %v3706_v31  ;;  %v3684_v49 = vadd.f32 %v4454_v60, %v3683_v63  ;;  %v3712_v42 = vmax.f32 %v3692_v23, 0.0 }
0x105b   :  { %v5076_v33 = vpop.f32.mrf.mxu1 }
0x105c   :  { %v3695_v24 = vadd.f32 %v5076_v33, %v4454_v60  ;;  %5101 = vmatprep.mubr.bf16.mxu0 %v3718_v56  ;;  %v3710_v32 = vmax.f32 %v3684_v49, 0.0 }
0x105d   :  { %v3686_v59 = vpop.f32.mrf.mxu1  ;;  %5102 = vmatmul.mubr.bf16.gmra.mxu0 %v3719_v39 }
0x105e   :  { %v3687_v57 = vadd.f32 %v4454_v60, %v3686_v59  ;;  %v3713_v2 = vmax.f32 %v3695_v24, 0.0 }
0x1060   :  { %v3711_v47 = vmax.f32 %v3687_v57, 0.0  ;;  %v3721_v13 = vpack.c.bf16 %v3713_v2, %v3712_v42 }
0x1062   :  { %v3720_v16 = vpack.c.bf16 %v3711_v47, %v3710_v32 }
0x1064   :  { %5105 = vmatprep.mubr.bf16.mxu0 %v3720_v16 }
0x1065   :  { %5106 = vmatmul.mubr.bf16.gmra.mxu0 %v3721_v13 }
0x110d   :  { %v5095_v9 = vpop.f32.mrf.mxu0 }
0x110e   :  { %v3836_v45 = vadd.f32 %v5095_v9, %v4463_v15 }
0x110f   :  { %v3827_v43 = vpop.f32.mrf.mxu0 }
0x1110   :  { %v3828_v3 = vadd.f32 %v4463_v15, %v3827_v43  ;;  %v3892_v29 = vadd.f32 %v3836_v45, %v7614_v8 }
0x1111   :  { %v5096_v34 = vpop.f32.mrf.mxu0 }
0x1112   :  { %v3890_v18 = vadd.f32 %v3828_v3, %v7604_v52  ;;  %v3839_v27 = vadd.f32 %v5096_v34, %v4463_v15 }
0x1113   :  { %v3830_v22 = vpop.f32.mrf.mxu0 }
0x1114   :  { %v3831_v26 = vadd.f32 %v4463_v15, %v3830_v22  ;;  %3906 = vadd.xlane.f32.xlu0 %v3890_v18  ;;  %v7698_v37 = vadd.f32 %v3839_v27, %v7617_v36 }
0x1115   :  { %v5099_v60 = vpop.f32.mrf.mxu0 }
0x1116   :  { %v3891_v5 = vadd.f32 %v3831_v26, %v7607_v14  ;;  %v3852_v10 = vadd.f32 %v5099_v60, %v4463_v15 }
0x1117   :  { %v3843_v54 = vpop.f32.mrf.mxu0 }
0x1118   :  { %v3844_v58 = vadd.f32 %v4463_v15, %v3843_v54  ;;  %3908 = vadd.xlane.f32.xlu1 %v3891_v5  ;;  %3910 = vadd.xlane.f32.xlu0 %v3892_v29  ;;  %v7703_v30 = vadd.f32 %v3852_v10, %v7639_v62 }
0x1119   :  { %v5100_v53 = vpop.f32.mrf.mxu0 }
0x111a   :  { %v3894_v52 = vadd.f32 %v3844_v58, %v7627_v12  ;;  %v3855_v14 = vadd.f32 %v5100_v53, %v4463_v15 }
0x111b   :  { %v3846_v21 = vpop.f32.mrf.mxu0 }
0x111c   :  { %v3847_v25 = vadd.f32 %v4463_v15, %v3846_v21  ;;  %3912 = vadd.xlane.f32.xlu1 %v7698_v37  ;;  %3914 = vadd.xlane.f32.xlu0 %v3894_v52  ;;  %v7711_v12 = vadd.f32 %v3855_v14, %v7642_v51  ;;  %v5297_v21 = vld [vmem:[#allocation35 + $0x38] sm:$0xff]  }
0x111d   :  { %v5103_v8 = vpop.f32.mrf.mxu0  ;;  %5109 = vmatprep.subr.bf16.mxu1 %v5297_v21 }
0x111e   :  { %v7706_v40 = vadd.f32 %v3847_v25, %v7630_v1  ;;  %v3868_v41 = vadd.f32 %v5103_v8, %v4463_v15  ;;  %5110 = vmatpush3.bf16.msra.mxu1 %v5297_v21 }
0x111f   :  { %v3859_v55 = vpop.f32.mrf.mxu0 }
0x1120   :  { %v3860_v0 = vadd.f32 %v4463_v15, %v3859_v55  ;;  %3916 = vadd.xlane.f32.xlu1 %v7706_v40  ;;  %3918 = vadd.xlane.f32.xlu0 %v7703_v30  ;;  %v7719_v11 = vadd.f32 %v3868_v41, %v7663_v20  ;;  %v5298_v41 = vld [vmem:[#allocation35 + $0x30] sm:$0xff]  }
0x1121   :  { %v5104_v36 = vpop.f32.mrf.mxu0  ;;  %5111 = vmatprep.subr.bf16.mxu1 %v5298_v41 }
0x1122   :  { %v7714_v61 = vadd.f32 %v3860_v0, %v7650_v7  ;;  %v3871_v31 = vadd.f32 %v5104_v36, %v4463_v15  ;;  %5112 = vmatpush3.bf16.msra.mxu1 %v5298_v41 }
0x1123   :  { %v3862_v62 = vpop.f32.mrf.mxu0 }
0x1124   :  { %v3863_v17 = vadd.f32 %v4463_v15, %v3862_v62  ;;  %3920 = vadd.xlane.f32.xlu1 %v7711_v12  ;;  %3922 = vadd.xlane.f32.xlu0 %v7714_v61  ;;  %v7727_v63 = vadd.f32 %v3871_v31, %v7666_v4 }
0x1125   :  { %v5107_v1 = vpop.f32.mrf.mxu0 }
0x1126   :  { %v7722_v48 = vadd.f32 %v3863_v17, %v7653_v35  ;;  %v3884_v56 = vadd.f32 %v5107_v1, %v4463_v15 }
0x1127   :  { %v3875_v51 = vpop.f32.mrf.mxu0 }
0x1128   :  { %v3876_v50 = vadd.f32 %v4463_v15, %v3875_v51  ;;  %3924 = vadd.xlane.f32.xlu1 %v7722_v48  ;;  %3926 = vadd.xlane.f32.xlu0 %v7719_v11  ;;  %v7735_v35 = vadd.f32 %v3884_v56, %v7685_v6 }
0x1129   :  { %v5108_v7 = vpop.f32.mrf.mxu0 }
0x112a   :  { %v7730_v39 = vadd.f32 %v3876_v50, %v7676_v46  ;;  %v3887_v49 = vadd.f32 %v5108_v7, %v4463_v15  ;;  %v5299_v7 = vld [vmem:[#allocation35 + $0x28] sm:$0xff]  }
0x112b   :  { %v3878_v20 = vpop.f32.mrf.mxu0  ;;  %5113 = vmatprep.subr.bf16.mxu1 %v5299_v7 }
0x112c   :  { %v3879_v33 = vadd.f32 %v4463_v15, %v3878_v20  ;;  %3928 = vadd.xlane.f32.xlu1 %v7727_v63  ;;  %3930 = vadd.xlane.f32.xlu0 %v7730_v39  ;;  %v7743_v4 = vadd.f32 %v3887_v49, %v7688_v38 }
0x112d   :  { %5114 = vmatpush3.bf16.msra.mxu1 %v5299_v7 }
0x112e   :  { %v7738_v24 = vadd.f32 %v3879_v33, %v7679_v28 }
0x1130   :  { %3932 = vadd.xlane.f32.xlu1 %v7738_v24  ;;  %3934 = vadd.xlane.f32.xlu0 %v7735_v35 }
0x1134   :  { %3936 = vadd.xlane.f32.xlu1 %v7743_v4 }
0x119d   :  { %v3907_v46 = vpop.xlane.xlu0 %3906 }
0x119e   :  { %v3938_v23 = vmul.f32 0.0078125, %v3907_v46 }
0x11a0   :  { %v7746_v59 = vsub.f32 %v3890_v18, %v3938_v23 }
0x11a1   :  { %v3911_v57 = vpop.xlane.xlu0 %3910  ;;  %v3909_v6 = vpop.xlane.xlu1 %3908 }
0x11a2   :  { %v3940_v2 = vmul.f32 0.0078125, %v3911_v57  ;;  %v3939_v32 = vmul.f32 0.0078125, %v3909_v6  ;;  %v3970_v28 = vmul.f32 %v7746_v59, %v7746_v59  ;;  %v5300_v57 = vld [vmem:[#allocation35 + $0x20] sm:$0xff]  }
0x11a3   :  { %5115 = vmatprep.subr.bf16.mxu1 %v5300_v57 }
0x11a4   :  { %v7750_v47 = vsub.f32 %v3892_v29, %v3940_v2  ;;  %v7752_v42 = vsub.f32 %v3891_v5, %v3939_v32  ;;  %3986 = vadd.xlane.f32.xlu0 %v3970_v28  ;;  %5116 = vmatpush3.bf16.msra.mxu1 %v5300_v57 }
0x11a5   :  { %v3915_v38 = vpop.xlane.xlu0 %3914  ;;  %v3913_v16 = vpop.xlane.xlu1 %3912 }
0x11a6   :  { %v3942_v13 = vmul.f32 0.0078125, %v3915_v38  ;;  %v3941_v9 = vmul.f32 0.0078125, %v3913_v16  ;;  %v3972_v15 = vmul.f32 %v7750_v47, %v7750_v47  ;;  %v3971_v43 = vmul.f32 %v7752_v42, %v7752_v42  ;;  %v5301_v38 = vld [vmem:[#allocation35 + $0x18] sm:$0xff]  }
0x11a7   :  { %5117 = vmatprep.subr.bf16.mxu1 %v5301_v38 }
0x11a8   :  { %v7758_v3 = vsub.f32 %v3894_v52, %v3942_v13  ;;  %v7761_v34 = vsub.f32 %v7698_v37, %v3941_v9  ;;  %3990 = vadd.xlane.f32.xlu0 %v3972_v15  ;;  %3988 = vadd.xlane.f32.xlu1 %v3971_v43  ;;  %v5303_v13 = vld [vmem:[#allocation35 + $0x8] sm:$0xff]   ;;  %v5304_v9 = vld [vmem:[#allocation35] sm:$0xff]  }
0x11a9   :  { %v3919_v45 = vpop.xlane.xlu0 %3918  ;;  %v3917_v18 = vpop.xlane.xlu1 %3916  ;;  %5118 = vmatpush3.bf16.msra.mxu1 %v5301_v38 }
0x11aa   :  { %v3944_v22 = vmul.f32 0.0078125, %v3919_v45  ;;  %v3943_v26 = vmul.f32 0.0078125, %v3917_v18  ;;  %v3974_v60 = vmul.f32 %v7758_v3, %v7758_v3  ;;  %v3973_v29 = vmul.f32 %v7761_v34, %v7761_v34 }
0x11ac   :  { %v7768_v27 = vsub.f32 %v7703_v30, %v3944_v22  ;;  %v7771_v5 = vsub.f32 %v7706_v40, %v3943_v26  ;;  %3994 = vadd.xlane.f32.xlu0 %v3974_v60  ;;  %3992 = vadd.xlane.f32.xlu1 %v3973_v29 }
0x11ad   :  { %v3923_v54 = vpop.xlane.xlu0 %3922  ;;  %v3921_v58 = vpop.xlane.xlu1 %3920 }
0x11ae   :  { %v3946_v53 = vmul.f32 0.0078125, %v3923_v54  ;;  %v3945_v37 = vmul.f32 0.0078125, %v3921_v58  ;;  %v3976_v10 = vmul.f32 %v7768_v27, %v7768_v27  ;;  %v3975_v52 = vmul.f32 %v7771_v5, %v7771_v5 }
0x11b0   :  { %v7778_v25 = vsub.f32 %v7714_v61, %v3946_v53  ;;  %v7781_v8 = vsub.f32 %v7711_v12, %v3945_v37  ;;  %3998 = vadd.xlane.f32.xlu0 %v3976_v10  ;;  %3996 = vadd.xlane.f32.xlu1 %v3975_v52 }
0x11b1   :  { %v3927_v30 = vpop.xlane.xlu0 %3926  ;;  %v3925_v14 = vpop.xlane.xlu1 %3924 }
0x11b2   :  { %v3948_v40 = vmul.f32 0.0078125, %v3927_v30  ;;  %v3947_v55 = vmul.f32 0.0078125, %v3925_v14  ;;  %v3978_v0 = vmul.f32 %v7778_v25, %v7778_v25  ;;  %v3977_v36 = vmul.f32 %v7781_v8, %v7781_v8 }
0x11b4   :  { %v7788_v61 = vsub.f32 %v7719_v11, %v3948_v40  ;;  %v7791_v12 = vsub.f32 %v7722_v48, %v3947_v55  ;;  %4002 = vadd.xlane.f32.xlu0 %v3978_v0  ;;  %4000 = vadd.xlane.f32.xlu1 %v3977_v36 }
0x11b5   :  { %v3931_v62 = vpop.xlane.xlu0 %3930  ;;  %v3929_v17 = vpop.xlane.xlu1 %3928 }
0x11b6   :  { %v3950_v1 = vmul.f32 0.0078125, %v3931_v62  ;;  %v3949_v31 = vmul.f32 0.0078125, %v3929_v17  ;;  %v3980_v51 = vmul.f32 %v7788_v61, %v7788_v61  ;;  %v3979_v50 = vmul.f32 %v7791_v12, %v7791_v12 }
0x11b8   :  { %v7798_v11 = vsub.f32 %v7730_v39, %v3950_v1  ;;  %v7801_v48 = vsub.f32 %v7727_v63, %v3949_v31  ;;  %4006 = vadd.xlane.f32.xlu0 %v3980_v51  ;;  %4004 = vadd.xlane.f32.xlu1 %v3979_v50 }
0x11b9   :  { %v3935_v56 = vpop.xlane.xlu0 %3934  ;;  %v3933_v20 = vpop.xlane.xlu1 %3932 }
0x11ba   :  { %v3952_v33 = vmul.f32 0.0078125, %v3935_v56  ;;  %v3951_v49 = vmul.f32 0.0078125, %v3933_v20  ;;  %v3982_v46 = vmul.f32 %v7798_v11, %v7798_v11  ;;  %v3981_v23 = vmul.f32 %v7801_v48, %v7801_v48 }
0x11bc   :  { %v7808_v39 = vsub.f32 %v7735_v35, %v3952_v33  ;;  %v7811_v63 = vsub.f32 %v7738_v24, %v3951_v49  ;;  %4010 = vadd.xlane.f32.xlu0 %v3982_v46  ;;  %4008 = vadd.xlane.f32.xlu1 %v3981_v23  ;;  %v5302_v24 = vld [vmem:[#allocation35 + $0x10] sm:$0xff]  }
0x11bd   :  { %v3937_v6 = vpop.xlane.xlu1 %3936  ;;  %5119 = vmatprep.subr.bf16.mxu1 %v5302_v24 }
0x11be   :  { %v3953_v2 = vmul.f32 0.0078125, %v3937_v6  ;;  %v3984_v32 = vmul.f32 %v7808_v39, %v7808_v39  ;;  %v3983_v28 = vmul.f32 %v7811_v63, %v7811_v63  ;;  %5120 = vmatpush3.bf16.msra.mxu1 %v5302_v24 }
0x11bf   :  { %5121 = vmatprep.subr.bf16.mxu1 %v5303_v13 }
0x11c0   :  { %v7818_v16 = vsub.f32 %v7743_v4, %v3953_v2  ;;  %4014 = vadd.xlane.f32.xlu0 %v3984_v32  ;;  %4012 = vadd.xlane.f32.xlu1 %v3983_v28 }
0x11c2   :  { %v3985_v35 = vmul.f32 %v7818_v16, %v7818_v16  ;;  %5122 = vmatpush3.bf16.msra.mxu1 %v5303_v13 }
0x11c3   :  { %5123 = vmatprep.subr.bf16.mxu1 %v5304_v9 }
0x11c4   :  { %4016 = vadd.xlane.f32.xlu1 %v3985_v35 }
0x11c6   :  { %5124 = vmatpush3.bf16.msra.mxu1 %v5304_v9 }
0x122d   :  { %v3987_v15 = vpop.xlane.xlu0 %3986 }
0x122e   :  { %v4018_v4 = vmul.f32 0.0078125, %v3987_v15 }
0x1230   :  { %v4034_v43 = vadd.f32 1e-05, %v4018_v4 }
0x1231   :  { %v3991_v45 = vpop.xlane.xlu0 %3990  ;;  %v3989_v18 = vpop.xlane.xlu1 %3988 }
0x1232   :  { %5529 = vrsqrt.f32 %v4034_v43  ;;  %v4020_v22 = vmul.f32 0.0078125, %v3991_v45  ;;  %v4019_v26 = vmul.f32 0.0078125, %v3989_v18 }
0x1234   :  { %v4036_v60 = vadd.f32 1e-05, %v4020_v22  ;;  %v4035_v29 = vadd.f32 1e-05, %v4019_v26 }
0x1235   :  { %v3995_v54 = vpop.xlane.xlu0 %3994  ;;  %v3993_v58 = vpop.xlane.xlu1 %3992 }
0x1236   :  { %5531 = vrsqrt.f32 %v4036_v60  ;;  %v4022_v53 = vmul.f32 0.0078125, %v3995_v54  ;;  %v4021_v37 = vmul.f32 0.0078125, %v3993_v58 }
0x1237   :  { %5533 = vrsqrt.f32 %v4035_v29 }
0x1238   :  { %v4038_v10 = vadd.f32 1e-05, %v4022_v53  ;;  %v4037_v52 = vadd.f32 1e-05, %v4021_v37 }
0x1239   :  { %v3999_v21 = vpop.xlane.xlu0 %3998  ;;  %v3997_v30 = vpop.xlane.xlu1 %3996 }
0x123a   :  { %5535 = vrsqrt.f32 %v4038_v10  ;;  %v4024_v14 = vmul.f32 0.0078125, %v3999_v21  ;;  %v4023_v40 = vmul.f32 0.0078125, %v3997_v30 }
0x123b   :  { %5537 = vrsqrt.f32 %v4037_v52 }
0x123c   :  { %v4040_v55 = vadd.f32 1e-05, %v4024_v14  ;;  %v4039_v0 = vadd.f32 1e-05, %v4023_v40 }
0x123d   :  { %v4003_v36 = vpop.xlane.xlu0 %4002  ;;  %v4001_v41 = vpop.xlane.xlu1 %4000 }
0x123e   :  { %5539 = vrsqrt.f32 %v4040_v55  ;;  %v4026_v62 = vmul.f32 0.0078125, %v4003_v36  ;;  %v4025_v17 = vmul.f32 0.0078125, %v4001_v41 }
0x123f   :  { %v5530_v1 = vpop.eup %5529  ;;  %5541 = vrsqrt.f32 %v4039_v0 }
0x1240   :  { %v4042_v31 = vadd.f32 1e-05, %v4026_v62  ;;  %v4041_v51 = vadd.f32 1e-05, %v4025_v17  ;;  %v4066_v56 = vmul.f32 %v5530_v1, %v7746_v59 }
0x1241   :  { %v4007_v50 = vpop.xlane.xlu0 %4006  ;;  %v4005_v7 = vpop.xlane.xlu1 %4004 }
0x1242   :  { %5543 = vrsqrt.f32 %v4042_v31  ;;  %v4028_v20 = vmul.f32 0.0078125, %v4007_v50  ;;  %v4027_v33 = vmul.f32 0.0078125, %v4005_v7  ;;  %v4082_v38 = vmul.f32 %v7593_v44, %v4066_v56 }
0x1243   :  { %v5532_v49 = vpop.eup %5531  ;;  %5545 = vrsqrt.f32 %v4041_v51 }
0x1244   :  { %v5534_v46 = vpop.eup %5533  ;;  %v4068_v23 = vmul.f32 %v5532_v49, %v7750_v47  ;;  %v4044_v57 = vadd.f32 1e-05, %v4028_v20  ;;  %v4043_v6 = vadd.f32 1e-05, %v4027_v33 }
0x1245   :  { %v4011_v2 = vpop.xlane.xlu0 %4010  ;;  %v4009_v32 = vpop.xlane.xlu1 %4008  ;;  %v4067_v28 = vmul.f32 %v5534_v46, %v7752_v42  ;;  %v4098_v42 = vadd.f32 %v7598_v19, %v4082_v38 }
0x1246   :  { %5547 = vrsqrt.f32 %v4044_v57  ;;  %v4030_v35 = vmul.f32 0.0078125, %v4011_v2  ;;  %v4029_v24 = vmul.f32 0.0078125, %v4009_v32  ;;  %v4084_v15 = vmul.f32 %v7593_v44, %v4068_v23 }
0x1247   :  { %v5536_v59 = vpop.eup %5535  ;;  %5549 = vrsqrt.f32 %v4043_v6  ;;  %v4083_v13 = vmul.f32 %v7593_v44, %v4067_v28 }
0x1248   :  { %v5538_v9 = vpop.eup %5537  ;;  %v4046_v4 = vadd.f32 1e-05, %v4030_v35  ;;  %v4045_v47 = vadd.f32 1e-05, %v4029_v24  ;;  %v4070_v26 = vmul.f32 %v5536_v59, %v7758_v3 }
0x1249   :  { %v4069_v43 = vmul.f32 %v5538_v9, %v7761_v34  ;;  %v4015_v45 = vpop.xlane.xlu0 %4014  ;;  %v4013_v18 = vpop.xlane.xlu1 %4012  ;;  %v4099_v22 = vadd.f32 %v7598_v19, %v4083_v13  ;;  %v4100_v34 = vadd.f32 %v7598_v19, %v4084_v15 }
0x124a   :  { %5551 = vrsqrt.f32 %v4046_v4  ;;  %v4032_v60 = vmul.f32 0.0078125, %v4015_v45  ;;  %v4031_v29 = vmul.f32 0.0078125, %v4013_v18  ;;  %v4086_v3 = vmul.f32 %v7593_v44, %v4070_v26 }
0x124b   :  { %v5540_v54 = vpop.eup %5539  ;;  %v4085_v58 = vmul.f32 %v7593_v44, %v4069_v43  ;;  %5553 = vrsqrt.f32 %v4045_v47  ;;  %v4114_v53 = vpack.c.bf16 %v4099_v22, %v4098_v42 }
0x124c   :  { %v5542_v37 = vpop.eup %5541  ;;  %v4048_v10 = vadd.f32 1e-05, %v4032_v60  ;;  %v4047_v52 = vadd.f32 1e-05, %v4031_v29  ;;  %v4072_v40 = vmul.f32 %v5540_v54, %v7768_v27  ;;  %v4102_v31 = vadd.f32 %v7598_v19, %v4086_v3 }
0x124d   :  { %5125 = vmatprep.mubr.bf16.mxu1 %v4114_v53  ;;  %v4017_v21 = vpop.xlane.xlu1 %4016  ;;  %v4101_v30 = vadd.f32 %v7598_v19, %v4085_v58  ;;  %v4071_v14 = vmul.f32 %v5542_v37, %v7771_v5  ;;  %v4472_v58 = vld [vmem:[%s6266_s12] ss:$0 sm:$0xff]  ;;  %s4311_s12 = sshll.u32 %s6112_s30, 4  ;;  %s4312_s12 = int_to_ptr.vmem [resolvable:$true] %s4311_s12 }
0x124e   :  { %5555 = vrsqrt.f32 %v4048_v10  ;;  %v4033_v55 = vmul.f32 0.0078125, %v4017_v21  ;;  %v4088_v27 = vmul.f32 %v7593_v44, %v4072_v40  ;;  %s6009_s16 = scalar_lea.vmem %s4312_s12, 2048  ;;  %p6014_p13 = scmp.lt.s32.totalorder %s4312_s12, %s4312_s12 }
0x124f   :  { %v5544_v0 = vpop.eup %5543  ;;  %5557 = vrsqrt.f32 %v4047_v52  ;;  %v4115_v36 = vpack.c.bf16 %v4101_v30, %v4100_v34  ;;  %v4087_v41 = vmul.f32 %v7593_v44, %v4071_v14  ;;  %p6010_p12 = scmp.ne.s32.totalorder %s4312_s12, %s6009_s16  ;;  %p6015_p0 = scmp.lt.s32.totalorder %s6009_s16, %s6009_s16 }
0x1250   :  { %v5546_v62 = vpop.eup %5545  ;;  %v4049_v17 = vadd.f32 1e-05, %v4033_v55  ;;  %v4074_v1 = vmul.f32 %v5544_v0, %v7778_v25  ;;  %v4104_v25 = vadd.f32 %v7598_v19, %v4088_v27 }
0x1251   :  { %5126 = vmatmul.mubr.bf16.vlgmr.msra.gmra.mxu1 %v4115_v36  ;;  %v4103_v5 = vadd.f32 %v7598_v19, %v4087_v41  ;;  %v4073_v51 = vmul.f32 %v5546_v62, %v7781_v8  ;;  %p6016_p1 = por %p6015_p0, %p6014_p13 }
0x1252   :  { %5559 = vrsqrt.f32 %v4049_v17  ;;  %v4090_v33 = vmul.f32 %v7593_v44, %v4074_v1 }
0x1253   :  { %v5548_v50 = vpop.eup %5547  ;;  %v4116_v7 = vpack.c.bf16 %v4103_v5, %v4102_v31  ;;  %v4089_v56 = vmul.f32 %v7593_v44, %v4073_v51  ;;  %p6017_p2 = pnand %p6016_p1, %p6010_p12 }
0x1254   :  { %v5550_v20 = vpop.eup %5549  ;;  %v4076_v23 = vmul.f32 %v5548_v50, %v7788_v61  ;;  %v4106_v32 = vadd.f32 %v7598_v19, %v4090_v33 }
0x1255   :  { %5129 = vmatprep.mubr.bf16.mxu1 %v4116_v7  ;;  %v4105_v49 = vadd.f32 %v7598_v19, %v4089_v56  ;;  %v4075_v46 = vmul.f32 %v5550_v20, %v7791_v12 }
0x1256   :  { %v4092_v35 = vmul.f32 %v7593_v44, %v4076_v23 }
0x1257   :  { %v5552_v8 = vpop.eup %5551  ;;  %v4117_v57 = vpack.c.bf16 %v4105_v49, %v4104_v25  ;;  %v4091_v6 = vmul.f32 %v7593_v44, %v4075_v46 }
0x1258   :  { %v5554_v2 = vpop.eup %5553  ;;  %v4078_v24 = vmul.f32 %v5552_v8, %v7798_v11  ;;  %v4108_v15 = vadd.f32 %v7598_v19, %v4092_v35 }
0x1259   :  { %5130 = vmatmul.mubr.bf16.gmra.mxu1 %v4117_v57  ;;  %v4107_v28 = vadd.f32 %v7598_v19, %v4091_v6  ;;  %v4077_v38 = vmul.f32 %v5554_v2, %v7801_v48 }
0x125a   :  { %v4094_v48 = vmul.f32 %v7593_v44, %v4078_v24 }
0x125b   :  { %v5556_v59 = vpop.eup %5555  ;;  %v4118_v12 = vpack.c.bf16 %v4107_v28, %v4106_v32  ;;  %v4093_v61 = vmul.f32 %v7593_v44, %v4077_v38 }
0x125c   :  { %v5558_v13 = vpop.eup %5557  ;;  %v4080_v9 = vmul.f32 %v5556_v59, %v7808_v39  ;;  %v4110_v39 = vadd.f32 %v7598_v19, %v4094_v48 }
0x125d   :  { %5133 = vmatprep.mubr.bf16.mxu1 %v4118_v12  ;;  %v4109_v4 = vadd.f32 %v7598_v19, %v4093_v61  ;;  %v4079_v47 = vmul.f32 %v5558_v13, %v7811_v63 }
0x125e   :  { %v4096_v42 = vmul.f32 %v7593_v44, %v4080_v9 }
0x125f   :  { %v5560_v43 = vpop.eup %5559  ;;  %v4119_v45 = vpack.c.bf16 %v4109_v4, %v4108_v15  ;;  %v4095_v11 = vmul.f32 %v7593_v44, %v4079_v47 }
0x1260   :  { %v4081_v18 = vmul.f32 %v5560_v43, %v7818_v16  ;;  %v4112_v63 = vadd.f32 %v7598_v19, %v4096_v42 }
0x1261   :  { %5134 = vmatmul.mubr.bf16.gmra.mxu1 %v4119_v45  ;;  %v4111_v22 = vadd.f32 %v7598_v19, %v4095_v11 }
0x1262   :  { %v4097_v26 = vmul.f32 %v7593_v44, %v4081_v18 }
0x1263   :  { %v4120_v60 = vpack.c.bf16 %v4111_v22, %v4110_v39 }
0x1264   :  { %v4113_v29 = vadd.f32 %v7598_v19, %v4097_v26 }
0x1265   :  { %5137 = vmatprep.mubr.bf16.mxu1 %v4120_v60 }
0x1266   :  { %v4121_v54 = vpack.c.bf16 %v4113_v29, %v4112_v63 }
0x1269   :  { %5138 = vmatmul.mubr.bf16.gmra.mxu1 %v4121_v54 }
0x1311   :  { %v5127_v53 = vpop.f32.mrf.mxu1 }
0x1312   :  { %v4236_v16 = vadd.f32 %v5127_v53, %v4472_v58 }
0x1313   :  { %v4227_v37 = vpop.f32.mrf.mxu1 }
0x1314   :  { %4292 = vst [vmem:[#allocation37 + $0x10] sm:$0xff] %v4236_v16  ;;  %v4228_v10 = vadd.f32 %v4472_v58, %v4227_v37 }
0x1315   :  { %v5128_v52 = vpop.f32.mrf.mxu1 }
0x1316   :  { %4290 = vst [vmem:[#allocation37] sm:$0xff] %v4228_v10  ;;  %v4239_v34 = vadd.f32 %v5128_v52, %v4472_v58 }
0x1317   :  { %v4230_v21 = vpop.f32.mrf.mxu1 }
0x1318   :  { %4293 = vst [vmem:[#allocation37 + $0x18] sm:$0xff] %v4239_v34  ;;  %v4231_v44 = vadd.f32 %v4472_v58, %v4230_v21 }
0x1319   :  { %v5131_v30 = vpop.f32.mrf.mxu1 }
0x131a   :  { %4291 = vst [vmem:[#allocation37 + $0x8] sm:$0xff] %v4231_v44  ;;  %v4252_v14 = vadd.f32 %v5131_v30, %v4472_v58 }
0x131b   :  { %v4243_v3 = vpop.f32.mrf.mxu1 }
0x131c   :  { %4296 = vst [vmem:[#allocation37 + $0x30] sm:$0xff] %v4252_v14  ;;  %v4244_v19 = vadd.f32 %v4472_v58, %v4243_v3 }
0x131d   :  { %v5132_v40 = vpop.f32.mrf.mxu1 }
0x131e   :  { %4294 = vst [vmem:[#allocation37 + $0x20] sm:$0xff] %v4244_v19  ;;  %v4255_v55 = vadd.f32 %v5132_v40, %v4472_v58 }
0x131f   :  { %v4246_v0 = vpop.f32.mrf.mxu1 }
0x1320   :  { %4297 = vst [vmem:[#allocation37 + $0x38] sm:$0xff] %v4255_v55  ;;  %v4247_v36 = vadd.f32 %v4472_v58, %v4246_v0 }
0x1321   :  { %v5135_v41 = vpop.f32.mrf.mxu1 }
0x1322   :  { %4295 = vst [vmem:[#allocation37 + $0x28] sm:$0xff] %v4247_v36  ;;  %v4268_v62 = vadd.f32 %v5135_v41, %v4472_v58 }
0x1323   :  { %v4259_v17 = vpop.f32.mrf.mxu1 }
0x1324   :  { %4300 = vst [vmem:[#allocation37 + $0x50] sm:$0xff] %v4268_v62  ;;  %v4260_v1 = vadd.f32 %v4472_v58, %v4259_v17 }
0x1325   :  { %v5136_v31 = vpop.f32.mrf.mxu1 }
0x1326   :  { %4298 = vst [vmem:[#allocation37 + $0x40] sm:$0xff] %v4260_v1  ;;  %v4271_v5 = vadd.f32 %v5136_v31, %v4472_v58 }
0x1327   :  { %v4262_v51 = vpop.f32.mrf.mxu1 }
0x1328   :  { %4301 = vst [vmem:[#allocation37 + $0x58] sm:$0xff] %v4271_v5  ;;  %v4263_v27 = vadd.f32 %v4472_v58, %v4262_v51 }
0x1329   :  { %v5139_v50 = vpop.f32.mrf.mxu1 }
0x132a   :  { %4299 = vst [vmem:[#allocation37 + $0x48] sm:$0xff] %v4263_v27  ;;  %v4284_v7 = vadd.f32 %v5139_v50, %v4472_v58 }
0x132b   :  { %v4275_v56 = vpop.f32.mrf.mxu1 }
0x132c   :  { %4304 = vst [vmem:[#allocation37 + $0x70] sm:$0xff] %v4284_v7  ;;  %v4276_v20 = vadd.f32 %v4472_v58, %v4275_v56 }
0x132d   :  { %v5140_v33 = vpop.f32.mrf.mxu1 }
0x132e   :  { %4302 = vst [vmem:[#allocation37 + $0x60] sm:$0xff] %v4276_v20  ;;  %v4287_v25 = vadd.f32 %v5140_v33, %v4472_v58 }
0x132f   :  { %v4278_v49 = vpop.f32.mrf.mxu1 }
0x1330   :  { %4305 = vst [vmem:[#allocation37 + $0x78] sm:$0xff] %v4287_v25  ;;  %v4279_v46 = vadd.f32 %v4472_v58, %v4278_v49 }
0x1332   :  { %4303 = vst [vmem:[#allocation37 + $0x68] sm:$0xff] %v4279_v46 }
0x1333   :  { %6020 = shalt.err (!%p6017_p2)
}
0x1334   :  { %4317 = dma.vmem_to_hbm [thread:$0]  %s4312_s12, 2048, %s6271_s21, [#allocation4], %s6086_s0, %s6086_s0, %s6087_s22  }
0x1335   :  { %6053 = dma.done.wait [#allocation4], 2048  }
0x1336   :  { %6054 = vsyncadd [#allocation4], 4294965248 }
0x1337   :  { %4321 = vsyncpa [#allocation3], 1 }
0x1338   :  { %4322 = vsyncpa [#allocation6], 1 }
0x1339   :  { %4323 = vsyncpa [#allocation9], 1 }
0x133a   :  { %4324 = vsyncpa [#allocation12], 1 }
0x133b   :  { %4325 = vsyncpa [#allocation15], 1 }
0x133c   :  { %4326 = vsyncpa [#allocation18], 1 }
0x133d   :  { %4327 = vsyncpa [#allocation21], 1 }
0x133e   :  { %4328 = vsyncpa [#allocation24], 1 }
0x133f   :  { %4329 = vsyncpa [#allocation27], 1 }
0x1340   :  { %4330 = vsyncpa [#allocation30], 1 }
0x1341   :  { %4331 = vsyncpa [#allocation33], 1 }
0x1342   :  { %4332 = vsyncpa [#allocation36], 1 }
0x1343   :  { %4333 = vsyncpa [#allocation4], 1 }

</bundles_post_ra>
